<compile_context>
chip_gen: v5e
topology: v5e:2x2
jax: 0.10.0
libtpu: 0.0.40
codegen_flags: <defaults>
</compile_context>

<pallas_src>
import functools

import jax
import jax.numpy as jnp
from jax.experimental import pallas as pl
from jax.experimental.pallas import tpu as pltpu

_MIB = 1024 * 1024
_SMALL_BYPASS_BYTES = 128 * 1024          # below this, skip Pallas entirely
_LANE_CANDIDATES = (2048, 1024, 512, 256, 128)   # lane-dense widths (mult. of 128)


def _lambda_kernel(func, x_ref, o_ref):
    # Apply the elementwise, shape-preserving func to the current VMEM block.
    o_ref[...] = func(x_ref[...])


def _round_up(a, b):
    return pl.cdiv(a, b) * b


def _target_block_bytes():
    """Generation-aware target bytes per (double-buffered) block."""
    try:
        kind = jax.devices()[0].device_kind.lower()
    except Exception:
        kind = ""
    if "v6" in kind:
        return 6 * _MIB   # 4x buffers = 24 MiB, far under v6e's 128 MiB VMEM
    if "v7" in kind:
        return 4 * _MIB   # 4x buffers = 16 MiB, safe under v7x's 64 MiB / TC
    return 2 * _MIB       # v5e (16 MiB scoped default) and unknown chips


def _row_tiling(rows, cols, itemsize, sub, block_bytes):
    """Pick (tm, grid_rows) for a (rows, cols) lane-dense view.

    * blocks are ~block_bytes each,
    * at least two blocks whenever there is enough data (both v7x TCs busy),
    * tm is balanced against the real row count so slack is <= one sublane
      group per block; an exact divisor nearby is preferred so the boundary
      block needs no masking.
    """
    tm_max = max(sub, (block_bytes // (itemsize * cols)) // sub * sub)
    min_grid = 2 if rows > 2 * sub else 1
    grid = max(min_grid, pl.cdiv(rows, tm_max))
    tm = pl.cdiv(rows, grid)
    if tm == rows:                       # single full-extent block
        return rows, 1
    tm = _round_up(tm, sub)
    if rows % tm:
        # Prefer a nearby exact divisor (still a sublane multiple) so the last
        # block is not a masked boundary block.
        for d in range(tm - sub, max(sub, tm // 2) - 1, -sub):
            if d > 0 and rows % d == 0:
                tm = d
                break
    return tm, pl.cdiv(rows, tm)


def _cost_estimate(func, rows, cols, dtype, itemsize):
    try:
        return pl.estimate_cost(func, jax.ShapeDtypeStruct((rows, cols), dtype))
    except Exception:
        return pl.CostEstimate(flops=rows * cols, transcendentals=0,
                               bytes_accessed=2 * rows * cols * itemsize)


def _run_tiled(func, x2d, tm, grid_rows, allow_input_fusion=None):
    rows, cols = x2d.shape
    dtype = x2d.dtype
    itemsize = jnp.dtype(dtype).itemsize
    block_bytes = tm * cols * itemsize
    # 2 in + 2 out double buffers plus headroom; clamped to a range that is
    # safe on every generation (v7x has only 64 MiB VMEM per TensorCore).
    vmem_limit = int(min(32 * _MIB, max(16 * _MIB, 4 * block_bytes + 4 * _MIB)))
    return pl.pallas_call(
        functools.partial(_lambda_kernel, func),
        out_shape=jax.ShapeDtypeStruct((rows, cols), dtype),
        grid_spec=pl.GridSpec(
            grid=(grid_rows,),
            in_specs=[pl.BlockSpec((tm, cols), lambda i: (i, 0))],
            out_specs=pl.BlockSpec((tm, cols), lambda i: (i, 0)),
        ),
        compiler_params=pltpu.CompilerParams(
            dimension_semantics=("parallel",),
            vmem_limit_bytes=vmem_limit,
            allow_input_fusion=allow_input_fusion,
        ),
        cost_estimate=_cost_estimate(func, rows, cols, dtype, itemsize),
    )(x2d)


def pallas_lambda(func, x, *, elementwise=True,
                  min_pallas_bytes=_SMALL_BYPASS_BYTES):
    """Applies an elementwise, shape-preserving `func` to `x` via Pallas.

    Non-elementwise / non-shape-preserving funcs (or elementwise=False) fall
    back to plain JAX, which still matches the PyTorch Lambda semantics.
    """
    orig_shape = x.shape
    dtype = x.dtype
    total = x.size

    if not elementwise or total == 0:
        return func(x)

    try:
        out_aval = jax.eval_shape(func, jax.ShapeDtypeStruct(orig_shape, dtype))
        preserving = (getattr(out_aval, "shape", None) == orig_shape
                      and getattr(out_aval, "dtype", None) == dtype)
    except Exception:
        preserving = False
    if not preserving:
        # TODO(synk): funcs that change shape/dtype have no generic Pallas
        # hot path; run as plain JAX.
        return func(x)

    itemsize = jnp.dtype(dtype).itemsize
    if total * itemsize <= min_pallas_bytes:
        # Tiny tensors: pallas_call launch + plumbing dominates; XLA fusion wins.
        return func(x)

    sub = max(8, 32 // max(itemsize, 1))   # 8 rows f32 / 16 bf16 / 32 int8
    block_bytes = _target_block_bytes()

    # Fast path: a lane width that divides the element count exactly means no
    # pad and no output slice — pure 1-read / 1-write HBM traffic.
    cols = next((c for c in _LANE_CANDIDATES if total % c == 0), None)
    if cols is not None:
        rows = total // cols
        tm, grid_rows = _row_tiling(rows, cols, itemsize, sub, block_bytes)
        out2d = _run_tiled(func, x.reshape(rows, cols), tm, grid_rows)
        return out2d.reshape(orig_shape)

    # Ragged fallback (element count not a multiple of 128): pad only a <128
    # element tail; allow_input_fusion lets XLA fuse the pad into the kernel's
    # input DMA.  Pad-region values are computed but sliced off afterwards.
    # TODO(synk): replace the output slice with an in-kernel masked tail store.
    cols = 128
    rows = pl.cdiv(total, cols)
    tm, grid_rows = _row_tiling(rows, cols, itemsize, sub, block_bytes)
    padded_total = rows * cols
    x_flat = jnp.pad(x.reshape(-1), (0, padded_total - total))
    out2d = _run_tiled(func, x_flat.reshape(rows, cols), tm, grid_rows,
                       allow_input_fusion=[True])
    return out2d.reshape(-1)[:total].reshape(orig_shape)


class LambdaPallas:
    """JAX/Pallas equivalent of the PyTorch Lambda(nn.Module).

    `elementwise=False` forces the plain-JAX path for funcs that are
    shape-preserving but not elementwise (flip, softmax, ...).
    """

    def __init__(self, func, elementwise=True):
        self.func = func
        self.elementwise = elementwise

    def __call__(self, x):
        return pallas_lambda(self.func, x, elementwise=self.elementwise)


if __name__ == "__main__":
    key = jax.random.PRNGKey(0)
    k1, k2, k3, k4, k5 = jax.random.split(key, 5)

    # 1) Spec-sized input (2,4,16,16) f32 + relu: tiny -> small-size bypass.
    x_small = jax.random.normal(k1, (2, 4, 16, 16), dtype=jnp.float32)
    relu_mod = LambdaPallas(jax.nn.relu)
    out = jax.block_until_ready(relu_mod(x_small))
    assert out.shape == x_small.shape and out.dtype == x_small.dtype
    assert jnp.allclose(out, jax.nn.relu(x_small), atol=1e-6, rtol=1e-6)

    # 2) 2 MiB f32 gelu: Pallas fast path, exact tiling, >=2 parallel blocks,
    #    transcendental-aware cost estimate.
    x_big = jax.random.normal(k2, (8, 64, 32, 32), dtype=jnp.float32)
    gelu_mod = LambdaPallas(jax.nn.gelu)
    out_big = jax.block_until_ready(gelu_mod(x_big))
    assert out_big.shape == x_big.shape and out_big.dtype == x_big.dtype
    assert jnp.allclose(out_big, jax.nn.gelu(x_big), atol=1e-5, rtol=1e-5)

    # 3) bf16 affine lambda: Pallas fast path with bf16 sublane granularity.
    x_bf = jax.random.normal(k3, (4, 256, 256), dtype=jnp.bfloat16)
    affine_mod = LambdaPallas(lambda t: t * 2 + 1)
    out_bf = jax.block_until_ready(affine_mod(x_bf))
    ref_bf = x_bf * 2 + 1
    assert out_bf.shape == x_bf.shape and out_bf.dtype == x_bf.dtype
    assert jnp.allclose(out_bf.astype(jnp.float32), ref_bf.astype(jnp.float32),
                        atol=1e-2, rtol=1e-2)

    # 4) Ragged element count (250*524 = 131000, not a multiple of 128):
    #    exercises the tail-pad fallback Pallas path.
    x_rag = jax.random.normal(k4, (250, 524), dtype=jnp.float32)
    gauss_mod = LambdaPallas(lambda t: jnp.exp(-t * t))
    out_rag = jax.block_until_ready(gauss_mod(x_rag))
    assert out_rag.shape == x_rag.shape and out_rag.dtype == x_rag.dtype
    assert jnp.allclose(out_rag, jnp.exp(-x_rag * x_rag), atol=1e-6, rtol=1e-6)

    # 5) Tiny ragged bf16 (3,5,7): small-size bypass, identical semantics.
    y = jax.random.normal(k5, (3, 5, 7), dtype=jnp.bfloat16)
    out_y = jax.block_until_ready(affine_mod(y))
    ref_y = y * 2 + 1
    assert out_y.shape == y.shape and out_y.dtype == y.dtype
    assert jnp.allclose(out_y.astype(jnp.float32), ref_y.astype(jnp.float32),
                        atol=1e-2, rtol=1e-2)

    print("KERNEL_OK")
</pallas_src>

<mosaic_0001>
module attributes {stable_mosaic.version = 11 : i64} {
  func.func @_lambda_kernel(%arg0: i32, %arg1: memref<128x2048xf32, #tpu.memory_space<vmem>>, %arg2: memref<128x2048xf32, #tpu.memory_space<vmem>>) attributes {dimension_semantics = [#tpu.dimension_semantics<parallel>], iteration_bounds = array<i64: 2>, scalar_prefetch = 0 : i64, scratch_operands = 0 : i64, tpu.core_type = #tpu.core_type<tc>, window_params = [{transform_indices = @transform_0, window_bounds = array<i64: 128, 2048>}, {transform_indices = @transform_1, window_bounds = array<i64: 128, 2048>}]} {
    %c0 = arith.constant 0 : index
    %c0_0 = arith.constant 0 : index
    %0 = vector.load %arg1[%c0, %c0_0] : memref<128x2048xf32, #tpu.memory_space<vmem>>, vector<128x2048xf32>
    %1 = arith.mulf %0, %0 : vector<128x2048xf32>
    %2 = arith.mulf %0, %1 : vector<128x2048xf32>
    %cst = arith.constant 4.471500e-02 : f32
    %3 = vector.broadcast %cst : f32 to vector<128x2048xf32>
    %4 = arith.mulf %3, %2 : vector<128x2048xf32>
    %5 = arith.addf %0, %4 : vector<128x2048xf32>
    %cst_1 = arith.constant 0.797884583 : f32
    %6 = vector.broadcast %cst_1 : f32 to vector<128x2048xf32>
    %7 = arith.mulf %6, %5 : vector<128x2048xf32>
    %8 = math.tanh %7 : vector<128x2048xf32>
    %cst_2 = arith.constant 1.000000e+00 : f32
    %9 = vector.broadcast %cst_2 : f32 to vector<128x2048xf32>
    %10 = arith.addf %9, %8 : vector<128x2048xf32>
    %cst_3 = arith.constant 5.000000e-01 : f32
    %11 = vector.broadcast %cst_3 : f32 to vector<128x2048xf32>
    %12 = arith.mulf %11, %10 : vector<128x2048xf32>
    %13 = arith.mulf %0, %12 : vector<128x2048xf32>
    %c0_4 = arith.constant 0 : index
    %c0_5 = arith.constant 0 : index
    %14 = vector.load %arg2[%c0_4, %c0_5] : memref<128x2048xf32, #tpu.memory_space<vmem>>, vector<128x2048xf32>
    tpu.vector_store %arg2[%c0_4, %c0_5], %13 {strides = array<i32>} : memref<128x2048xf32, #tpu.memory_space<vmem>>, vector<128x2048xf32>,
    return
  }
  func.func @transform_0(%arg0: i32) -> (i32, i32) {
    %c0_i32 = arith.constant 0 : i32
    %c0_i32_0 = arith.constant 0 : i32
    return %arg0, %c0_i32 : i32, i32
  }
  func.func @transform_1(%arg0: i32) -> (i32, i32) {
    %c0_i32 = arith.constant 0 : i32
    %c0_i32_0 = arith.constant 0 : i32
    return %arg0, %c0_i32 : i32, i32
  }
}

</mosaic_0001>

<bundles_post_ra>
// kernel: tpu_custom_call.1
= control target key start
LH: loop header
LB: loop body
LE: loop exit
PB: predicated region body
PF: predicated region fallthrough
CT: control target
= control target key end

     0   :  { %6 = vsyncpa [#allocation3], 0  ;;  %s6180_s0 = inlined_call_operand.hbm [shape: f32[256,2048], index: 0, kind: input, shape index: {}]   ;;  %s6181_s1 = inlined_call_operand.hbm [shape: f32[256,2048], index: 1, kind: output, shape index: {}]  }
   0x1   :  { %8 = vsyncpa [#allocation3 + $0x1], 0 }
   0x2   :  { %9 = vsyncpa [#allocation4], 0 }
   0x3   :  { %11 = vsyncpa [#allocation4 + $0x1], 0  ;;  %s3740_s6 = smov 0   ;;  %s3742_s7 = smov 0  }
   0x4   :  { %s3744_s8 = smov 0   ;;  %s3746_s9 = smov 0  }
   0x5 LB: > { %s3761_s10 = sadd.s32 4294967295, %s3724_s9   ;;  %s3046_s11 = sadd.s32 4294967294, %s3724_s9   ;;  %s3724_s9 = sphi %s3746_s9, %s6191_s9   ;;  %s3720_s8 = sphi %s3744_s8, %s6190_s8   ;;  %s3716_s7 = sphi %s3742_s7, %s6189_s7   ;;  %s3712_s6 = sphi %s3740_s6, %s6188_s6  }
   0x6   : > { %s3765_s12 = sadd.s32 1, %s3724_s9   ;;  %s24_s13 = sadd.s32 1, %s3720_s8 }
   0x7   : > { %s21_s14 = ssub.s32 %s3724_s9, %s3765_s12  ;;  %p31_p0 = scmp.ne.s32.totalorder %s3720_s8, %s3716_s7 }
   0x8   : > { %p22_p1 = scmp.eq.s32.totalorder %s21_s14, 0  ;;  %p32_p2 = scmp.eq.s32.totalorder %s3724_s9, 0 }
   0x9   : > { %p37_p3 = scmp.ne.s32.totalorder %s3716_s7, %s3712_s6  ;;  %p38_p4 = scmp.eq.s32.totalorder %s3761_s10, 0 }
   0xa   : > { %s3777_s15 = scalar_select %p22_p1, %s3720_s8, %s24_s13  }
   0xb   : > { %p3779_p5 = por %p32_p2, %p31_p0  ;;  %p3783_p6 = por %p38_p4, %p37_p3 }
   0xc   : > { %p61_p7 = scmp.eq.s32.totalorder %s3761_s10, 1  ;;  %p67_p8 = scmp.eq.s32.totalorder %s3046_s11, 1 }
   0xd   : > { %p3078_p10 = scmp.lt.s32.totalorder %s3724_s9, 2  ;;  %s87_s20 = sand.u32 1, %s3720_s8  }
   0xe   : > { %p3790_p11 = por %p61_p7, %p31_p0  ;;  %p3794_p12 = por %p67_p8, %p37_p3 }
   0xf   : > { %s3063_s21 = sshll.u32 %s3724_s9, 11  ;;  %s3049_s22 = sshll.u32 %s87_s20, 11 }
  0x10   : > { %s97_s25 = scalar_lea.hbm %s6180_s0, %s3063_s21  ;;  %s91_s27 = scalar_lea.vmem [#allocation2], %s3049_s22 }
  0x11   : > { %s98_s26 = sshll.u32 %s97_s25, 4  ;;  %s100_s28 = sshll.u32 %s91_s27, 4  ;;  %s99_s26 = int_to_ptr.hbm [resolvable:$true] %s98_s26  ;;  %s101_s28 = int_to_ptr.vmem [resolvable:$true] %s100_s28 }
  0x12   : > { %p3805_p13 = pnand %p3078_p10, %p3779_p5  ;;  %p3053_p0 = scmp.ge.s32.totalorder %s3724_s9, 1 }
  0x13   : > { %p108_p1 = scmp.lt.s32.totalorder %s3724_s9, 3  ;;  %s88_s30 = scalar_lea.sflag [#allocation3], %s87_s20 }
  0x14   : > { %s3628_s2 = sshra.s32 %s99_s26, 4  ;;  %p3632_p3 = pneg %p3805_p13  ;;  %s3629_s2 = int_to_ptr.hbm [resolvable:$true] %s3628_s2 }
  0x15   : > { %s3630_s3 = scalar_lea.hbm %s3629_s2, 2048  ;;  %s3635_s11 = scalar_lea.hbm %s6180_s0, 4096 }
  0x16   : > { %p3631_p2 = scmp.ne.s32.totalorder %s3629_s2, %s3630_s3  ;;  %p3636_p5 = scmp.lt.s32.totalorder %s3629_s2, %s6180_s0 }
  0x17   : > { %p3637_p8 = scmp.lt.s32.totalorder %s3635_s11, %s3630_s3 }
  0x18   : > { %p3633_p4 = pnand %p3632_p3, %p3631_p2 }
  0x19   : > { %p3638_p10 = por %p3637_p8, %p3636_p5 }
  0x1a   : > { %p3634_p7 = pneg %p3633_p4 }
  0x1c   : > { %p3639_p9 = pnand %p3638_p10, %p3634_p7 }
  0x1e   : > { %3642 = shalt.err (!%p3639_p9)
}
  0x1f   : > { %s3726_s16 = smov 2048   ;;  %s3727_s20 = smov 128  }
  0x20   : > { %3073 = dma.hbm_to_vmem [thread:$0]  (!%p3805_p13), %s99_s26, 32768, %s101_s28, %s88_s30, %s3726_s16, %s3726_s16, %s3727_s20  }
  0x21   : > { %p109_p2 = pnand %p3053_p0, %p108_p1 }
  0x22   : > { %s3826_s21 = sand.u32 (!%p109_p2), 1, %s3716_s7  }
  0x23   : > { %112 = sbr.rel (%p109_p2) target bundleno = 636 (0x27c), region = 24  ;;  %s3054_s22 = sshll.u32 (!%p109_p2), %s3826_s21, 11 }
  0x24   : > { %s115_s23 = scalar_lea.sflag (!%p109_p2), [#allocation3], %s3826_s21  ;;  %s3832_s24 = scalar_lea.vmem (!%p109_p2), [#allocation2], %s3054_s22 }
  0x28   : > { %3703 = dma.done.wait (%p3783_p6), %s115_s23, 32768  }
  0x29   : > { %3705 = vsyncadd (%p3783_p6), %s115_s23, 4294934528  ;;  %v3839_v0 = vld [vmem:[%s3832_s24] sm:$0xff]  ;;  %v3842_v1 = vld [vmem:[%s3832_s24 + $0x8] sm:$0xff]  ;;  %s3942_s17 = scalar_lea.vmem [#allocation5], %s3054_s22  ;;  %s3065_s25 = sshll.u32 %s3761_s10, 11 }
  0x2a   : > { %v3845_v2 = vld [vmem:[%s3832_s24 + $0x10] sm:$0xff]  ;;  %v396_v3 = vmul.f32 %v3839_v0, %v3839_v0  ;;  %v397_v4 = vmul.f32 %v3842_v1, %v3842_v1  ;;  %v3854_v6 = vld [vmem:[%s3832_s24 + $0x18] sm:$0xff]  ;;  %v3857_v7 = vld [vmem:[%s3832_s24 + $0x20] sm:$0xff]  ;;  %s2969_s28 = scalar_lea.hbm %s6181_s1, %s3065_s25  ;;  %s2970_s10 = sshll.u32 %s3942_s17, 4  ;;  %s2971_s10 = int_to_ptr.vmem [resolvable:$true] %s2970_s10 }
  0x2b   : > { %v398_v5 = vmul.f32 %v3845_v2, %v3845_v2  ;;  %v3860_v8 = vld [vmem:[%s3832_s24 + $0x28] sm:$0xff]  ;;  %v399_v9 = vmul.f32 %v3854_v6, %v3854_v6  ;;  %v400_v10 = vmul.f32 %v3857_v7, %v3857_v7  ;;  %v3869_v12 = vld [vmem:[%s3832_s24 + $0x30] sm:$0xff]  ;;  %v3872_v13 = vld [vmem:[%s3832_s24 + $0x38] sm:$0xff]  ;;  %s2972_s29 = sshll.u32 %s2969_s28, 4  ;;  %s2957_s30 = scalar_lea.sflag [#allocation4], %s3826_s21  ;;  %s2973_s29 = int_to_ptr.hbm [resolvable:$true] %s2972_s29 }
  0x2c   : > { %v401_v11 = vmul.f32 %v3860_v8, %v3860_v8  ;;  %v652_v14 = vmul.f32 %v396_v3, %v3839_v0  ;;  %v653_v15 = vmul.f32 %v397_v4, %v3842_v1  ;;  %v402_v17 = vmul.f32 %v3869_v12, %v3869_v12  ;;  %v3890_v34 = vld [vmem:[%s3832_s24 + $0x40] sm:$0xff]  ;;  %v3893_v35 = vld [vmem:[%s3832_s24 + $0x48] sm:$0xff]  ;;  %v3899_v40 = vld [vmem:[%s3832_s24 + $0x50] sm:$0xff]  ;;  %s3672_s2 = sshra.s32 %s2973_s29, 4  ;;  %s3678_s11 = scalar_lea.hbm %s6181_s1, 4096  ;;  %s3673_s2 = int_to_ptr.hbm [resolvable:$true] %s3672_s2 }
  0x2d   : > { %v654_v16 = vmul.f32 %v398_v5, %v3845_v2  ;;  %v655_v18 = vmul.f32 %v399_v9, %v3854_v6  ;;  %v656_v19 = vmul.f32 %v400_v10, %v3857_v7  ;;  %v403_v21 = vmul.f32 %v3872_v13, %v3872_v13  ;;  %v3902_v41 = vld [vmem:[%s3832_s24 + $0x58] sm:$0xff]  ;;  %v3905_v42 = vld [vmem:[%s3832_s24 + $0x60] sm:$0xff]  ;;  %v3914_v54 = vld [vmem:[%s3832_s24 + $0x68] sm:$0xff]  ;;  %s3674_s3 = scalar_lea.hbm %s3673_s2, 2048  ;;  %p3679_p0 = scmp.lt.s32.totalorder %s3673_s2, %s6181_s1 }
  0x2e   : > { %v657_v20 = vmul.f32 %v401_v11, %v3860_v8  ;;  %v908_v22 = vmul.f32 0.044715, %v652_v14  ;;  %v909_v23 = vmul.f32 0.044715, %v653_v15  ;;  %v658_v25 = vmul.f32 %v402_v17, %v3869_v12  ;;  %p3675_p6 = scmp.ne.s32.totalorder %s3673_s2, %s3674_s3  ;;  %p3680_p1 = scmp.lt.s32.totalorder %s3678_s11, %s3674_s3 }
  0x2f   : > { %v910_v24 = vmul.f32 0.044715, %v654_v16  ;;  %v911_v26 = vmul.f32 0.044715, %v655_v18  ;;  %v912_v27 = vmul.f32 0.044715, %v656_v19  ;;  %v659_v29 = vmul.f32 %v403_v21, %v3872_v13 }
  0x30   : > { %v913_v28 = vmul.f32 0.044715, %v657_v20  ;;  %v1164_v30 = vadd.f32 %v908_v22, %v3839_v0  ;;  %v1165_v31 = vadd.f32 %v909_v23, %v3842_v1  ;;  %v914_v33 = vmul.f32 0.044715, %v658_v25  ;;  %p3676_p9 = pnand %p3675_p6, %p3790_p11  ;;  %p3681_p3 = por %p3680_p1, %p3679_p0 }
  0x31   : > { %v1166_v32 = vadd.f32 %v910_v24, %v3845_v2  ;;  %v1167_v36 = vadd.f32 %v911_v26, %v3854_v6  ;;  %v1168_v37 = vadd.f32 %v912_v27, %v3857_v7  ;;  %v915_v39 = vmul.f32 0.044715, %v659_v29 }
  0x32   : > { %v1169_v38 = vadd.f32 %v913_v28, %v3860_v8  ;;  %v1420_v43 = vmul.f32 0.7978846, %v1164_v30  ;;  %v1421_v44 = vmul.f32 0.7978846, %v1165_v31  ;;  %v1170_v46 = vadd.f32 %v914_v33, %v3869_v12  ;;  %p3677_p13 = pneg %p3676_p9 }
  0x33   : > { %v1422_v45 = vmul.f32 0.7978846, %v1166_v32  ;;  %v1423_v47 = vmul.f32 0.7978846, %v1167_v36  ;;  %v1424_v48 = vmul.f32 0.7978846, %v1168_v37  ;;  %v1171_v50 = vadd.f32 %v915_v39, %v3872_v13 }
  0x34   : > { %v1425_v49 = vmul.f32 0.7978846, %v1169_v38  ;;  %3116 = vtanh.f32 %v1420_v43  ;;  %v1426_v51 = vmul.f32 0.7978846, %v1170_v46  ;;  %v404_v52 = vmul.f32 %v3890_v34, %v3890_v34  ;;  %p3682_p4 = pnand %p3681_p3, %p3677_p13 }
  0x35   : > { %v405_v53 = vmul.f32 %v3893_v35, %v3893_v35  ;;  %3118 = vtanh.f32 %v1421_v44  ;;  %v1427_v55 = vmul.f32 0.7978846, %v1171_v50  ;;  %v406_v56 = vmul.f32 %v3899_v40, %v3899_v40 }
  0x36   : > { %v407_v57 = vmul.f32 %v3902_v41, %v3902_v41  ;;  %3120 = vtanh.f32 %v1422_v45  ;;  %v660_v58 = vmul.f32 %v404_v52, %v3890_v34  ;;  %v408_v60 = vmul.f32 %v3905_v42, %v3905_v42 }
  0x37   : > { %v661_v59 = vmul.f32 %v405_v53, %v3893_v35  ;;  %3122 = vtanh.f32 %v1423_v47  ;;  %v662_v61 = vmul.f32 %v406_v56, %v3899_v40  ;;  %v409_v63 = vmul.f32 %v3914_v54, %v3914_v54  ;;  %v3950_v53 = vld [vmem:[%s3832_s24 + $0x80] sm:$0xff] }
  0x38   : > { %v663_v62 = vmul.f32 %v407_v57, %v3902_v41  ;;  %3124 = vtanh.f32 %v1424_v48  ;;  %v916_v3 = vmul.f32 0.044715, %v660_v58  ;;  %v664_v5 = vmul.f32 %v408_v60, %v3905_v42 }
  0x39   : > { %v917_v4 = vmul.f32 0.044715, %v661_v59  ;;  %3126 = vtanh.f32 %v1425_v49  ;;  %v918_v9 = vmul.f32 0.044715, %v662_v61  ;;  %v665_v11 = vmul.f32 %v409_v63, %v3914_v54  ;;  %v3938_v49 = vld [vmem:[%s3832_s24 + $0x70] sm:$0xff] }
  0x3a   : > { %v919_v10 = vmul.f32 0.044715, %v663_v62  ;;  %v3117_v14 = vpop.eup %3116  ;;  %3128 = vtanh.f32 %v1426_v51  ;;  %v1172_v15 = vadd.f32 %v916_v3, %v3890_v34  ;;  %v920_v17 = vmul.f32 0.044715, %v664_v5 }
  0x3b   : > { %v1173_v16 = vadd.f32 %v917_v4, %v3893_v35  ;;  %v3119_v18 = vpop.eup %3118  ;;  %v1932_v19 = vadd.f32 1.0, %v3117_v14  ;;  %3130 = vtanh.f32 %v1427_v55  ;;  %v1174_v20 = vadd.f32 %v918_v9, %v3899_v40 }
  0x3c   : > { %v1175_v21 = vadd.f32 %v919_v10, %v3902_v41  ;;  %v3121_v22 = vpop.eup %3120  ;;  %v1933_v23 = vadd.f32 1.0, %v3119_v18  ;;  %v1428_v24 = vmul.f32 0.7978846, %v1172_v15  ;;  %v1176_v26 = vadd.f32 %v920_v17, %v3905_v42 }
  0x3d   : > { %v1429_v25 = vmul.f32 0.7978846, %v1173_v16  ;;  %v3123_v27 = vpop.eup %3122  ;;  %v2188_v28 = vmul.f32 0.5, %v1932_v19  ;;  %v1934_v29 = vadd.f32 1.0, %v3121_v22  ;;  %v1430_v30 = vmul.f32 0.7978846, %v1174_v20 }
  0x3e   : > { %v1431_v31 = vmul.f32 0.7978846, %v1175_v21  ;;  %v3125_v32 = vpop.eup %3124  ;;  %v2189_v33 = vmul.f32 0.5, %v1933_v23  ;;  %v1935_v36 = vadd.f32 1.0, %v3123_v27  ;;  %3132 = vtanh.f32 %v1428_v24 }
  0x3f   : > { %v1432_v37 = vmul.f32 0.7978846, %v1176_v26  ;;  %v3127_v38 = vpop.eup %3126  ;;  %v2444_v39 = vmul.f32 %v2188_v28, %v3839_v0  ;;  %v2190_v43 = vmul.f32 0.5, %v1934_v29  ;;  %v1936_v44 = vadd.f32 1.0, %v3125_v32 }
  0x40   : > { %3134 = vtanh.f32 %v1429_v25  ;;  %v3129_v45 = vpop.eup %3128  ;;  %v2445_v46 = vmul.f32 %v2189_v33, %v3842_v1  ;;  %v2191_v47 = vmul.f32 0.5, %v1935_v36  ;;  %v1937_v48 = vadd.f32 1.0, %v3127_v38  ;;  %v3947_v1 = vld [vmem:[%s3832_s24 + $0x78] sm:$0xff] }
  0x41   : > { %3136 = vtanh.f32 %v1430_v30  ;;  %v3131_v50 = vpop.eup %3130  ;;  %2700 = vst [vmem:[%s3942_s17] sm:$0xff] %v2444_v39  ;;  %v2446_v0 = vmul.f32 %v2190_v43, %v3845_v2  ;;  %v2192_v51 = vmul.f32 0.5, %v1936_v44  ;;  %v1938_v52 = vadd.f32 1.0, %v3129_v45  ;;  %v3988_v36 = vld [vmem:[%s3832_s24 + $0x98] sm:$0xff]  ;;  %v3994_v43 = vld [vmem:[%s3832_s24 + $0xa0] sm:$0xff] }
  0x42   : > { %3138 = vtanh.f32 %v1431_v31  ;;  %2701 = vst [vmem:[%s3942_s17 + $0x8] sm:$0xff] %v2445_v46  ;;  %v2447_v55 = vmul.f32 %v2191_v47, %v3854_v6  ;;  %v2193_v56 = vmul.f32 0.5, %v1937_v48  ;;  %v1939_v57 = vadd.f32 1.0, %v3131_v50  ;;  %v4001_v47 = vld [vmem:[%s3832_s24 + $0xa8] sm:$0xff] }
  0x43   : > { %3140 = vtanh.f32 %v1432_v37  ;;  %2702 = vst [vmem:[%s3942_s17 + $0x10] sm:$0xff] %v2446_v0  ;;  %v2448_v58 = vmul.f32 %v2192_v51, %v3857_v7  ;;  %v2194_v2 = vmul.f32 0.5, %v1938_v52  ;;  %v921_v59 = vmul.f32 0.044715, %v665_v11  ;;  %v3965_v7 = vld [vmem:[%s3832_s24 + $0x88] sm:$0xff]  ;;  %v3972_v11 = vld [vmem:[%s3832_s24 + $0x90] sm:$0xff] }
  0x44   : > { %v410_v60 = vmul.f32 %v3938_v49, %v3938_v49  ;;  %v3133_v61 = vpop.eup %3132  ;;  %2703 = vst [vmem:[%s3942_s17 + $0x18] sm:$0xff] %v2447_v55  ;;  %v2449_v62 = vmul.f32 %v2193_v56, %v3860_v8  ;;  %v2195_v63 = vmul.f32 0.5, %v1939_v57  ;;  %v411_v6 = vmul.f32 %v3947_v1, %v3947_v1 }
  0x45   : > { %v412_v3 = vmul.f32 %v3950_v53, %v3950_v53  ;;  %2704 = vst [vmem:[%s3942_s17 + $0x20] sm:$0xff] %v2448_v58  ;;  %v2450_v5 = vmul.f32 %v2194_v2, %v3869_v12  ;;  %v1940_v9 = vadd.f32 1.0, %v3133_v61  ;;  %v1177_v10 = vadd.f32 %v921_v59, %v3914_v54  ;;  %v4017_v2 = vld [vmem:[%s3832_s24 + $0xb0] sm:$0xff] }
  0x46   : > { %v3135_v4 = vpop.eup %3134  ;;  %v666_v8 = vmul.f32 %v410_v60, %v3938_v49  ;;  %2705 = vst [vmem:[%s3942_s17 + $0x28] sm:$0xff] %v2449_v62  ;;  %v2451_v15 = vmul.f32 %v2195_v63, %v3872_v13  ;;  %v667_v17 = vmul.f32 %v411_v6, %v3947_v1  ;;  %v413_v22 = vmul.f32 %v3965_v7, %v3965_v7  ;;  %v4022_v62 = vld [vmem:[%s3832_s24 + $0xb8] sm:$0xff] }
  0x47   : > { %v3137_v14 = vpop.eup %3136  ;;  %v1941_v16 = vadd.f32 1.0, %v3135_v4  ;;  %v668_v18 = vmul.f32 %v412_v3, %v3950_v53  ;;  %2706 = vst [vmem:[%s3942_s17 + $0x30] sm:$0xff] %v2450_v5  ;;  %v2196_v12 = vmul.f32 0.5, %v1940_v9  ;;  %v1433_v21 = vmul.f32 0.7978846, %v1177_v10 }
  0x48   : > { %v3139_v19 = vpop.eup %3138  ;;  %v1942_v20 = vadd.f32 1.0, %v3137_v14  ;;  %2707 = vst [vmem:[%s3942_s17 + $0x38] sm:$0xff] %v2451_v15  ;;  %v922_v13 = vmul.f32 0.044715, %v666_v8  ;;  %v414_v26 = vmul.f32 %v3972_v11, %v3972_v11  ;;  %v923_v33 = vmul.f32 0.044715, %v667_v17 }
  0x49   : > { %v3141_v23 = vpop.eup %3140  ;;  %v2197_v24 = vmul.f32 0.5, %v1941_v16  ;;  %v1943_v25 = vadd.f32 1.0, %v3139_v19  ;;  %v2452_v27 = vmul.f32 %v2196_v12, %v3890_v34  ;;  %3142 = vtanh.f32 %v1433_v21  ;;  %v4031_v16 = vld [vmem:[%s3832_s24 + $0xc0] sm:$0xff]  ;;  %v4034_v17 = vld [vmem:[%s3832_s24 + $0xc8] sm:$0xff] }
  0x4a   : > { %v2198_v28 = vmul.f32 0.5, %v1942_v20  ;;  %v1944_v29 = vadd.f32 1.0, %v3141_v23  ;;  %v1178_v32 = vadd.f32 %v922_v13, %v3938_v49  ;;  %v924_v39 = vmul.f32 0.044715, %v668_v18 }
  0x4b   : > { %v2453_v30 = vmul.f32 %v2197_v24, %v3893_v35  ;;  %v2199_v31 = vmul.f32 0.5, %v1943_v25  ;;  %2708 = vst [vmem:[%s3942_s17 + $0x40] sm:$0xff] %v2452_v27  ;;  %v669_v34 = vmul.f32 %v413_v22, %v3965_v7  ;;  %v1179_v45 = vadd.f32 %v923_v33, %v3947_v1 }
  0x4c   : > { %v2454_v37 = vmul.f32 %v2198_v28, %v3899_v40  ;;  %v2200_v38 = vmul.f32 0.5, %v1944_v29  ;;  %v1434_v44 = vmul.f32 0.7978846, %v1178_v32  ;;  %v670_v46 = vmul.f32 %v414_v26, %v3972_v11 }
  0x4d   : > { %2709 = vst [vmem:[%s3942_s17 + $0x48] sm:$0xff] %v2453_v30  ;;  %v2455_v35 = vmul.f32 %v2199_v31, %v3902_v41  ;;  %v1180_v48 = vadd.f32 %v924_v39, %v3950_v53  ;;  %v925_v50 = vmul.f32 0.044715, %v669_v34  ;;  %v415_v0 = vmul.f32 %v3988_v36, %v3988_v36 }
  0x4e   : > { %2710 = vst [vmem:[%s3942_s17 + $0x50] sm:$0xff] %v2454_v37  ;;  %v2456_v40 = vmul.f32 %v2200_v38, %v3905_v42  ;;  %3144 = vtanh.f32 %v1434_v44  ;;  %v1435_v41 = vmul.f32 0.7978846, %v1179_v45  ;;  %v926_v51 = vmul.f32 0.044715, %v670_v46 }
  0x4f   : > { %2711 = vst [vmem:[%s3942_s17 + $0x58] sm:$0xff] %v2455_v35  ;;  %v416_v52 = vmul.f32 %v3994_v43, %v3994_v43  ;;  %v3143_v55 = vpop.eup %3142  ;;  %v1436_v56 = vmul.f32 0.7978846, %v1180_v48  ;;  %v1181_v57 = vadd.f32 %v925_v50, %v3965_v7  ;;  %v671_v42 = vmul.f32 %v415_v0, %v3988_v36  ;;  %v4051_v50 = vld [vmem:[%s3832_s24 + $0xd0] sm:$0xff] }
  0x50   : > { %2712 = vst [vmem:[%s3942_s17 + $0x60] sm:$0xff] %v2456_v40  ;;  %v417_v58 = vmul.f32 %v4001_v47, %v4001_v47  ;;  %v1945_v59 = vadd.f32 1.0, %v3143_v55  ;;  %3146 = vtanh.f32 %v1435_v41  ;;  %v1182_v60 = vadd.f32 %v926_v51, %v3972_v11 }
  0x51   : > { %v672_v61 = vmul.f32 %v416_v52, %v3994_v43  ;;  %3148 = vtanh.f32 %v1436_v56  ;;  %v1437_v63 = vmul.f32 0.7978846, %v1181_v57  ;;  %v927_v6 = vmul.f32 0.044715, %v671_v42  ;;  %v4057_v52 = vld [vmem:[%s3832_s24 + $0xd8] sm:$0xff] }
  0x52   : > { %v673_v3 = vmul.f32 %v417_v58, %v4001_v47  ;;  %v2201_v4 = vmul.f32 0.5, %v1945_v59  ;;  %v1438_v5 = vmul.f32 0.7978846, %v1182_v60  ;;  %v418_v10 = vmul.f32 %v4017_v2, %v4017_v2 }
  0x53   : > { %v928_v9 = vmul.f32 0.044715, %v672_v61  ;;  %3150 = vtanh.f32 %v1437_v63  ;;  %v1183_v8 = vadd.f32 %v927_v6, %v3988_v36  ;;  %v419_v15 = vmul.f32 %v4022_v62, %v4022_v62 }
  0x54   : > { %v929_v14 = vmul.f32 0.044715, %v673_v3  ;;  %v3145_v18 = vpop.eup %3144  ;;  %v2457_v19 = vmul.f32 %v2201_v4, %v3914_v54  ;;  %3152 = vtanh.f32 %v1438_v5  ;;  %v674_v20 = vmul.f32 %v418_v10, %v4017_v2  ;;  %v4069_v3 = vld [vmem:[%s3832_s24 + $0xe0] sm:$0xff] }
  0x55   : > { %v1184_v12 = vadd.f32 %v928_v9, %v3994_v43  ;;  %v1946_v21 = vadd.f32 1.0, %v3145_v18  ;;  %v1439_v22 = vmul.f32 0.7978846, %v1183_v8  ;;  %v675_v24 = vmul.f32 %v419_v15, %v4022_v62 }
  0x56   : > { %v1185_v23 = vadd.f32 %v929_v14, %v4001_v47  ;;  %v3147_v25 = vpop.eup %3146  ;;  %2713 = vst [vmem:[%s3942_s17 + $0x68] sm:$0xff] %v2457_v19  ;;  %v930_v26 = vmul.f32 0.044715, %v674_v20  ;;  %v420_v27 = vmul.f32 %v4031_v16, %v4031_v16  ;;  %v421_v54 = vmul.f32 %v4034_v17, %v4034_v17  ;;  %v4080_v20 = vld [vmem:[%s3832_s24 + $0xe8] sm:$0xff] }
  0x57   : > { %v1440_v13 = vmul.f32 0.7978846, %v1184_v12  ;;  %v3149_v28 = vpop.eup %3148  ;;  %v2202_v29 = vmul.f32 0.5, %v1946_v21  ;;  %v1947_v30 = vadd.f32 1.0, %v3147_v25  ;;  %3154 = vtanh.f32 %v1439_v22 }
  0x58   : > { %v1441_v31 = vmul.f32 0.7978846, %v1185_v23  ;;  %v1948_v32 = vadd.f32 1.0, %v3149_v28  ;;  %v1186_v33 = vadd.f32 %v930_v26, %v4017_v2  ;;  %v931_v37 = vmul.f32 0.044715, %v675_v24  ;;  %v4089_v28 = vld [vmem:[%s3832_s24 + $0xf8] sm:$0xff] }
  0x59   : > { %3156 = vtanh.f32 %v1440_v13  ;;  %v3151_v38 = vpop.eup %3150  ;;  %v2458_v39 = vmul.f32 %v2202_v29, %v3938_v49  ;;  %v2203_v34 = vmul.f32 0.5, %v1947_v30  ;;  %v676_v35 = vmul.f32 %v420_v27, %v4031_v16  ;;  %v4084_v13 = vld [vmem:[%s3832_s24 + $0xf0] sm:$0xff] }
  0x5a   : > { %3158 = vtanh.f32 %v1441_v31  ;;  %v3153_v44 = vpop.eup %3152  ;;  %v2204_v45 = vmul.f32 0.5, %v1948_v32  ;;  %v1949_v46 = vadd.f32 1.0, %v3151_v38  ;;  %v1442_v40 = vmul.f32 0.7978846, %v1186_v33 }
  0x5b   : > { %v1187_v48 = vadd.f32 %v931_v37, %v4022_v62  ;;  %2714 = vst [vmem:[%s3942_s17 + $0x70] sm:$0xff] %v2458_v39  ;;  %v2459_v0 = vmul.f32 %v2203_v34, %v3947_v1  ;;  %v1950_v41 = vadd.f32 1.0, %v3153_v44  ;;  %v932_v51 = vmul.f32 0.044715, %v676_v35 }
  0x5c   : > { %v677_v49 = vmul.f32 %v421_v54, %v4034_v17  ;;  %v2460_v55 = vmul.f32 %v2204_v45, %v3950_v53  ;;  %v2205_v56 = vmul.f32 0.5, %v1949_v46  ;;  %3160 = vtanh.f32 %v1442_v40 }
  0x5d   : > { %v1443_v57 = vmul.f32 0.7978846, %v1187_v48  ;;  %v3155_v42 = vpop.eup %3154  ;;  %2715 = vst [vmem:[%s3942_s17 + $0x78] sm:$0xff] %v2459_v0  ;;  %v2206_v58 = vmul.f32 0.5, %v1950_v41  ;;  %v1188_v59 = vadd.f32 %v932_v51, %v4031_v16  ;;  %v422_v60 = vmul.f32 %v4051_v50, %v4051_v50 }
  0x5e   : > { %v933_v1 = vmul.f32 0.044715, %v677_v49  ;;  %2716 = vst [vmem:[%s3942_s17 + $0x80] sm:$0xff] %v2460_v55  ;;  %v2461_v63 = vmul.f32 %v2205_v56, %v3965_v7  ;;  %v1951_v53 = vadd.f32 1.0, %v3155_v42  ;;  %v423_v6 = vmul.f32 %v4057_v52, %v4057_v52  ;;  %v4109_v49 = vld [vmem:[%s3832_s24 + $0x100] sm:$0xff]  ;;  %v4112_v55 = vld [vmem:[%s3832_s24 + $0x108] sm:$0xff] }
  0x5f   : > { %v3157_v61 = vpop.eup %3156  ;;  %3162 = vtanh.f32 %v1443_v57  ;;  %v2462_v5 = vmul.f32 %v2206_v58, %v3972_v11  ;;  %v1444_v10 = vmul.f32 0.7978846, %v1188_v59  ;;  %v678_v7 = vmul.f32 %v422_v60, %v4051_v50 }
  0x60   : > { %v3159_v4 = vpop.eup %3158  ;;  %v1952_v9 = vadd.f32 1.0, %v3157_v61  ;;  %v1189_v8 = vadd.f32 %v933_v1, %v4034_v17  ;;  %2717 = vst [vmem:[%s3942_s17 + $0x88] sm:$0xff] %v2461_v63  ;;  %v2207_v14 = vmul.f32 0.5, %v1951_v53  ;;  %v679_v18 = vmul.f32 %v423_v6, %v4057_v52  ;;  %v4118_v61 = vld [vmem:[%s3832_s24 + $0x110] sm:$0xff]  ;;  %v4127_v6 = vld [vmem:[%s3832_s24 + $0x118] sm:$0xff] }
  0x61   : > { %v1953_v15 = vadd.f32 1.0, %v3159_v4  ;;  %2718 = vst [vmem:[%s3942_s17 + $0x90] sm:$0xff] %v2462_v5  ;;  %3164 = vtanh.f32 %v1444_v10  ;;  %v424_v11 = vmul.f32 %v4069_v3, %v4069_v3  ;;  %v934_v24 = vmul.f32 0.044715, %v678_v7 }
  0x62   : > { %v2208_v19 = vmul.f32 0.5, %v1952_v9  ;;  %v1445_v12 = vmul.f32 0.7978846, %v1189_v8  ;;  %v3161_v21 = vpop.eup %3160  ;;  %v2463_v22 = vmul.f32 %v2207_v14, %v3988_v36  ;;  %v935_v25 = vmul.f32 0.044715, %v679_v18 }
  0x63   : > { %v2209_v23 = vmul.f32 0.5, %v1953_v15  ;;  %v1954_v27 = vadd.f32 1.0, %v3161_v21  ;;  %v680_v54 = vmul.f32 %v424_v11, %v4069_v3  ;;  %v1190_v36 = vadd.f32 %v934_v24, %v4051_v50  ;;  %v4140_v11 = vld [vmem:[%s3832_s24 + $0x120] sm:$0xff] }
  0x64   : > { %v2464_v26 = vmul.f32 %v2208_v19, %v3994_v43  ;;  %3166 = vtanh.f32 %v1445_v12  ;;  %2719 = vst [vmem:[%s3942_s17 + $0x98] sm:$0xff] %v2463_v22  ;;  %v1191_v31 = vadd.f32 %v935_v25, %v4057_v52  ;;  %v425_v32 = vmul.f32 %v4080_v20, %v4080_v20 }
  0x65   : > { %v3163_v29 = vpop.eup %3162  ;;  %v2465_v30 = vmul.f32 %v2209_v23, %v4001_v47  ;;  %v2210_v43 = vmul.f32 0.5, %v1954_v27  ;;  %v936_v37 = vmul.f32 0.044715, %v680_v54  ;;  %v426_v38 = vmul.f32 %v4084_v13, %v4084_v13 }
  0x66   : > { %2720 = vst [vmem:[%s3942_s17 + $0xa0] sm:$0xff] %v2464_v26  ;;  %v1955_v33 = vadd.f32 1.0, %v3163_v29  ;;  %v1446_v39 = vmul.f32 0.7978846, %v1190_v36  ;;  %v1447_v47 = vmul.f32 0.7978846, %v1191_v31  ;;  %v681_v34 = vmul.f32 %v425_v32, %v4080_v20 }
  0x67   : > { %2721 = vst [vmem:[%s3942_s17 + $0xa8] sm:$0xff] %v2465_v30  ;;  %v427_v35 = vmul.f32 %v4089_v28, %v4089_v28  ;;  %v3165_v44 = vpop.eup %3164  ;;  %v2466_v45 = vmul.f32 %v2210_v43, %v4017_v2  ;;  %v1192_v40 = vadd.f32 %v936_v37, %v4069_v3  ;;  %v682_v48 = vmul.f32 %v426_v38, %v4084_v13  ;;  %v4150_v31 = vld [vmem:[%s3832_s24 + $0x128] sm:$0xff] }
  0x68   : > { %v2211_v46 = vmul.f32 0.5, %v1955_v33  ;;  %v1956_v0 = vadd.f32 1.0, %v3165_v44  ;;  %3168 = vtanh.f32 %v1446_v39  ;;  %v937_v41 = vmul.f32 0.044715, %v681_v34 }
  0x69   : > { %v683_v51 = vmul.f32 %v427_v35, %v4089_v28  ;;  %2722 = vst [vmem:[%s3942_s17 + $0xb0] sm:$0xff] %v2466_v45  ;;  %3170 = vtanh.f32 %v1447_v47  ;;  %v1448_v57 = vmul.f32 0.7978846, %v1192_v40  ;;  %v938_v42 = vmul.f32 0.044715, %v682_v48 }
  0x6a   : > { %v3167_v56 = vpop.eup %3166  ;;  %v2467_v2 = vmul.f32 %v2211_v46, %v4022_v62  ;;  %v2212_v58 = vmul.f32 0.5, %v1956_v0  ;;  %v1193_v1 = vadd.f32 %v937_v41, %v4080_v20  ;;  %v428_v53 = vmul.f32 %v4109_v49, %v4109_v49 }
  0x6b   : > { %v1957_v59 = vadd.f32 1.0, %v3167_v56  ;;  %v939_v60 = vmul.f32 0.044715, %v683_v51  ;;  %3172 = vtanh.f32 %v1448_v57  ;;  %v1194_v63 = vadd.f32 %v938_v42, %v4084_v13  ;;  %v4161_v51 = vld [vmem:[%s3832_s24 + $0x130] sm:$0xff] }
  0x6c   : > { %2723 = vst [vmem:[%s3942_s17 + $0xb8] sm:$0xff] %v2467_v2  ;;  %v429_v62 = vmul.f32 %v4112_v55, %v4112_v55  ;;  %v2468_v4 = vmul.f32 %v2212_v58, %v4031_v16  ;;  %v1449_v9 = vmul.f32 0.7978846, %v1193_v1  ;;  %v684_v14 = vmul.f32 %v428_v53, %v4109_v49 }
  0x6d   : > { %v2213_v5 = vmul.f32 0.5, %v1957_v59  ;;  %v1195_v10 = vadd.f32 %v939_v60, %v4089_v28  ;;  %v1450_v8 = vmul.f32 0.7978846, %v1194_v63  ;;  %v430_v7 = vmul.f32 %v4118_v61, %v4118_v61  ;;  %v4167_v60 = vld [vmem:[%s3832_s24 + $0x138] sm:$0xff] }
  0x6e   : > { %v685_v15 = vmul.f32 %v429_v62, %v4112_v55  ;;  %v3169_v18 = vpop.eup %3168  ;;  %2724 = vst [vmem:[%s3942_s17 + $0xc0] sm:$0xff] %v2468_v4  ;;  %3174 = vtanh.f32 %v1449_v9  ;;  %v431_v16 = vmul.f32 %v4127_v6, %v4127_v6  ;;  %v940_v23 = vmul.f32 0.044715, %v684_v14  ;;  %v4174_v62 = vld [vmem:[%s3832_s24 + $0x140] sm:$0xff]  ;;  %v4177_v4 = vld [vmem:[%s3832_s24 + $0x148] sm:$0xff] }
  0x6f   : > { %v2469_v19 = vmul.f32 %v2213_v5, %v4034_v17  ;;  %v1451_v12 = vmul.f32 0.7978846, %v1195_v10  ;;  %v3171_v21 = vpop.eup %3170  ;;  %v1958_v22 = vadd.f32 1.0, %v3169_v18  ;;  %3176 = vtanh.f32 %v1450_v8  ;;  %v4185_v18 = vld [vmem:[%s3832_s24 + $0x150] sm:$0xff] }
  0x70   : > { %v941_v24 = vmul.f32 0.044715, %v685_v15  ;;  %v1959_v25 = vadd.f32 1.0, %v3171_v21  ;;  %v686_v26 = vmul.f32 %v430_v7, %v4118_v61  ;;  %v687_v17 = vmul.f32 %v431_v16, %v4127_v6 }
  0x71   : > { %2725 = vst [vmem:[%s3942_s17 + $0xc8] sm:$0xff] %v2469_v19  ;;  %3178 = vtanh.f32 %v1451_v12  ;;  %v3173_v27 = vpop.eup %3172  ;;  %v2214_v54 = vmul.f32 0.5, %v1958_v22  ;;  %v1196_v29 = vadd.f32 %v940_v23, %v4109_v49  ;;  %v432_v36 = vmul.f32 %v4140_v11, %v4140_v11 }
  0x72   : > { %v1197_v30 = vadd.f32 %v941_v24, %v4112_v55  ;;  %v2215_v32 = vmul.f32 0.5, %v1959_v25  ;;  %v1960_v43 = vadd.f32 1.0, %v3173_v27  ;;  %v942_v33 = vmul.f32 0.044715, %v686_v26 }
  0x73   : > { %v943_v37 = vmul.f32 0.044715, %v687_v17  ;;  %v2470_v38 = vmul.f32 %v2214_v54, %v4051_v50  ;;  %v1452_v39 = vmul.f32 0.7978846, %v1196_v29  ;;  %v688_v34 = vmul.f32 %v432_v36, %v4140_v11 }
  0x74   : > { %v1453_v47 = vmul.f32 0.7978846, %v1197_v30  ;;  %v3175_v35 = vpop.eup %3174  ;;  %v2471_v44 = vmul.f32 %v2215_v32, %v4057_v52  ;;  %v2216_v45 = vmul.f32 0.5, %v1960_v43  ;;  %v1198_v46 = vadd.f32 %v942_v33, %v4118_v61 }
  0x75   : > { %v1199_v40 = vadd.f32 %v943_v37, %v4127_v6  ;;  %v3177_v48 = vpop.eup %3176  ;;  %2726 = vst [vmem:[%s3942_s17 + $0xd0] sm:$0xff] %v2470_v38  ;;  %v1961_v0 = vadd.f32 1.0, %v3175_v35  ;;  %3180 = vtanh.f32 %v1452_v39  ;;  %v944_v50 = vmul.f32 0.044715, %v688_v34 }
  0x76   : > { %v433_v41 = vmul.f32 %v4150_v31, %v4150_v31  ;;  %2727 = vst [vmem:[%s3942_s17 + $0xd8] sm:$0xff] %v2471_v44  ;;  %v2472_v52 = vmul.f32 %v2216_v45, %v4069_v3  ;;  %v1962_v2 = vadd.f32 1.0, %v3177_v48  ;;  %3182 = vtanh.f32 %v1453_v47  ;;  %v4207_v48 = vld [vmem:[%s3832_s24 + $0x158] sm:$0xff] }
  0x77   : > { %v3179_v56 = vpop.eup %3178  ;;  %v1454_v57 = vmul.f32 0.7978846, %v1198_v46  ;;  %v2217_v42 = vmul.f32 0.5, %v1961_v0  ;;  %v1455_v59 = vmul.f32 0.7978846, %v1199_v40  ;;  %v1200_v1 = vadd.f32 %v944_v50, %v4140_v11 }
  0x78   : > { %v1963_v58 = vadd.f32 1.0, %v3179_v56  ;;  %2728 = vst [vmem:[%s3942_s17 + $0xe0] sm:$0xff] %v2472_v52  ;;  %v2218_v63 = vmul.f32 0.5, %v1962_v2  ;;  %v689_v53 = vmul.f32 %v433_v41, %v4150_v31  ;;  %v434_v3 = vmul.f32 %v4161_v51, %v4161_v51  ;;  %v4212_v41 = vld [vmem:[%s3832_s24 + $0x160] sm:$0xff]  ;;  %v4215_v56 = vld [vmem:[%s3832_s24 + $0x168] sm:$0xff] }
  0x79   : > { %3184 = vtanh.f32 %v1454_v57  ;;  %v2473_v5 = vmul.f32 %v2217_v42, %v4080_v20  ;;  %v1456_v10 = vmul.f32 0.7978846, %v1200_v1  ;;  %v435_v7 = vmul.f32 %v4167_v60, %v4167_v60  ;;  %v4221_v42 = vld [vmem:[%s3832_s24 + $0x170] sm:$0xff] }
  0x7a   : > { %v2219_v9 = vmul.f32 0.5, %v1963_v58  ;;  %3186 = vtanh.f32 %v1455_v59  ;;  %v2474_v8 = vmul.f32 %v2218_v63, %v4084_v13  ;;  %v945_v14 = vmul.f32 0.044715, %v689_v53 }
  0x7b   : > { %v690_v15 = vmul.f32 %v434_v3, %v4161_v51  ;;  %v3181_v19 = vpop.eup %3180  ;;  %2729 = vst [vmem:[%s3942_s17 + $0xe8] sm:$0xff] %v2473_v5  ;;  %3188 = vtanh.f32 %v1456_v10  ;;  %v436_v20 = vmul.f32 %v4174_v62, %v4174_v62  ;;  %v437_v13 = vmul.f32 %v4177_v4, %v4177_v4  ;;  %v4232_v5 = vld [vmem:[%s3832_s24 + $0x178] sm:$0xff] }
  0x7c   : > { %v2475_v12 = vmul.f32 %v2219_v9, %v4089_v28  ;;  %v3183_v16 = vpop.eup %3182  ;;  %2730 = vst [vmem:[%s3942_s17 + $0xf0] sm:$0xff] %v2474_v8  ;;  %v1964_v21 = vadd.f32 1.0, %v3181_v19  ;;  %v1201_v22 = vadd.f32 %v945_v14, %v4150_v31  ;;  %v691_v24 = vmul.f32 %v435_v7, %v4167_v60 }
  0x7d   : > { %v946_v23 = vmul.f32 0.044715, %v690_v15  ;;  %v1965_v25 = vadd.f32 1.0, %v3183_v16  ;;  %v692_v26 = vmul.f32 %v436_v20, %v4174_v62  ;;  %v693_v28 = vmul.f32 %v437_v13, %v4177_v4 }
  0x7e   : > { %2731 = vst [vmem:[%s3942_s17 + $0xf8] sm:$0xff] %v2475_v12  ;;  %v438_v17 = vmul.f32 %v4185_v18, %v4185_v18  ;;  %v2220_v54 = vmul.f32 0.5, %v1964_v21  ;;  %v1457_v29 = vmul.f32 0.7978846, %v1201_v22  ;;  %v947_v36 = vmul.f32 0.044715, %v691_v24 }
  0x7f   : > { %v3185_v27 = vpop.eup %3184  ;;  %v1202_v30 = vadd.f32 %v946_v23, %v4161_v51  ;;  %v2221_v43 = vmul.f32 0.5, %v1965_v25  ;;  %v948_v37 = vmul.f32 0.044715, %v692_v26  ;;  %v949_v38 = vmul.f32 0.044715, %v693_v28 }
  0x80   : > { %v3187_v32 = vpop.eup %3186  ;;  %v1966_v33 = vadd.f32 1.0, %v3185_v27  ;;  %v2476_v39 = vmul.f32 %v2220_v54, %v4109_v49  ;;  %3190 = vtanh.f32 %v1457_v29  ;;  %v1203_v46 = vadd.f32 %v947_v36, %v4167_v60 }
  0x81   : > { %v1967_v47 = vadd.f32 1.0, %v3187_v32  ;;  %v1458_v34 = vmul.f32 0.7978846, %v1202_v30  ;;  %v3189_v35 = vpop.eup %3188  ;;  %v2477_v44 = vmul.f32 %v2221_v43, %v4112_v55  ;;  %v1204_v40 = vadd.f32 %v948_v37, %v4174_v62  ;;  %v4253_v37 = vld [vmem:[%s3832_s24 + $0x180] sm:$0xff] }
  0x82   : > { %v2222_v45 = vmul.f32 0.5, %v1966_v33  ;;  %2732 = vst [vmem:[%s3942_s17 + $0x100] sm:$0xff] %v2476_v39  ;;  %v1968_v49 = vadd.f32 1.0, %v3189_v35  ;;  %v1205_v50 = vadd.f32 %v949_v38, %v4177_v4  ;;  %v1459_v52 = vmul.f32 0.7978846, %v1203_v46  ;;  %v4258_v46 = vld [vmem:[%s3832_s24 + $0x188] sm:$0xff] }
  0x83   : > { %v2223_v0 = vmul.f32 0.5, %v1967_v47  ;;  %3192 = vtanh.f32 %v1458_v34  ;;  %2733 = vst [vmem:[%s3942_s17 + $0x108] sm:$0xff] %v2477_v44  ;;  %v1460_v2 = vmul.f32 0.7978846, %v1204_v40  ;;  %v694_v57 = vmul.f32 %v438_v17, %v4185_v18 }
  0x84   : > { %v2478_v55 = vmul.f32 %v2222_v45, %v4118_v61  ;;  %v2224_v59 = vmul.f32 0.5, %v1968_v49  ;;  %v1461_v1 = vmul.f32 0.7978846, %v1205_v50  ;;  %v439_v63 = vmul.f32 %v4207_v48, %v4207_v48 }
  0x85   : > { %v2479_v58 = vmul.f32 %v2223_v0, %v4127_v6  ;;  %3194 = vtanh.f32 %v1459_v52  ;;  %v950_v53 = vmul.f32 0.044715, %v694_v57  ;;  %v440_v61 = vmul.f32 %v4212_v41, %v4212_v41  ;;  %v4272_v57 = vld [vmem:[%s3832_s24 + $0x1a0] sm:$0xff] }
  0x86   : > { %2734 = vst [vmem:[%s3942_s17 + $0x110] sm:$0xff] %v2478_v55  ;;  %v441_v3 = vmul.f32 %v4215_v56, %v4215_v56  ;;  %v3191_v9 = vpop.eup %3190  ;;  %v2480_v6 = vmul.f32 %v2224_v59, %v4140_v11  ;;  %3196 = vtanh.f32 %v1460_v2  ;;  %v695_v10 = vmul.f32 %v439_v63, %v4207_v48  ;;  %v4269_v2 = vld [vmem:[%s3832_s24 + $0x198] sm:$0xff] }
  0x87   : > { %2735 = vst [vmem:[%s3942_s17 + $0x118] sm:$0xff] %v2479_v58  ;;  %v442_v8 = vmul.f32 %v4221_v42, %v4221_v42  ;;  %v1969_v14 = vadd.f32 1.0, %v3191_v9  ;;  %3198 = vtanh.f32 %v1461_v1  ;;  %v1206_v15 = vadd.f32 %v950_v53, %v4185_v18 }
  0x88   : > { %v696_v7 = vmul.f32 %v440_v61, %v4212_v41  ;;  %2736 = vst [vmem:[%s3942_s17 + $0x120] sm:$0xff] %v2480_v6  ;;  %v951_v12 = vmul.f32 0.044715, %v695_v10  ;;  %v697_v20 = vmul.f32 %v441_v3, %v4215_v56  ;;  %v443_v11 = vmul.f32 %v4232_v5, %v4232_v5 }
  0x89   : > { %v3193_v19 = vpop.eup %3192  ;;  %v698_v13 = vmul.f32 %v442_v8, %v4221_v42  ;;  %v2225_v16 = vmul.f32 0.5, %v1969_v14  ;;  %v1462_v22 = vmul.f32 0.7978846, %v1206_v15  ;;  %v444_v52 = vmul.f32 %v4253_v37, %v4253_v37 }
  0x8a   : > { %v1970_v21 = vadd.f32 1.0, %v3193_v19  ;;  %v952_v23 = vmul.f32 0.044715, %v696_v7  ;;  %v1207_v24 = vadd.f32 %v951_v12, %v4207_v48  ;;  %v953_v25 = vmul.f32 0.044715, %v697_v20 }
  0x8b   : > { %v954_v26 = vmul.f32 0.044715, %v698_v13  ;;  %v699_v28 = vmul.f32 %v443_v11, %v4232_v5  ;;  %v3195_v17 = vpop.eup %3194  ;;  %v2481_v27 = vmul.f32 %v2225_v16, %v4150_v31  ;;  %3200 = vtanh.f32 %v1462_v22 }
  0x8c   : > { %v2226_v54 = vmul.f32 0.5, %v1970_v21  ;;  %v1208_v29 = vadd.f32 %v952_v23, %v4212_v41  ;;  %v3197_v30 = vpop.eup %3196  ;;  %v1971_v36 = vadd.f32 1.0, %v3195_v17  ;;  %v1463_v32 = vmul.f32 0.7978846, %v1207_v24 }
  0x8d   : > { %v1209_v43 = vadd.f32 %v953_v25, %v4215_v56  ;;  %v1210_v33 = vadd.f32 %v954_v26, %v4221_v42  ;;  %v3199_v38 = vpop.eup %3198  ;;  %2737 = vst [vmem:[%s3942_s17 + $0x128] sm:$0xff] %v2481_v27  ;;  %v1972_v39 = vadd.f32 1.0, %v3197_v30  ;;  %v955_v34 = vmul.f32 0.044715, %v699_v28 }
  0x8e   : > { %v2482_v31 = vmul.f32 %v2226_v54, %v4161_v51  ;;  %v1464_v47 = vmul.f32 0.7978846, %v1208_v29  ;;  %v2227_v35 = vmul.f32 0.5, %v1971_v36  ;;  %v1973_v44 = vadd.f32 1.0, %v3199_v38  ;;  %v4263_v51 = vld [vmem:[%s3832_s24 + $0x190] sm:$0xff] }
  0x8f   : > { %3202 = vtanh.f32 %v1463_v32  ;;  %v1465_v45 = vmul.f32 0.7978846, %v1209_v43  ;;  %v2228_v40 = vmul.f32 0.5, %v1972_v39  ;;  %v1466_v0 = vmul.f32 0.7978846, %v1210_v33 }
  0x90   : > { %2738 = vst [vmem:[%s3942_s17 + $0x130] sm:$0xff] %v2482_v31  ;;  %3204 = vtanh.f32 %v1464_v47  ;;  %v1211_v49 = vadd.f32 %v955_v34, %v4232_v5  ;;  %v2483_v50 = vmul.f32 %v2227_v35, %v4167_v60  ;;  %v2229_v55 = vmul.f32 0.5, %v1973_v44  ;;  %v4278_v60 = vld [vmem:[%s3832_s24 + $0x1a8] sm:$0xff]  ;;  %v4306_v34 = vld [vmem:[%s3832_s24 + $0x1b0] sm:$0xff]  ;;  %v4309_v35 = vld [vmem:[%s3832_s24 + $0x1b8] sm:$0xff] }
  0x91   : > { %3206 = vtanh.f32 %v1465_v45  ;;  %v3201_v58 = vpop.eup %3200  ;;  %v2484_v59 = vmul.f32 %v2228_v40, %v4174_v62  ;;  %v445_v63 = vmul.f32 %v4258_v46, %v4258_v46  ;;  %v700_v3 = vmul.f32 %v444_v52, %v4253_v37  ;;  %v4312_v44 = vld [vmem:[%s3832_s24 + $0x1c0] sm:$0xff] }
  0x92   : > { %3208 = vtanh.f32 %v1466_v0  ;;  %v1467_v1 = vmul.f32 0.7978846, %v1211_v49  ;;  %2739 = vst [vmem:[%s3942_s17 + $0x138] sm:$0xff] %v2483_v50  ;;  %v2485_v53 = vmul.f32 %v2229_v55, %v4177_v4  ;;  %v1974_v61 = vadd.f32 1.0, %v3201_v58  ;;  %v4320_v55 = vld [vmem:[%s3832_s24 + $0x1c8] sm:$0xff] }
  0x93   : > { %v446_v9 = vmul.f32 %v4263_v51, %v4263_v51  ;;  %2740 = vst [vmem:[%s3942_s17 + $0x140] sm:$0xff] %v2484_v59  ;;  %v701_v62 = vmul.f32 %v445_v63, %v4258_v46  ;;  %v447_v6 = vmul.f32 %v4269_v2, %v4269_v2  ;;  %v448_v10 = vmul.f32 %v4272_v57, %v4272_v57  ;;  %v4330_v59 = vld [vmem:[%s3832_s24 + $0x1d0] sm:$0xff] }
  0x94   : > { %3210 = vtanh.f32 %v1467_v1  ;;  %2741 = vst [vmem:[%s3942_s17 + $0x148] sm:$0xff] %v2485_v53  ;;  %v2230_v14 = vmul.f32 0.5, %v1974_v61  ;;  %v956_v4 = vmul.f32 0.044715, %v700_v3  ;;  %v449_v7 = vmul.f32 %v4278_v60, %v4278_v60 }
  0x95   : > { %v3203_v8 = vpop.eup %3202  ;;  %v702_v15 = vmul.f32 %v446_v9, %v4263_v51  ;;  %v957_v20 = vmul.f32 0.044715, %v701_v62  ;;  %v703_v13 = vmul.f32 %v447_v6, %v4269_v2  ;;  %v704_v11 = vmul.f32 %v448_v10, %v4272_v57 }
  0x96   : > { %v3205_v19 = vpop.eup %3204  ;;  %v1975_v12 = vadd.f32 1.0, %v3203_v8  ;;  %v2486_v21 = vmul.f32 %v2230_v14, %v4185_v18  ;;  %v1212_v23 = vadd.f32 %v956_v4, %v4253_v37  ;;  %v705_v50 = vmul.f32 %v449_v7, %v4278_v60 }
  0x97   : > { %v3207_v16 = vpop.eup %3206  ;;  %v1976_v22 = vadd.f32 1.0, %v3205_v19  ;;  %v958_v24 = vmul.f32 0.044715, %v702_v15  ;;  %v1213_v17 = vadd.f32 %v957_v20, %v4258_v46  ;;  %v959_v27 = vmul.f32 0.044715, %v703_v13 }
  0x98   : > { %v3209_v25 = vpop.eup %3208  ;;  %v2231_v26 = vmul.f32 0.5, %v1975_v12  ;;  %v1977_v28 = vadd.f32 1.0, %v3207_v16  ;;  %2742 = vst [vmem:[%s3942_s17 + $0x150] sm:$0xff] %v2486_v21  ;;  %v1468_v30 = vmul.f32 0.7978846, %v1212_v23  ;;  %v451_v52 = vmul.f32 %v4309_v35, %v4309_v35 }
  0x99   : > { %v2232_v54 = vmul.f32 0.5, %v1976_v22  ;;  %v1978_v29 = vadd.f32 1.0, %v3209_v25  ;;  %v1214_v18 = vadd.f32 %v958_v24, %v4263_v51  ;;  %v1469_v33 = vmul.f32 0.7978846, %v1213_v17 }
  0x9a   : > { %v3211_v36 = vpop.eup %3210  ;;  %v2487_v32 = vmul.f32 %v2231_v26, %v4207_v48  ;;  %v2233_v43 = vmul.f32 0.5, %v1977_v28  ;;  %v1215_v38 = vadd.f32 %v959_v27, %v4269_v2  ;;  %3212 = vtanh.f32 %v1468_v30 }
  0x9b   : > { %v2488_v31 = vmul.f32 %v2232_v54, %v4212_v41  ;;  %v2234_v39 = vmul.f32 0.5, %v1978_v29  ;;  %v1979_v47 = vadd.f32 1.0, %v3211_v36  ;;  %3214 = vtanh.f32 %v1469_v33 }
  0x9c   : > { %2743 = vst [vmem:[%s3942_s17 + $0x158] sm:$0xff] %v2487_v32  ;;  %v2489_v48 = vmul.f32 %v2233_v43, %v4215_v56  ;;  %v1470_v45 = vmul.f32 0.7978846, %v1214_v18  ;;  %v1471_v41 = vmul.f32 0.7978846, %v1215_v38  ;;  %v450_v56 = vmul.f32 %v4306_v34, %v4306_v34  ;;  %v4355_v18 = vld [vmem:[%s3832_s24 + $0x1e0] sm:$0xff] }
  0x9d   : > { %2744 = vst [vmem:[%s3942_s17 + $0x160] sm:$0xff] %v2488_v31  ;;  %v2490_v40 = vmul.f32 %v2234_v39, %v4221_v42  ;;  %v2235_v0 = vmul.f32 0.5, %v1979_v47  ;;  %v960_v49 = vmul.f32 0.044715, %v704_v11  ;;  %v452_v58 = vmul.f32 %v4312_v44, %v4312_v44  ;;  %v4333_v42 = vld [vmem:[%s3832_s24 + $0x1d8] sm:$0xff]  ;;  %v4363_v39 = vld [vmem:[%s3832_s24 + $0x1e8] sm:$0xff] }
  0x9e   : > { %2745 = vst [vmem:[%s3942_s17 + $0x168] sm:$0xff] %v2489_v48  ;;  %3216 = vtanh.f32 %v1470_v45  ;;  %v961_v53 = vmul.f32 0.044715, %v705_v50  ;;  %v706_v61 = vmul.f32 %v450_v56, %v4306_v34  ;;  %v707_v3 = vmul.f32 %v451_v52, %v4309_v35  ;;  %v4374_v50 = vld [vmem:[%s3832_s24 + $0x1f8] sm:$0xff] }
  0x9f   : > { %2746 = vst [vmem:[%s3942_s17 + $0x170] sm:$0xff] %v2490_v40  ;;  %v2491_v1 = vmul.f32 %v2235_v0, %v4232_v5  ;;  %3218 = vtanh.f32 %v1471_v41  ;;  %v1216_v63 = vadd.f32 %v960_v49, %v4272_v57  ;;  %v708_v9 = vmul.f32 %v452_v58, %v4312_v44  ;;  %v4370_v41 = vld [vmem:[%s3832_s24 + $0x1f0] sm:$0xff] }
  0xa0   : > { %v453_v62 = vmul.f32 %v4320_v55, %v4320_v55  ;;  %v3213_v6 = vpop.eup %3212  ;;  %v1217_v8 = vadd.f32 %v961_v53, %v4278_v60  ;;  %v454_v5 = vmul.f32 %v4330_v59, %v4330_v59  ;;  %v455_v14 = vmul.f32 %v4333_v42, %v4333_v42 }
  0xa1   : > { %2747 = vst [vmem:[%s3942_s17 + $0x178] sm:$0xff] %v2491_v1  ;;  %v1472_v10 = vmul.f32 0.7978846, %v1216_v63  ;;  %v3215_v4 = vpop.eup %3214  ;;  %v1980_v15 = vadd.f32 1.0, %v3213_v6  ;;  %v962_v7 = vmul.f32 0.044715, %v706_v61  ;;  %v456_v45 = vmul.f32 %v4355_v18, %v4355_v18 }
  0xa2   : > { %v963_v19 = vmul.f32 0.044715, %v707_v3  ;;  %v709_v12 = vmul.f32 %v453_v62, %v4320_v55  ;;  %v1981_v20 = vadd.f32 1.0, %v3215_v4  ;;  %v1473_v13 = vmul.f32 0.7978846, %v1217_v8 }
  0xa3   : > { %3220 = vtanh.f32 %v1472_v10  ;;  %v964_v11 = vmul.f32 0.044715, %v708_v9  ;;  %v2236_v21 = vmul.f32 0.5, %v1980_v15  ;;  %v1218_v22 = vadd.f32 %v962_v7, %v4306_v34 }
  0xa4   : > { %v3217_v16 = vpop.eup %3216  ;;  %v1219_v23 = vadd.f32 %v963_v19, %v4309_v35  ;;  %v965_v24 = vmul.f32 0.044715, %v709_v12  ;;  %v2237_v26 = vmul.f32 0.5, %v1981_v20  ;;  %3222 = vtanh.f32 %v1473_v13 }
  0xa5   : > { %v3219_v25 = vpop.eup %3218  ;;  %v1982_v28 = vadd.f32 1.0, %v3217_v16  ;;  %v1220_v17 = vadd.f32 %v964_v11, %v4312_v44  ;;  %v2492_v27 = vmul.f32 %v2236_v21, %v4253_v37  ;;  %v1474_v29 = vmul.f32 0.7978846, %v1218_v22 }
  0xa6   : > { %v1983_v54 = vadd.f32 1.0, %v3219_v25  ;;  %v1475_v30 = vmul.f32 0.7978846, %v1219_v23  ;;  %v2493_v36 = vmul.f32 %v2237_v26, %v4258_v46  ;;  %v1221_v33 = vadd.f32 %v965_v24, %v4320_v55 }
  0xa7   : > { %v2238_v32 = vmul.f32 0.5, %v1982_v28  ;;  %v1476_v43 = vmul.f32 0.7978846, %v1220_v17  ;;  %2748 = vst [vmem:[%s3942_s17 + $0x180] sm:$0xff] %v2492_v27  ;;  %3224 = vtanh.f32 %v1474_v29  ;;  %v710_v31 = vmul.f32 %v454_v5, %v4330_v59  ;;  %v4397_v17 = vld [vmem:[%s3832_s24 + $0x200] sm:$0xff] }
  0xa8   : > { %v2239_v38 = vmul.f32 0.5, %v1983_v54  ;;  %v711_v37 = vmul.f32 %v455_v14, %v4333_v42  ;;  %2749 = vst [vmem:[%s3942_s17 + $0x188] sm:$0xff] %v2493_v36  ;;  %3226 = vtanh.f32 %v1475_v30  ;;  %v1477_v48 = vmul.f32 0.7978846, %v1221_v33  ;;  %v4405_v30 = vld [vmem:[%s3832_s24 + $0x210] sm:$0xff]  ;;  %v4408_v36 = vld [vmem:[%s3832_s24 + $0x218] sm:$0xff] }
  0xa9   : > { %v3221_v47 = vpop.eup %3220  ;;  %v2494_v46 = vmul.f32 %v2238_v32, %v4263_v51  ;;  %3228 = vtanh.f32 %v1476_v43  ;;  %v966_v49 = vmul.f32 0.044715, %v710_v31  ;;  %v712_v51 = vmul.f32 %v456_v45, %v4355_v18 }
  0xaa   : > { %v2495_v40 = vmul.f32 %v2239_v38, %v4269_v2  ;;  %v1984_v0 = vadd.f32 1.0, %v3221_v47  ;;  %v3223_v56 = vpop.eup %3222  ;;  %3230 = vtanh.f32 %v1477_v48  ;;  %v967_v52 = vmul.f32 0.044715, %v711_v37 }
  0xab   : > { %2750 = vst [vmem:[%s3942_s17 + $0x190] sm:$0xff] %v2494_v46  ;;  %v457_v58 = vmul.f32 %v4363_v39, %v4363_v39  ;;  %v1985_v63 = vadd.f32 1.0, %v3223_v56  ;;  %v1222_v53 = vadd.f32 %v966_v49, %v4330_v59  ;;  %v458_v2 = vmul.f32 %v4370_v41, %v4370_v41 }
  0xac   : > { %2751 = vst [vmem:[%s3942_s17 + $0x198] sm:$0xff] %v2495_v40  ;;  %v2240_v1 = vmul.f32 0.5, %v1984_v0  ;;  %v1223_v61 = vadd.f32 %v967_v52, %v4333_v42  ;;  %v968_v3 = vmul.f32 0.044715, %v712_v51  ;;  %v459_v62 = vmul.f32 %v4374_v50, %v4374_v50 }
  0xad   : > { %v713_v9 = vmul.f32 %v457_v58, %v4363_v39  ;;  %v3225_v6 = vpop.eup %3224  ;;  %v2241_v8 = vmul.f32 0.5, %v1985_v63  ;;  %v1478_v5 = vmul.f32 0.7978846, %v1222_v53  ;;  %v714_v14 = vmul.f32 %v458_v2, %v4370_v41 }
  0xae   : > { %v2496_v10 = vmul.f32 %v2240_v1, %v4272_v57  ;;  %v3227_v4 = vpop.eup %3226  ;;  %v1986_v15 = vadd.f32 1.0, %v3225_v6  ;;  %v1479_v7 = vmul.f32 0.7978846, %v1223_v61  ;;  %v1224_v19 = vadd.f32 %v968_v3, %v4355_v18 }
  0xaf   : > { %v969_v12 = vmul.f32 0.044715, %v713_v9  ;;  %v3229_v20 = vpop.eup %3228  ;;  %v2497_v13 = vmul.f32 %v2241_v8, %v4278_v60  ;;  %v1987_v11 = vadd.f32 1.0, %v3227_v4  ;;  %3232 = vtanh.f32 %v1478_v5  ;;  %v4400_v60 = vld [vmem:[%s3832_s24 + $0x208] sm:$0xff] }
  0xb0   : > { %2752 = vst [vmem:[%s3942_s17 + $0x1a0] sm:$0xff] %v2496_v10  ;;  %v970_v57 = vmul.f32 0.044715, %v714_v14  ;;  %v3231_v16 = vpop.eup %3230  ;;  %v2242_v21 = vmul.f32 0.5, %v1986_v15  ;;  %v1988_v22 = vadd.f32 1.0, %v3229_v20  ;;  %3234 = vtanh.f32 %v1479_v7 }
  0xb1   : > { %v1480_v23 = vmul.f32 0.7978846, %v1224_v19  ;;  %2753 = vst [vmem:[%s3942_s17 + $0x1a8] sm:$0xff] %v2497_v13  ;;  %v2243_v24 = vmul.f32 0.5, %v1987_v11  ;;  %v1989_v25 = vadd.f32 1.0, %v3231_v16  ;;  %v1225_v26 = vadd.f32 %v969_v12, %v4363_v39  ;;  %v4441_v12 = vld [vmem:[%s3832_s24 + $0x228] sm:$0xff] }
  0xb2   : > { %v1226_v28 = vadd.f32 %v970_v57, %v4370_v41  ;;  %v2498_v27 = vmul.f32 %v2242_v21, %v4306_v34  ;;  %v2244_v54 = vmul.f32 0.5, %v1988_v22  ;;  %v715_v29 = vmul.f32 %v459_v62, %v4374_v50  ;;  %v4447_v16 = vld [vmem:[%s3832_s24 + $0x230] sm:$0xff] }
  0xb3   : > { %3236 = vtanh.f32 %v1480_v23  ;;  %v2499_v32 = vmul.f32 %v2243_v24, %v4309_v35  ;;  %v2245_v43 = vmul.f32 0.5, %v1989_v25  ;;  %v1481_v33 = vmul.f32 0.7978846, %v1225_v26 }
  0xb4   : > { %v1482_v38 = vmul.f32 0.7978846, %v1226_v28  ;;  %2754 = vst [vmem:[%s3942_s17 + $0x1b0] sm:$0xff] %v2498_v27  ;;  %v2500_v31 = vmul.f32 %v2244_v54, %v4312_v44  ;;  %v971_v34 = vmul.f32 0.044715, %v715_v29  ;;  %v460_v37 = vmul.f32 %v4397_v17, %v4397_v17  ;;  %v4424_v44 = vld [vmem:[%s3832_s24 + $0x220] sm:$0xff] }
  0xb5   : > { %v461_v47 = vmul.f32 %v4400_v60, %v4400_v60  ;;  %v3233_v46 = vpop.eup %3232  ;;  %2755 = vst [vmem:[%s3942_s17 + $0x1b8] sm:$0xff] %v2499_v32  ;;  %v2501_v48 = vmul.f32 %v2245_v43, %v4320_v55  ;;  %3238 = vtanh.f32 %v1481_v33  ;;  %v462_v35 = vmul.f32 %v4405_v30, %v4405_v30 }
  0xb6   : > { %v463_v45 = vmul.f32 %v4408_v36, %v4408_v36  ;;  %v3235_v40 = vpop.eup %3234  ;;  %2756 = vst [vmem:[%s3942_s17 + $0x1c0] sm:$0xff] %v2500_v31  ;;  %v1990_v0 = vadd.f32 1.0, %v3233_v46  ;;  %3240 = vtanh.f32 %v1482_v38  ;;  %v1227_v49 = vadd.f32 %v971_v34, %v4374_v50  ;;  %v4467_v31 = vld [vmem:[%s3832_s24 + $0x248] sm:$0xff]  ;;  %v4470_v34 = vld [vmem:[%s3832_s24 + $0x250] sm:$0xff] }
  0xb7   : > { %v716_v56 = vmul.f32 %v460_v37, %v4397_v17  ;;  %2757 = vst [vmem:[%s3942_s17 + $0x1c8] sm:$0xff] %v2501_v48  ;;  %v1991_v52 = vadd.f32 1.0, %v3235_v40  ;;  %v717_v55 = vmul.f32 %v461_v47, %v4400_v60  ;;  %v718_v51 = vmul.f32 %v462_v35, %v4405_v30 }
  0xb8   : > { %v719_v58 = vmul.f32 %v463_v45, %v4408_v36  ;;  %v2246_v63 = vmul.f32 0.5, %v1990_v0  ;;  %v1483_v53 = vmul.f32 0.7978846, %v1227_v49  ;;  %v464_v61 = vmul.f32 %v4424_v44, %v4424_v44 }
  0xb9   : > { %v3237_v1 = vpop.eup %3236  ;;  %v972_v2 = vmul.f32 0.044715, %v716_v56  ;;  %v2247_v3 = vmul.f32 0.5, %v1991_v52  ;;  %v973_v62 = vmul.f32 0.044715, %v717_v55  ;;  %v465_v54 = vmul.f32 %v4441_v12, %v4441_v12 }
  0xba   : > { %v1992_v9 = vadd.f32 1.0, %v3237_v1  ;;  %v974_v6 = vmul.f32 0.044715, %v718_v51  ;;  %v2502_v10 = vmul.f32 %v2246_v63, %v4330_v59  ;;  %3242 = vtanh.f32 %v1483_v53 }
  0xbb   : > { %v1228_v8 = vadd.f32 %v972_v2, %v4397_v17  ;;  %v975_v5 = vmul.f32 0.044715, %v719_v58  ;;  %v3239_v14 = vpop.eup %3238  ;;  %v2503_v4 = vmul.f32 %v2247_v3, %v4333_v42  ;;  %v1229_v7 = vadd.f32 %v973_v62, %v4400_v60  ;;  %v4450_v42 = vld [vmem:[%s3832_s24 + $0x238] sm:$0xff] }
  0xbc   : > { %v2248_v15 = vmul.f32 0.5, %v1992_v9  ;;  %v1230_v19 = vadd.f32 %v974_v6, %v4405_v30  ;;  %v3241_v20 = vpop.eup %3240  ;;  %2758 = vst [vmem:[%s3942_s17 + $0x1d0] sm:$0xff] %v2502_v10  ;;  %v1993_v59 = vadd.f32 1.0, %v3239_v14  ;;  %v720_v57 = vmul.f32 %v464_v61, %v4424_v44 }
  0xbd   : > { %v1484_v13 = vmul.f32 0.7978846, %v1228_v8  ;;  %v1231_v11 = vadd.f32 %v975_v5, %v4408_v36  ;;  %2759 = vst [vmem:[%s3942_s17 + $0x1d8] sm:$0xff] %v2503_v4  ;;  %v1994_v22 = vadd.f32 1.0, %v3241_v20  ;;  %v1485_v23 = vmul.f32 0.7978846, %v1229_v7 }
  0xbe   : > { %v2504_v21 = vmul.f32 %v2248_v15, %v4355_v18  ;;  %v1486_v24 = vmul.f32 0.7978846, %v1230_v19  ;;  %v2249_v25 = vmul.f32 0.5, %v1993_v59  ;;  %v976_v28 = vmul.f32 0.044715, %v720_v57  ;;  %v4460_v18 = vld [vmem:[%s3832_s24 + $0x240] sm:$0xff] }
  0xbf   : > { %3244 = vtanh.f32 %v1484_v13  ;;  %v1487_v26 = vmul.f32 0.7978846, %v1231_v11  ;;  %v2250_v27 = vmul.f32 0.5, %v1994_v22  ;;  %v466_v29 = vmul.f32 %v4447_v16, %v4447_v16  ;;  %v4495_v11 = vld [vmem:[%s3832_s24 + $0x258] sm:$0xff] }
  0xc0   : > { %2760 = vst [vmem:[%s3942_s17 + $0x1e0] sm:$0xff] %v2504_v21  ;;  %3246 = vtanh.f32 %v1485_v23  ;;  %v3243_v32 = vpop.eup %3242  ;;  %v2505_v43 = vmul.f32 %v2249_v25, %v4363_v39  ;;  %v1232_v33 = vadd.f32 %v976_v28, %v4424_v44  ;;  %v467_v38 = vmul.f32 %v4450_v42, %v4450_v42  ;;  %v4502_v25 = vld [vmem:[%s3832_s24 + $0x268] sm:$0xff] }
  0xc1   : > { %3248 = vtanh.f32 %v1486_v24  ;;  %v2506_v37 = vmul.f32 %v2250_v27, %v4370_v41  ;;  %v1995_v47 = vadd.f32 1.0, %v3243_v32  ;;  %v721_v46 = vmul.f32 %v465_v54, %v4441_v12  ;;  %v4499_v24 = vld [vmem:[%s3832_s24 + $0x260] sm:$0xff]  ;;  %v4507_v27 = vld [vmem:[%s3832_s24 + $0x270] sm:$0xff] }
  0xc2   : > { %3250 = vtanh.f32 %v1487_v26  ;;  %2761 = vst [vmem:[%s3942_s17 + $0x1e8] sm:$0xff] %v2505_v43  ;;  %v1488_v48 = vmul.f32 0.7978846, %v1232_v33  ;;  %v722_v39 = vmul.f32 %v466_v29, %v4447_v16  ;;  %v723_v35 = vmul.f32 %v467_v38, %v4450_v42  ;;  %v4515_v43 = vld [vmem:[%s3832_s24 + $0x278] sm:$0xff] }
  0xc3   : > { %v468_v45 = vmul.f32 %v4460_v18, %v4460_v18  ;;  %2762 = vst [vmem:[%s3942_s17 + $0x1f0] sm:$0xff] %v2506_v37  ;;  %v2251_v40 = vmul.f32 0.5, %v1995_v47  ;;  %v977_v0 = vmul.f32 0.044715, %v721_v46  ;;  %v469_v49 = vmul.f32 %v4467_v31, %v4467_v31 }
  0xc4   : > { %v470_v41 = vmul.f32 %v4470_v34, %v4470_v34  ;;  %3252 = vtanh.f32 %v1488_v48  ;;  %v978_v52 = vmul.f32 0.044715, %v722_v39  ;;  %v979_v55 = vmul.f32 0.044715, %v723_v35 }
  0xc5   : > { %v3245_v56 = vpop.eup %3244  ;;  %v724_v51 = vmul.f32 %v468_v45, %v4460_v18  ;;  %v2507_v1 = vmul.f32 %v2251_v40, %v4374_v50  ;;  %v1233_v53 = vadd.f32 %v977_v0, %v4441_v12  ;;  %v725_v2 = vmul.f32 %v469_v49, %v4467_v31 }
  0xc6   : > { %v3247_v58 = vpop.eup %3246  ;;  %v1996_v63 = vadd.f32 1.0, %v3245_v56  ;;  %v1234_v9 = vadd.f32 %v978_v52, %v4447_v16  ;;  %v1235_v62 = vadd.f32 %v979_v55, %v4450_v42  ;;  %v726_v50 = vmul.f32 %v470_v41, %v4470_v34 }
  0xc7   : > { %v3249_v61 = vpop.eup %3248  ;;  %v1997_v3 = vadd.f32 1.0, %v3247_v58  ;;  %v980_v6 = vmul.f32 0.044715, %v724_v51  ;;  %2763 = vst [vmem:[%s3942_s17 + $0x1f8] sm:$0xff] %v2507_v1  ;;  %v1489_v14 = vmul.f32 0.7978846, %v1233_v53  ;;  %v471_v32 = vmul.f32 %v4495_v11, %v4495_v11 }
  0xc8   : > { %v3251_v10 = vpop.eup %3250  ;;  %v2252_v8 = vmul.f32 0.5, %v1996_v63  ;;  %v1998_v5 = vadd.f32 1.0, %v3249_v61  ;;  %v1490_v7 = vmul.f32 0.7978846, %v1234_v9  ;;  %v1491_v19 = vmul.f32 0.7978846, %v1235_v62 }
  0xc9   : > { %v2253_v4 = vmul.f32 0.5, %v1997_v3  ;;  %v1999_v15 = vadd.f32 1.0, %v3251_v10  ;;  %3254 = vtanh.f32 %v1489_v14  ;;  %v1236_v13 = vadd.f32 %v980_v6, %v4460_v18  ;;  %v4539_v14 = vld [vmem:[%s3832_s24 + $0x280] sm:$0xff] }
  0xca   : > { %v2508_v20 = vmul.f32 %v2252_v8, %v4397_v17  ;;  %v2254_v59 = vmul.f32 0.5, %v1998_v5  ;;  %v3253_v57 = vpop.eup %3252  ;;  %3256 = vtanh.f32 %v1490_v7  ;;  %v981_v23 = vmul.f32 0.044715, %v725_v2 }
  0xcb   : > { %v2509_v21 = vmul.f32 %v2253_v4, %v4400_v60  ;;  %v2255_v22 = vmul.f32 0.5, %v1999_v15  ;;  %v2000_v26 = vadd.f32 1.0, %v3253_v57  ;;  %3258 = vtanh.f32 %v1491_v19  ;;  %v4544_v19 = vld [vmem:[%s3832_s24 + $0x288] sm:$0xff] }
  0xcc   : > { %2764 = vst [vmem:[%s3942_s17 + $0x200] sm:$0xff] %v2508_v20  ;;  %v2510_v17 = vmul.f32 %v2254_v59, %v4405_v30  ;;  %v1492_v28 = vmul.f32 0.7978846, %v1236_v13  ;;  %v1237_v54 = vadd.f32 %v981_v23, %v4467_v31  ;;  %v982_v29 = vmul.f32 0.044715, %v726_v50  ;;  %v4556_v23 = vld [vmem:[%s3832_s24 + $0x298] sm:$0xff] }
  0xcd   : > { %2765 = vst [vmem:[%s3942_s17 + $0x208] sm:$0xff] %v2509_v21  ;;  %v2511_v60 = vmul.f32 %v2255_v22, %v4408_v36  ;;  %v2256_v33 = vmul.f32 0.5, %v2000_v26  ;;  %v472_v30 = vmul.f32 %v4499_v24, %v4499_v24  ;;  %v473_v38 = vmul.f32 %v4502_v25, %v4502_v25  ;;  %v4553_v22 = vld [vmem:[%s3832_s24 + $0x290] sm:$0xff] }
  0xce   : > { %2766 = vst [vmem:[%s3942_s17 + $0x210] sm:$0xff] %v2510_v17  ;;  %3260 = vtanh.f32 %v1492_v28  ;;  %v1493_v36 = vmul.f32 0.7978846, %v1237_v54  ;;  %v1238_v37 = vadd.f32 %v982_v29, %v4470_v34  ;;  %v727_v47 = vmul.f32 %v471_v32, %v4495_v11 }
  0xcf   : > { %2767 = vst [vmem:[%s3942_s17 + $0x218] sm:$0xff] %v2511_v60  ;;  %v474_v46 = vmul.f32 %v4507_v27, %v4507_v27  ;;  %v3255_v48 = vpop.eup %3254  ;;  %v2512_v39 = vmul.f32 %v2256_v33, %v4424_v44  ;;  %v728_v35 = vmul.f32 %v472_v30, %v4499_v24  ;;  %v729_v45 = vmul.f32 %v473_v38, %v4502_v25  ;;  %v4563_v60 = vld [vmem:[%s3832_s24 + $0x2a0] sm:$0xff] }
  0xd0   : > { %v475_v40 = vmul.f32 %v4515_v43, %v4515_v43  ;;  %v3257_v0 = vpop.eup %3256  ;;  %v2001_v49 = vadd.f32 1.0, %v3255_v48  ;;  %3262 = vtanh.f32 %v1493_v36  ;;  %v1494_v41 = vmul.f32 0.7978846, %v1238_v37 }
  0xd1   : > { %v983_v56 = vmul.f32 0.044715, %v727_v47  ;;  %v3259_v52 = vpop.eup %3258  ;;  %2768 = vst [vmem:[%s3942_s17 + $0x220] sm:$0xff] %v2512_v39  ;;  %v2002_v55 = vadd.f32 1.0, %v3257_v0  ;;  %v984_v51 = vmul.f32 0.044715, %v728_v35  ;;  %v730_v44 = vmul.f32 %v474_v46, %v4507_v27 }
  0xd2   : > { %v985_v58 = vmul.f32 0.044715, %v729_v45  ;;  %v2257_v1 = vmul.f32 0.5, %v2001_v49  ;;  %v2003_v63 = vadd.f32 1.0, %v3259_v52  ;;  %3264 = vtanh.f32 %v1494_v41  ;;  %v4579_v0 = vld [vmem:[%s3832_s24 + $0x2a8] sm:$0xff] }
  0xd3   : > { %v1239_v53 = vadd.f32 %v983_v56, %v4495_v11  ;;  %v2258_v61 = vmul.f32 0.5, %v2002_v55  ;;  %v1240_v3 = vadd.f32 %v984_v51, %v4499_v24  ;;  %v986_v62 = vmul.f32 0.044715, %v730_v44 }
  0xd4   : > { %v3261_v2 = vpop.eup %3260  ;;  %v1241_v9 = vadd.f32 %v985_v58, %v4502_v25  ;;  %v2513_v6 = vmul.f32 %v2257_v1, %v4441_v12  ;;  %v2259_v10 = vmul.f32 0.5, %v2003_v63  ;;  %v731_v13 = vmul.f32 %v475_v40, %v4515_v43 }
  0xd5   : > { %v2004_v8 = vadd.f32 1.0, %v3261_v2  ;;  %v1495_v5 = vmul.f32 0.7978846, %v1239_v53  ;;  %v2514_v50 = vmul.f32 %v2258_v61, %v4447_v16  ;;  %v1496_v4 = vmul.f32 0.7978846, %v1240_v3 }
  0xd6   : > { %v1497_v15 = vmul.f32 0.7978846, %v1241_v9  ;;  %v1242_v7 = vadd.f32 %v986_v62, %v4507_v27  ;;  %v3263_v20 = vpop.eup %3262  ;;  %2769 = vst [vmem:[%s3942_s17 + $0x228] sm:$0xff] %v2513_v6  ;;  %v2515_v12 = vmul.f32 %v2259_v10, %v4450_v42  ;;  %v476_v21 = vmul.f32 %v4539_v14, %v4539_v14 }
  0xd7   : > { %v2260_v59 = vmul.f32 0.5, %v2004_v8  ;;  %3266 = vtanh.f32 %v1495_v5  ;;  %2770 = vst [vmem:[%s3942_s17 + $0x230] sm:$0xff] %v2514_v50  ;;  %v2005_v16 = vadd.f32 1.0, %v3263_v20  ;;  %v987_v26 = vmul.f32 0.044715, %v731_v13  ;;  %v4592_v5 = vld [vmem:[%s3832_s24 + $0x2b0] sm:$0xff] }
  0xd8   : > { %3268 = vtanh.f32 %v1496_v4  ;;  %v1498_v57 = vmul.f32 0.7978846, %v1242_v7  ;;  %v3265_v17 = vpop.eup %3264  ;;  %2771 = vst [vmem:[%s3942_s17 + $0x238] sm:$0xff] %v2515_v12  ;;  %v477_v28 = vmul.f32 %v4544_v19, %v4544_v19  ;;  %v732_v32 = vmul.f32 %v476_v21, %v4539_v14  ;;  %v4595_v50 = vld [vmem:[%s3832_s24 + $0x2b8] sm:$0xff]  ;;  %v4603_v13 = vld [vmem:[%s3832_s24 + $0x2c0] sm:$0xff] }
  0xd9   : > { %v2516_v42 = vmul.f32 %v2260_v59, %v4460_v18  ;;  %3270 = vtanh.f32 %v1497_v15  ;;  %v2261_v54 = vmul.f32 0.5, %v2005_v16  ;;  %v2006_v29 = vadd.f32 1.0, %v3265_v17  ;;  %v4606_v16 = vld [vmem:[%s3832_s24 + $0x2c8] sm:$0xff] }
  0xda   : > { %3272 = vtanh.f32 %v1498_v57  ;;  %v1243_v33 = vadd.f32 %v987_v26, %v4515_v43  ;;  %v733_v30 = vmul.f32 %v477_v28, %v4544_v19  ;;  %v478_v18 = vmul.f32 %v4553_v22, %v4553_v22 }
  0xdb   : > { %2772 = vst [vmem:[%s3942_s17 + $0x240] sm:$0xff] %v2516_v42  ;;  %v479_v38 = vmul.f32 %v4556_v23, %v4556_v23  ;;  %v2517_v36 = vmul.f32 %v2261_v54, %v4467_v31  ;;  %v2262_v37 = vmul.f32 0.5, %v2006_v29  ;;  %v988_v47 = vmul.f32 0.044715, %v732_v32 }
  0xdc   : > { %v480_v46 = vmul.f32 %v4563_v60, %v4563_v60  ;;  %v1499_v39 = vmul.f32 0.7978846, %v1243_v33  ;;  %v989_v35 = vmul.f32 0.044715, %v733_v30  ;;  %v734_v45 = vmul.f32 %v478_v18, %v4553_v22 }
  0xdd   : > { %v3267_v48 = vpop.eup %3266  ;;  %v735_v40 = vmul.f32 %v479_v38, %v4556_v23  ;;  %2773 = vst [vmem:[%s3942_s17 + $0x248] sm:$0xff] %v2517_v36  ;;  %v2518_v41 = vmul.f32 %v2262_v37, %v4470_v34  ;;  %v1244_v56 = vadd.f32 %v988_v47, %v4539_v14  ;;  %v481_v34 = vmul.f32 %v4579_v0, %v4579_v0 }
  0xde   : > { %v3269_v49 = vpop.eup %3268  ;;  %v2007_v31 = vadd.f32 1.0, %v3267_v48  ;;  %v736_v52 = vmul.f32 %v480_v46, %v4563_v60  ;;  %3274 = vtanh.f32 %v1499_v39  ;;  %v1245_v58 = vadd.f32 %v989_v35, %v4544_v19 }
  0xdf   : > { %v3271_v55 = vpop.eup %3270  ;;  %v2008_v51 = vadd.f32 1.0, %v3269_v49  ;;  %v990_v44 = vmul.f32 0.044715, %v734_v45  ;;  %2774 = vst [vmem:[%s3942_s17 + $0x250] sm:$0xff] %v2518_v41  ;;  %v1500_v2 = vmul.f32 0.7978846, %v1244_v56  ;;  %v737_v59 = vmul.f32 %v481_v34, %v4579_v0 }
  0xe0   : > { %v3273_v1 = vpop.eup %3272  ;;  %v2263_v63 = vmul.f32 0.5, %v2007_v31  ;;  %v2009_v53 = vadd.f32 1.0, %v3271_v55  ;;  %v1501_v9 = vmul.f32 0.7978846, %v1245_v58  ;;  %v991_v8 = vmul.f32 0.044715, %v735_v40 }
  0xe1   : > { %v2264_v61 = vmul.f32 0.5, %v2008_v51  ;;  %v2010_v3 = vadd.f32 1.0, %v3273_v1  ;;  %v1246_v62 = vadd.f32 %v990_v44, %v4553_v22  ;;  %3276 = vtanh.f32 %v1500_v2 }
  0xe2   : > { %v2519_v6 = vmul.f32 %v2263_v63, %v4495_v11  ;;  %v2265_v10 = vmul.f32 0.5, %v2009_v53  ;;  %3278 = vtanh.f32 %v1501_v9  ;;  %v1247_v11 = vadd.f32 %v991_v8, %v4556_v23  ;;  %v4648_v8 = vld [vmem:[%s3832_s24 + $0x2e8] sm:$0xff] }
  0xe3   : > { %v2520_v4 = vmul.f32 %v2264_v61, %v4499_v24  ;;  %v2266_v15 = vmul.f32 0.5, %v2010_v3  ;;  %v1502_v7 = vmul.f32 0.7978846, %v1246_v62  ;;  %v992_v12 = vmul.f32 0.044715, %v736_v52  ;;  %v4629_v52 = vld [vmem:[%s3832_s24 + $0x2d0] sm:$0xff] }
  0xe4   : > { %2775 = vst [vmem:[%s3942_s17 + $0x258] sm:$0xff] %v2519_v6  ;;  %v2521_v20 = vmul.f32 %v2265_v10, %v4502_v25  ;;  %v3275_v57 = vpop.eup %3274  ;;  %v482_v21 = vmul.f32 %v4592_v5, %v4592_v5  ;;  %v483_v25 = vmul.f32 %v4595_v50, %v4595_v50  ;;  %v1503_v42 = vmul.f32 0.7978846, %v1247_v11  ;;  %v4645_v10 = vld [vmem:[%s3832_s24 + $0x2e0] sm:$0xff] }
  0xe5   : > { %2776 = vst [vmem:[%s3942_s17 + $0x260] sm:$0xff] %v2520_v4  ;;  %v2522_v24 = vmul.f32 %v2266_v15, %v4507_v27  ;;  %3280 = vtanh.f32 %v1502_v7  ;;  %v2011_v17 = vadd.f32 1.0, %v3275_v57  ;;  %v1248_v26 = vadd.f32 %v992_v12, %v4563_v60 }
  0xe6   : > { %2777 = vst [vmem:[%s3942_s17 + $0x268] sm:$0xff] %v2521_v20  ;;  %v993_v28 = vmul.f32 0.044715, %v737_v59  ;;  %v738_v54 = vmul.f32 %v482_v21, %v4592_v5  ;;  %v739_v29 = vmul.f32 %v483_v25, %v4595_v50  ;;  %v484_v27 = vmul.f32 %v4603_v13, %v4603_v13  ;;  %v4661_v25 = vld [vmem:[%s3832_s24 + $0x2f0] sm:$0xff] }
  0xe7   : > { %2778 = vst [vmem:[%s3942_s17 + $0x270] sm:$0xff] %v2522_v24  ;;  %v485_v32 = vmul.f32 %v4606_v16, %v4606_v16  ;;  %v3277_v33 = vpop.eup %3276  ;;  %v2267_v30 = vmul.f32 0.5, %v2011_v17  ;;  %3282 = vtanh.f32 %v1503_v42  ;;  %v1504_v18 = vmul.f32 0.7978846, %v1248_v26 }
  0xe8   : > { %v1249_v38 = vadd.f32 %v993_v28, %v4579_v0  ;;  %v3279_v36 = vpop.eup %3278  ;;  %v2012_v37 = vadd.f32 1.0, %v3277_v33  ;;  %v994_v47 = vmul.f32 0.044715, %v738_v54  ;;  %v995_v46 = vmul.f32 0.044715, %v739_v29  ;;  %v4665_v54 = vld [vmem:[%s3832_s24 + $0x2f8] sm:$0xff] }
  0xe9   : > { %v740_v48 = vmul.f32 %v484_v27, %v4603_v13  ;;  %v2523_v39 = vmul.f32 %v2267_v30, %v4515_v43  ;;  %v2013_v35 = vadd.f32 1.0, %v3279_v36  ;;  %3284 = vtanh.f32 %v1504_v18  ;;  %v4634_v43 = vld [vmem:[%s3832_s24 + $0x2d8] sm:$0xff] }
  0xea   : > { %v1505_v45 = vmul.f32 0.7978846, %v1249_v38  ;;  %v2268_v49 = vmul.f32 0.5, %v2012_v37  ;;  %v1250_v41 = vadd.f32 %v994_v47, %v4592_v5  ;;  %v1251_v31 = vadd.f32 %v995_v46, %v4595_v50 }
  0xeb   : > { %v3281_v40 = vpop.eup %3280  ;;  %v996_v56 = vmul.f32 0.044715, %v740_v48  ;;  %2779 = vst [vmem:[%s3942_s17 + $0x278] sm:$0xff] %v2523_v39  ;;  %v2269_v55 = vmul.f32 0.5, %v2013_v35  ;;  %v741_v58 = vmul.f32 %v485_v32, %v4606_v16  ;;  %v486_v9 = vmul.f32 %v4629_v52, %v4629_v52 }
  0xec   : > { %v2014_v51 = vadd.f32 1.0, %v3281_v40  ;;  %3286 = vtanh.f32 %v1505_v45  ;;  %v2524_v44 = vmul.f32 %v2268_v49, %v4539_v14  ;;  %v1506_v1 = vmul.f32 0.7978846, %v1250_v41 }
  0xed   : > { %v1507_v63 = vmul.f32 0.7978846, %v1251_v31  ;;  %v1252_v53 = vadd.f32 %v996_v56, %v4603_v13  ;;  %v3283_v2 = vpop.eup %3282  ;;  %v2525_v34 = vmul.f32 %v2269_v55, %v4544_v19  ;;  %v997_v3 = vmul.f32 0.044715, %v741_v58 }
  0xee   : > { %v2270_v61 = vmul.f32 0.5, %v2014_v51  ;;  %2780 = vst [vmem:[%s3942_s17 + $0x280] sm:$0xff] %v2524_v44  ;;  %v2015_v62 = vadd.f32 1.0, %v3283_v2  ;;  %3288 = vtanh.f32 %v1506_v1  ;;  %v487_v14 = vmul.f32 %v4634_v43, %v4634_v43  ;;  %v4689_v2 = vld [vmem:[%s3832_s24 + $0x308] sm:$0xff] }
  0xef   : > { %v1508_v6 = vmul.f32 0.7978846, %v1252_v53  ;;  %v3285_v4 = vpop.eup %3284  ;;  %2781 = vst [vmem:[%s3942_s17 + $0x288] sm:$0xff] %v2525_v34  ;;  %3290 = vtanh.f32 %v1507_v63  ;;  %v1253_v15 = vadd.f32 %v997_v3, %v4606_v16  ;;  %v742_v7 = vmul.f32 %v486_v9, %v4629_v52  ;;  %v4692_v34 = vld [vmem:[%s3832_s24 + $0x310] sm:$0xff] }
  0xf0   : > { %v2526_v19 = vmul.f32 %v2270_v61, %v4553_v22  ;;  %v2271_v20 = vmul.f32 0.5, %v2015_v62  ;;  %v2016_v11 = vadd.f32 1.0, %v3285_v4  ;;  %v743_v12 = vmul.f32 %v487_v14, %v4634_v43 }
  0xf1   : > { %3292 = vtanh.f32 %v1508_v6  ;;  %v1509_v57 = vmul.f32 0.7978846, %v1253_v15  ;;  %v998_v24 = vmul.f32 0.044715, %v742_v7  ;;  %v488_v21 = vmul.f32 %v4645_v10, %v4645_v10  ;;  %v4696_v6 = vld [vmem:[%s3832_s24 + $0x318] sm:$0xff] }
  0xf2   : > { %v3287_v59 = vpop.eup %3286  ;;  %2782 = vst [vmem:[%s3942_s17 + $0x290] sm:$0xff] %v2526_v19  ;;  %v489_v22 = vmul.f32 %v4648_v8, %v4648_v8  ;;  %v2527_v17 = vmul.f32 %v2271_v20, %v4556_v23  ;;  %v2272_v42 = vmul.f32 0.5, %v2016_v11  ;;  %v999_v28 = vmul.f32 0.044715, %v743_v12 }
  0xf3   : > { %v2017_v26 = vadd.f32 1.0, %v3287_v59  ;;  %3294 = vtanh.f32 %v1509_v57  ;;  %v1254_v29 = vadd.f32 %v998_v24, %v4629_v52  ;;  %v744_v27 = vmul.f32 %v488_v21, %v4645_v10 }
  0xf4   : > { %v745_v32 = vmul.f32 %v489_v22, %v4648_v8  ;;  %v3289_v33 = vpop.eup %3288  ;;  %2783 = vst [vmem:[%s3942_s17 + $0x298] sm:$0xff] %v2527_v17  ;;  %v2528_v30 = vmul.f32 %v2272_v42, %v4563_v60  ;;  %v1255_v23 = vadd.f32 %v999_v28, %v4634_v43  ;;  %v490_v38 = vmul.f32 %v4661_v25, %v4661_v25 }
  0xf5   : > { %v2273_v18 = vmul.f32 0.5, %v2017_v26  ;;  %v3291_v36 = vpop.eup %3290  ;;  %v2018_v37 = vadd.f32 1.0, %v3289_v33  ;;  %v1510_v47 = vmul.f32 0.7978846, %v1254_v29  ;;  %v1000_v46 = vmul.f32 0.044715, %v744_v27 }
  0xf6   : > { %v491_v48 = vmul.f32 %v4665_v54, %v4665_v54  ;;  %2784 = vst [vmem:[%s3942_s17 + $0x2a0] sm:$0xff] %v2528_v30  ;;  %v2019_v60 = vadd.f32 1.0, %v3291_v36  ;;  %v1511_v45 = vmul.f32 0.7978846, %v1255_v23  ;;  %v1001_v40 = vmul.f32 0.044715, %v745_v32 }
  0xf7   : > { %v3293_v39 = vpop.eup %3292  ;;  %v2529_v35 = vmul.f32 %v2273_v18, %v4579_v0  ;;  %v2274_v49 = vmul.f32 0.5, %v2018_v37  ;;  %3296 = vtanh.f32 %v1510_v47  ;;  %v1256_v31 = vadd.f32 %v1000_v46, %v4645_v10  ;;  %v4684_v0 = vld [vmem:[%s3832_s24 + $0x300] sm:$0xff] }
  0xf8   : > { %v2020_v41 = vadd.f32 1.0, %v3293_v39  ;;  %v2275_v56 = vmul.f32 0.5, %v2019_v60  ;;  %3298 = vtanh.f32 %v1511_v45  ;;  %v1257_v55 = vadd.f32 %v1001_v40, %v4648_v8  ;;  %v4720_v23 = vld [vmem:[%s3832_s24 + $0x320] sm:$0xff] }
  0xf9   : > { %2785 = vst [vmem:[%s3942_s17 + $0x2a8] sm:$0xff] %v2529_v35  ;;  %v746_v51 = vmul.f32 %v490_v38, %v4661_v25  ;;  %v3295_v58 = vpop.eup %3294  ;;  %v2530_v44 = vmul.f32 %v2274_v49, %v4592_v5  ;;  %v1512_v63 = vmul.f32 0.7978846, %v1256_v31  ;;  %v747_v53 = vmul.f32 %v491_v48, %v4665_v54  ;;  %v4725_v48 = vld [vmem:[%s3832_s24 + $0x328] sm:$0xff] }
  0xfa   : > { %v2276_v1 = vmul.f32 0.5, %v2020_v41  ;;  %v2531_v61 = vmul.f32 %v2275_v56, %v4595_v50  ;;  %v2021_v3 = vadd.f32 1.0, %v3295_v58  ;;  %v1513_v9 = vmul.f32 0.7978846, %v1257_v55  ;;  %v4737_v55 = vld [vmem:[%s3832_s24 + $0x330] sm:$0xff] }
  0xfb   : > { %v1002_v62 = vmul.f32 0.044715, %v746_v51  ;;  %2786 = vst [vmem:[%s3942_s17 + $0x2b0] sm:$0xff] %v2530_v44  ;;  %3300 = vtanh.f32 %v1512_v63  ;;  %v1003_v14 = vmul.f32 0.044715, %v747_v53  ;;  %v492_v4 = vmul.f32 %v4684_v0, %v4684_v0  ;;  %v4742_v63 = vld [vmem:[%s3832_s24 + $0x338] sm:$0xff] }
  0xfc   : > { %v2532_v5 = vmul.f32 %v2276_v1, %v4603_v13  ;;  %2787 = vst [vmem:[%s3942_s17 + $0x2b8] sm:$0xff] %v2531_v61  ;;  %v2277_v19 = vmul.f32 0.5, %v2021_v3  ;;  %3302 = vtanh.f32 %v1513_v9  ;;  %v493_v50 = vmul.f32 %v4689_v2, %v4689_v2  ;;  %v4745_v53 = vld [vmem:[%s3832_s24 + $0x340] sm:$0xff] }
  0xfd   : > { %v1258_v15 = vadd.f32 %v1002_v62, %v4661_v25  ;;  %v3297_v7 = vpop.eup %3296  ;;  %v1259_v20 = vadd.f32 %v1003_v14, %v4665_v54  ;;  %v748_v13 = vmul.f32 %v492_v4, %v4684_v0  ;;  %v494_v11 = vmul.f32 %v4692_v34, %v4692_v34 }
  0xfe   : > { %2788 = vst [vmem:[%s3942_s17 + $0x2c0] sm:$0xff] %v2532_v5  ;;  %v495_v12 = vmul.f32 %v4696_v6, %v4696_v6  ;;  %v3299_v59 = vpop.eup %3298  ;;  %v2533_v57 = vmul.f32 %v2277_v19, %v4606_v16  ;;  %v2022_v24 = vadd.f32 1.0, %v3297_v7  ;;  %v749_v22 = vmul.f32 %v493_v50, %v4689_v2  ;;  %v4750_v5 = vld [vmem:[%s3832_s24 + $0x348] sm:$0xff] }
  0xff   : > { %v1514_v21 = vmul.f32 0.7978846, %v1258_v15  ;;  %v2023_v17 = vadd.f32 1.0, %v3299_v59  ;;  %v1515_v42 = vmul.f32 0.7978846, %v1259_v20  ;;  %v750_v28 = vmul.f32 %v494_v11, %v4692_v34 }
 0x100   : > { %v1004_v26 = vmul.f32 0.044715, %v748_v13  ;;  %2789 = vst [vmem:[%s3942_s17 + $0x2c8] sm:$0xff] %v2533_v57  ;;  %v2278_v29 = vmul.f32 0.5, %v2022_v24  ;;  %v1005_v27 = vmul.f32 0.044715, %v749_v22  ;;  %v751_v32 = vmul.f32 %v495_v12, %v4696_v6 }
 0x101   : > { %3304 = vtanh.f32 %v1514_v21  ;;  %v3301_v33 = vpop.eup %3300  ;;  %v2279_v16 = vmul.f32 0.5, %v2023_v17  ;;  %v1006_v18 = vmul.f32 0.044715, %v750_v28  ;;  %v496_v41 = vmul.f32 %v4720_v23, %v4720_v23 }
 0x102   : > { %3306 = vtanh.f32 %v1515_v42  ;;  %v1260_v30 = vadd.f32 %v1004_v26, %v4684_v0  ;;  %v3303_v38 = vpop.eup %3302  ;;  %v2534_v36 = vmul.f32 %v2278_v29, %v4629_v52  ;;  %v2024_v37 = vadd.f32 1.0, %v3301_v33 }
 0x103   : > { %v1261_v47 = vadd.f32 %v1005_v27, %v4689_v2  ;;  %v1007_v46 = vmul.f32 0.044715, %v751_v32  ;;  %v2535_v39 = vmul.f32 %v2279_v16, %v4634_v43  ;;  %v2025_v35 = vadd.f32 1.0, %v3303_v38 }
 0x104   : > { %v1516_v60 = vmul.f32 0.7978846, %v1260_v30  ;;  %v1262_v45 = vadd.f32 %v1006_v18, %v4692_v34  ;;  %2790 = vst [vmem:[%s3942_s17 + $0x2d0] sm:$0xff] %v2534_v36  ;;  %v2280_v40 = vmul.f32 0.5, %v2024_v37  ;;  %v497_v43 = vmul.f32 %v4725_v48, %v4725_v48 }
 0x105   : > { %v1517_v49 = vmul.f32 0.7978846, %v1261_v47  ;;  %v1263_v52 = vadd.f32 %v1007_v46, %v4696_v6  ;;  %2791 = vst [vmem:[%s3942_s17 + $0x2d8] sm:$0xff] %v2535_v39  ;;  %v2281_v31 = vmul.f32 0.5, %v2025_v35  ;;  %v752_v1 = vmul.f32 %v496_v41, %v4720_v23  ;;  %v4775_v47 = vld [vmem:[%s3832_s24 + $0x350] sm:$0xff]  ;;  %v4778_v46 = vld [vmem:[%s3832_s24 + $0x358] sm:$0xff] }
 0x106   : > { %3308 = vtanh.f32 %v1516_v60  ;;  %v1518_v56 = vmul.f32 0.7978846, %v1262_v45  ;;  %v2536_v58 = vmul.f32 %v2280_v40, %v4645_v10  ;;  %v753_v62 = vmul.f32 %v497_v43, %v4725_v48  ;;  %v4782_v40 = vld [vmem:[%s3832_s24 + $0x360] sm:$0xff] }
 0x107   : > { %v3305_v51 = vpop.eup %3304  ;;  %3310 = vtanh.f32 %v1517_v49  ;;  %v1519_v44 = vmul.f32 0.7978846, %v1263_v52  ;;  %v2537_v3 = vmul.f32 %v2281_v31, %v4648_v8  ;;  %v1008_v14 = vmul.f32 0.044715, %v752_v1 }
 0x108   : > { %v3307_v61 = vpop.eup %3306  ;;  %v2026_v9 = vadd.f32 1.0, %v3305_v51  ;;  %3312 = vtanh.f32 %v1518_v56  ;;  %2792 = vst [vmem:[%s3942_s17 + $0x2e0] sm:$0xff] %v2536_v58  ;;  %v498_v4 = vmul.f32 %v4737_v55, %v4737_v55  ;;  %v1009_v15 = vmul.f32 0.044715, %v753_v62  ;;  %v4786_v56 = vld [vmem:[%s3832_s24 + $0x368] sm:$0xff]  ;;  %v4794_v58 = vld [vmem:[%s3832_s24 + $0x370] sm:$0xff] }
 0x109   : > { %v2027_v10 = vadd.f32 1.0, %v3307_v61  ;;  %3314 = vtanh.f32 %v1519_v44  ;;  %2793 = vst [vmem:[%s3942_s17 + $0x2e8] sm:$0xff] %v2537_v3  ;;  %v499_v50 = vmul.f32 %v4742_v63, %v4742_v63  ;;  %v500_v8 = vmul.f32 %v4745_v53, %v4745_v53 }
 0x10a   : > { %v2282_v19 = vmul.f32 0.5, %v2026_v9  ;;  %v1264_v20 = vadd.f32 %v1008_v14, %v4720_v23  ;;  %v754_v13 = vmul.f32 %v498_v4, %v4737_v55  ;;  %v501_v11 = vmul.f32 %v4750_v5, %v4750_v5 }
 0x10b   : > { %v2283_v7 = vmul.f32 0.5, %v2027_v10  ;;  %v1265_v57 = vadd.f32 %v1009_v15, %v4725_v48  ;;  %v755_v24 = vmul.f32 %v499_v50, %v4742_v63  ;;  %v756_v21 = vmul.f32 %v500_v8, %v4745_v53 }
 0x10c   : > { %v3309_v12 = vpop.eup %3308  ;;  %v2538_v59 = vmul.f32 %v2282_v19, %v4661_v25  ;;  %v1520_v26 = vmul.f32 0.7978846, %v1264_v20  ;;  %v1010_v28 = vmul.f32 0.044715, %v754_v13  ;;  %v757_v33 = vmul.f32 %v501_v11, %v4750_v5 }
 0x10d   : > { %v3311_v22 = vpop.eup %3310  ;;  %v2539_v17 = vmul.f32 %v2283_v7, %v4665_v54  ;;  %v2028_v42 = vadd.f32 1.0, %v3309_v12  ;;  %v1521_v32 = vmul.f32 0.7978846, %v1265_v57  ;;  %v1011_v25 = vmul.f32 0.044715, %v755_v24 }
 0x10e   : > { %v3313_v29 = vpop.eup %3312  ;;  %2794 = vst [vmem:[%s3942_s17 + $0x2f0] sm:$0xff] %v2538_v59  ;;  %v2029_v27 = vadd.f32 1.0, %v3311_v22  ;;  %3316 = vtanh.f32 %v1520_v26  ;;  %v1266_v54 = vadd.f32 %v1010_v28, %v4737_v55  ;;  %v1012_v45 = vmul.f32 0.044715, %v756_v21  ;;  %v4818_v28 = vld [vmem:[%s3832_s24 + $0x378] sm:$0xff] }
 0x10f   : > { %v3315_v16 = vpop.eup %3314  ;;  %2795 = vst [vmem:[%s3942_s17 + $0x2f8] sm:$0xff] %v2539_v17  ;;  %v2284_v30 = vmul.f32 0.5, %v2028_v42  ;;  %v2030_v18 = vadd.f32 1.0, %v3313_v29  ;;  %3318 = vtanh.f32 %v1521_v32  ;;  %v1267_v37 = vadd.f32 %v1011_v25, %v4742_v63 }
 0x110   : > { %v2285_v38 = vmul.f32 0.5, %v2029_v27  ;;  %v2031_v36 = vadd.f32 1.0, %v3315_v16  ;;  %v1522_v60 = vmul.f32 0.7978846, %v1266_v54  ;;  %v1013_v31 = vmul.f32 0.044715, %v757_v33 }
 0x111   : > { %v2540_v39 = vmul.f32 %v2284_v30, %v4684_v0  ;;  %v2286_v35 = vmul.f32 0.5, %v2030_v18  ;;  %v1523_v41 = vmul.f32 0.7978846, %v1267_v37  ;;  %v1268_v0 = vadd.f32 %v1012_v45, %v4745_v53  ;;  %v4832_v45 = vld [vmem:[%s3832_s24 + $0x388] sm:$0xff] }
 0x112   : > { %v2541_v49 = vmul.f32 %v2285_v38, %v4689_v2  ;;  %v2287_v52 = vmul.f32 0.5, %v2031_v36  ;;  %3320 = vtanh.f32 %v1522_v60  ;;  %v502_v51 = vmul.f32 %v4775_v47, %v4775_v47  ;;  %v4828_v36 = vld [vmem:[%s3832_s24 + $0x380] sm:$0xff] }
 0x113   : > { %2796 = vst [vmem:[%s3942_s17 + $0x300] sm:$0xff] %v2540_v39  ;;  %v2542_v43 = vmul.f32 %v2286_v35, %v4692_v34  ;;  %3322 = vtanh.f32 %v1523_v41  ;;  %v1269_v44 = vadd.f32 %v1013_v31, %v4750_v5  ;;  %v503_v1 = vmul.f32 %v4778_v46, %v4778_v46 }
 0x114   : > { %2797 = vst [vmem:[%s3942_s17 + $0x308] sm:$0xff] %v2541_v49  ;;  %v2543_v2 = vmul.f32 %v2287_v52, %v4696_v6  ;;  %v3317_v61 = vpop.eup %3316  ;;  %v1524_v34 = vmul.f32 0.7978846, %v1268_v0  ;;  %v758_v3 = vmul.f32 %v502_v51, %v4775_v47  ;;  %v504_v9 = vmul.f32 %v4782_v40, %v4782_v40  ;;  %v4835_v49 = vld [vmem:[%s3832_s24 + $0x390] sm:$0xff] }
 0x115   : > { %2798 = vst [vmem:[%s3942_s17 + $0x310] sm:$0xff] %v2542_v43  ;;  %v505_v62 = vmul.f32 %v4786_v56, %v4786_v56  ;;  %v3319_v10 = vpop.eup %3318  ;;  %v2032_v6 = vadd.f32 1.0, %v3317_v61  ;;  %v1525_v14 = vmul.f32 0.7978846, %v1269_v44  ;;  %v759_v4 = vmul.f32 %v503_v1, %v4778_v46  ;;  %v4840_v43 = vld [vmem:[%s3832_s24 + $0x398] sm:$0xff] }
 0x116   : > { %2799 = vst [vmem:[%s3942_s17 + $0x318] sm:$0xff] %v2543_v2  ;;  %v506_v19 = vmul.f32 %v4794_v58, %v4794_v58  ;;  %v2033_v15 = vadd.f32 1.0, %v3319_v10  ;;  %3324 = vtanh.f32 %v1524_v34  ;;  %v1014_v50 = vmul.f32 0.044715, %v758_v3 }
 0x117   : > { %v760_v8 = vmul.f32 %v504_v9, %v4782_v40  ;;  %v2288_v7 = vmul.f32 0.5, %v2032_v6  ;;  %3326 = vtanh.f32 %v1525_v14  ;;  %v1015_v20 = vmul.f32 0.044715, %v759_v4 }
 0x118   : > { %v761_v13 = vmul.f32 %v505_v62, %v4786_v56  ;;  %v3321_v11 = vpop.eup %3320  ;;  %v2289_v12 = vmul.f32 0.5, %v2033_v15  ;;  %v1270_v59 = vadd.f32 %v1014_v50, %v4775_v47  ;;  %v762_v24 = vmul.f32 %v506_v19, %v4794_v58  ;;  %v4856_v62 = vld [vmem:[%s3832_s24 + $0x3a0] sm:$0xff] }
 0x119   : > { %v1016_v57 = vmul.f32 0.044715, %v760_v8  ;;  %v3323_v21 = vpop.eup %3322  ;;  %v2544_v22 = vmul.f32 %v2288_v7, %v4720_v23  ;;  %v2034_v17 = vadd.f32 1.0, %v3321_v11  ;;  %v1271_v42 = vadd.f32 %v1015_v20, %v4778_v46 }
 0x11a   : > { %v1017_v26 = vmul.f32 0.044715, %v761_v13  ;;  %v2545_v29 = vmul.f32 %v2289_v12, %v4725_v48  ;;  %v2035_v27 = vadd.f32 1.0, %v3323_v21  ;;  %v1526_v32 = vmul.f32 0.7978846, %v1270_v59 }
 0x11b   : > { %v1272_v25 = vadd.f32 %v1016_v57, %v4782_v40  ;;  %2800 = vst [vmem:[%s3942_s17 + $0x320] sm:$0xff] %v2544_v22  ;;  %v2290_v33 = vmul.f32 0.5, %v2034_v17  ;;  %v1527_v16 = vmul.f32 0.7978846, %v1271_v42  ;;  %v1018_v30 = vmul.f32 0.044715, %v762_v24 }
 0x11c   : > { %v1273_v23 = vadd.f32 %v1017_v26, %v4786_v56  ;;  %v3325_v18 = vpop.eup %3324  ;;  %2801 = vst [vmem:[%s3942_s17 + $0x328] sm:$0xff] %v2545_v29  ;;  %v2291_v54 = vmul.f32 0.5, %v2035_v27  ;;  %3328 = vtanh.f32 %v1526_v32  ;;  %v507_v48 = vmul.f32 %v4818_v28, %v4818_v28 }
 0x11d   : > { %v1528_v38 = vmul.f32 0.7978846, %v1272_v25  ;;  %v3327_v37 = vpop.eup %3326  ;;  %v2546_v39 = vmul.f32 %v2290_v33, %v4737_v55  ;;  %v2036_v35 = vadd.f32 1.0, %v3325_v18  ;;  %3330 = vtanh.f32 %v1527_v16  ;;  %v4872_v25 = vld [vmem:[%s3832_s24 + $0x3a8] sm:$0xff] }
 0x11e   : > { %v1529_v60 = vmul.f32 0.7978846, %v1273_v23  ;;  %v2547_v52 = vmul.f32 %v2291_v54, %v4742_v63  ;;  %v2037_v41 = vadd.f32 1.0, %v3327_v37  ;;  %v1274_v31 = vadd.f32 %v1018_v30, %v4794_v58  ;;  %v4876_v54 = vld [vmem:[%s3832_s24 + $0x3b0] sm:$0xff]  ;;  %v4881_v37 = vld [vmem:[%s3832_s24 + $0x3b8] sm:$0xff] }
 0x11f   : > { %3332 = vtanh.f32 %v1528_v38  ;;  %2802 = vst [vmem:[%s3942_s17 + $0x330] sm:$0xff] %v2546_v39  ;;  %v2292_v0 = vmul.f32 0.5, %v2036_v35  ;;  %v763_v55 = vmul.f32 %v507_v48, %v4818_v28  ;;  %v508_v51 = vmul.f32 %v4828_v36, %v4828_v36  ;;  %v4884_v39 = vld [vmem:[%s3832_s24 + $0x3c0] sm:$0xff] }
 0x120   : > { %3334 = vtanh.f32 %v1529_v60  ;;  %2803 = vst [vmem:[%s3942_s17 + $0x338] sm:$0xff] %v2547_v52  ;;  %v2293_v2 = vmul.f32 0.5, %v2037_v41  ;;  %v1530_v44 = vmul.f32 0.7978846, %v1274_v31  ;;  %v509_v63 = vmul.f32 %v4832_v45, %v4832_v45  ;;  %v4892_v52 = vld [vmem:[%s3832_s24 + $0x3c8] sm:$0xff] }
 0x121   : > { %v510_v1 = vmul.f32 %v4835_v49, %v4835_v49  ;;  %v2548_v61 = vmul.f32 %v2292_v0, %v4745_v53  ;;  %v1019_v34 = vmul.f32 0.044715, %v763_v55  ;;  %v764_v3 = vmul.f32 %v508_v51, %v4828_v36 }
 0x122   : > { %v511_v9 = vmul.f32 %v4840_v43, %v4840_v43  ;;  %v3329_v10 = vpop.eup %3328  ;;  %v2549_v6 = vmul.f32 %v2293_v2, %v4750_v5  ;;  %3336 = vtanh.f32 %v1530_v44  ;;  %v765_v14 = vmul.f32 %v509_v63, %v4832_v45 }
 0x123   : > { %v766_v4 = vmul.f32 %v510_v1, %v4835_v49  ;;  %v3331_v19 = vpop.eup %3330  ;;  %2804 = vst [vmem:[%s3942_s17 + $0x340] sm:$0xff] %v2548_v61  ;;  %v2038_v53 = vadd.f32 1.0, %v3329_v10  ;;  %v1275_v15 = vadd.f32 %v1019_v34, %v4818_v28  ;;  %v1020_v50 = vmul.f32 0.044715, %v764_v3 }
 0x124   : > { %v767_v8 = vmul.f32 %v511_v9, %v4840_v43  ;;  %2805 = vst [vmem:[%s3942_s17 + $0x348] sm:$0xff] %v2549_v6  ;;  %v2039_v20 = vadd.f32 1.0, %v3331_v19  ;;  %v1021_v13 = vmul.f32 0.044715, %v765_v14  ;;  %v512_v5 = vmul.f32 %v4856_v62, %v4856_v62 }
 0x125   : > { %v3333_v7 = vpop.eup %3332  ;;  %v1022_v11 = vmul.f32 0.044715, %v766_v4  ;;  %v2294_v59 = vmul.f32 0.5, %v2038_v53  ;;  %v1531_v24 = vmul.f32 0.7978846, %v1275_v15  ;;  %v1276_v21 = vadd.f32 %v1020_v50, %v4828_v36 }
 0x126   : > { %v3335_v12 = vpop.eup %3334  ;;  %v2040_v57 = vadd.f32 1.0, %v3333_v7  ;;  %v2295_v22 = vmul.f32 0.5, %v2039_v20  ;;  %v1277_v42 = vadd.f32 %v1021_v13, %v4832_v45  ;;  %v1023_v48 = vmul.f32 0.044715, %v767_v8 }
 0x127   : > { %v2041_v17 = vadd.f32 1.0, %v3335_v12  ;;  %v1278_v26 = vadd.f32 %v1022_v11, %v4835_v49  ;;  %v2550_v29 = vmul.f32 %v2294_v59, %v4775_v47  ;;  %3338 = vtanh.f32 %v1531_v24  ;;  %v4917_v24 = vld [vmem:[%s3832_s24 + $0x3d0] sm:$0xff] }
 0x128   : > { %v2296_v27 = vmul.f32 0.5, %v2040_v57  ;;  %v1532_v32 = vmul.f32 0.7978846, %v1276_v21  ;;  %v3337_v33 = vpop.eup %3336  ;;  %v2551_v16 = vmul.f32 %v2295_v22, %v4778_v46  ;;  %v1533_v30 = vmul.f32 0.7978846, %v1277_v42 }
 0x129   : > { %v2297_v23 = vmul.f32 0.5, %v2041_v17  ;;  %v1534_v18 = vmul.f32 0.7978846, %v1278_v26  ;;  %2806 = vst [vmem:[%s3942_s17 + $0x350] sm:$0xff] %v2550_v29  ;;  %v2042_v38 = vadd.f32 1.0, %v3337_v33  ;;  %v768_v35 = vmul.f32 %v512_v5, %v4856_v62 }
 0x12a   : > { %v2552_v47 = vmul.f32 %v2296_v27, %v4782_v40  ;;  %3340 = vtanh.f32 %v1532_v32  ;;  %2807 = vst [vmem:[%s3942_s17 + $0x358] sm:$0xff] %v2551_v16  ;;  %v513_v60 = vmul.f32 %v4872_v25, %v4872_v25  ;;  %v1279_v41 = vadd.f32 %v1023_v48, %v4840_v43  ;;  %v4924_v32 = vld [vmem:[%s3832_s24 + $0x3d8] sm:$0xff] }
 0x12b   : > { %v2553_v46 = vmul.f32 %v2297_v23, %v4786_v56  ;;  %3342 = vtanh.f32 %v1533_v30  ;;  %v2298_v40 = vmul.f32 0.5, %v2042_v38  ;;  %v514_v31 = vmul.f32 %v4876_v54, %v4876_v54 }
 0x12c   : > { %2808 = vst [vmem:[%s3942_s17 + $0x360] sm:$0xff] %v2552_v47  ;;  %3344 = vtanh.f32 %v1534_v18  ;;  %v1024_v0 = vmul.f32 0.044715, %v768_v35  ;;  %v769_v56 = vmul.f32 %v513_v60, %v4872_v25  ;;  %v515_v55 = vmul.f32 %v4881_v37, %v4881_v37  ;;  %v4930_v18 = vld [vmem:[%s3832_s24 + $0x3e0] sm:$0xff]  ;;  %v4943_v60 = vld [vmem:[%s3832_s24 + $0x3f0] sm:$0xff] }
 0x12d   : > { %2809 = vst [vmem:[%s3942_s17 + $0x368] sm:$0xff] %v2553_v46  ;;  %v516_v51 = vmul.f32 %v4884_v39, %v4884_v39  ;;  %v3339_v2 = vpop.eup %3338  ;;  %v2554_v44 = vmul.f32 %v2298_v40, %v4794_v58  ;;  %v1535_v63 = vmul.f32 0.7978846, %v1279_v41  ;;  %v770_v1 = vmul.f32 %v514_v31, %v4876_v54 }
 0x12e   : > { %v517_v61 = vmul.f32 %v4892_v52, %v4892_v52  ;;  %v2043_v34 = vadd.f32 1.0, %v3339_v2  ;;  %v1280_v3 = vadd.f32 %v1024_v0, %v4856_v62  ;;  %v1025_v9 = vmul.f32 0.044715, %v769_v56 }
 0x12f   : > { %v771_v10 = vmul.f32 %v515_v55, %v4881_v37  ;;  %2810 = vst [vmem:[%s3942_s17 + $0x370] sm:$0xff] %v2554_v44  ;;  %3346 = vtanh.f32 %v1535_v63  ;;  %v1026_v14 = vmul.f32 0.044715, %v770_v1  ;;  %v772_v4 = vmul.f32 %v516_v51, %v4884_v39 }
 0x130   : > { %v3341_v6 = vpop.eup %3340  ;;  %v773_v58 = vmul.f32 %v517_v61, %v4892_v52  ;;  %v2299_v53 = vmul.f32 0.5, %v2043_v34  ;;  %v1536_v50 = vmul.f32 0.7978846, %v1280_v3  ;;  %v1281_v8 = vadd.f32 %v1025_v9, %v4872_v25 }
 0x131   : > { %v3343_v19 = vpop.eup %3342  ;;  %v2044_v15 = vadd.f32 1.0, %v3341_v6  ;;  %v1282_v13 = vadd.f32 %v1026_v14, %v4876_v54  ;;  %v1027_v11 = vmul.f32 0.044715, %v771_v10  ;;  %v1028_v5 = vmul.f32 0.044715, %v772_v4 }
 0x132   : > { %v3345_v7 = vpop.eup %3344  ;;  %v2045_v20 = vadd.f32 1.0, %v3343_v19  ;;  %v2555_v12 = vmul.f32 %v2299_v53, %v4818_v28  ;;  %3348 = vtanh.f32 %v1536_v50  ;;  %v1537_v22 = vmul.f32 0.7978846, %v1281_v8 }
 0x133   : > { %v2300_v59 = vmul.f32 0.5, %v2044_v15  ;;  %v2046_v57 = vadd.f32 1.0, %v3345_v7  ;;  %v1538_v17 = vmul.f32 0.7978846, %v1282_v13  ;;  %v1283_v42 = vadd.f32 %v1027_v11, %v4881_v37 }
 0x134   : > { %v2301_v21 = vmul.f32 0.5, %v2045_v20  ;;  %2811 = vst [vmem:[%s3942_s17 + $0x378] sm:$0xff] %v2555_v12  ;;  %v1284_v28 = vadd.f32 %v1028_v5, %v4884_v39  ;;  %v1029_v27 = vmul.f32 0.044715, %v773_v58  ;;  %3350 = vtanh.f32 %v1537_v22 }
 0x135   : > { %v2556_v26 = vmul.f32 %v2300_v59, %v4828_v36  ;;  %v2302_v29 = vmul.f32 0.5, %v2046_v57  ;;  %v3347_v33 = vpop.eup %3346  ;;  %v1539_v23 = vmul.f32 0.7978846, %v1283_v42  ;;  %v518_v30 = vmul.f32 %v4917_v24, %v4917_v24  ;;  %v4933_v36 = vld [vmem:[%s3832_s24 + $0x3e8] sm:$0xff]  ;;  %v4965_v59 = vld [vmem:[%s3832_s24 + $0x3f8] sm:$0xff]  ;;  %v4969_v42 = vld [vmem:[%s3832_s24 + $0x400] sm:$0xff] }
 0x136   : > { %v2557_v16 = vmul.f32 %v2301_v21, %v4832_v45  ;;  %v2047_v38 = vadd.f32 1.0, %v3347_v33  ;;  %3352 = vtanh.f32 %v1538_v17  ;;  %v1540_v48 = vmul.f32 0.7978846, %v1284_v28  ;;  %v4973_v33 = vld [vmem:[%s3832_s24 + $0x408] sm:$0xff] }
 0x137   : > { %2812 = vst [vmem:[%s3942_s17 + $0x380] sm:$0xff] %v2556_v26  ;;  %v2558_v47 = vmul.f32 %v2302_v29, %v4835_v49  ;;  %3354 = vtanh.f32 %v1539_v23  ;;  %v1285_v45 = vadd.f32 %v1029_v27, %v4892_v52  ;;  %v774_v46 = vmul.f32 %v518_v30, %v4917_v24 }
 0x138   : > { %2813 = vst [vmem:[%s3942_s17 + $0x388] sm:$0xff] %v2557_v16  ;;  %v519_v35 = vmul.f32 %v4924_v32, %v4924_v32  ;;  %v3349_v40 = vpop.eup %3348  ;;  %v2303_v41 = vmul.f32 0.5, %v2047_v38  ;;  %3356 = vtanh.f32 %v1540_v48  ;;  %v520_v49 = vmul.f32 %v4930_v18, %v4930_v18  ;;  %v4976_v16 = vld [vmem:[%s3832_s24 + $0x410] sm:$0xff] }
 0x139   : > { %2814 = vst [vmem:[%s3942_s17 + $0x390] sm:$0xff] %v2558_v47  ;;  %v521_v31 = vmul.f32 %v4933_v36, %v4933_v36  ;;  %v2048_v0 = vadd.f32 1.0, %v3349_v40  ;;  %v1541_v56 = vmul.f32 0.7978846, %v1285_v45  ;;  %v1030_v55 = vmul.f32 0.044715, %v774_v46 }
 0x13a   : > { %v775_v51 = vmul.f32 %v519_v35, %v4924_v32  ;;  %v2559_v2 = vmul.f32 %v2303_v41, %v4840_v43  ;;  %v776_v44 = vmul.f32 %v520_v49, %v4930_v18  ;;  %v522_v1 = vmul.f32 %v4943_v60, %v4943_v60  ;;  %v3351_v61 = vpop.eup %3350  ;;  %v4983_v47 = vld [vmem:[%s3832_s24 + $0x418] sm:$0xff] }
 0x13b   : > { %v777_v63 = vmul.f32 %v521_v31, %v4933_v36  ;;  %v2304_v34 = vmul.f32 0.5, %v2048_v0  ;;  %3358 = vtanh.f32 %v1541_v56  ;;  %v1286_v3 = vadd.f32 %v1030_v55, %v4917_v24 }
 0x13c   : > { %v1031_v9 = vmul.f32 0.044715, %v775_v51  ;;  %v3353_v10 = vpop.eup %3352  ;;  %2815 = vst [vmem:[%s3942_s17 + $0x398] sm:$0xff] %v2559_v2  ;;  %v2049_v6 = vadd.f32 1.0, %v3351_v61  ;;  %v1032_v14 = vmul.f32 0.044715, %v776_v44  ;;  %v778_v43 = vmul.f32 %v522_v1, %v4943_v60 }
 0x13d   : > { %v1033_v4 = vmul.f32 0.044715, %v777_v63  ;;  %v3355_v58 = vpop.eup %3354  ;;  %v2560_v19 = vmul.f32 %v2304_v34, %v4856_v62  ;;  %v2050_v53 = vadd.f32 1.0, %v3353_v10  ;;  %v1542_v15 = vmul.f32 0.7978846, %v1286_v3 }
 0x13e   : > { %v1287_v50 = vadd.f32 %v1031_v9, %v4924_v32  ;;  %v3357_v8 = vpop.eup %3356  ;;  %v2305_v7 = vmul.f32 0.5, %v2049_v6  ;;  %v2051_v20 = vadd.f32 1.0, %v3355_v58  ;;  %v1288_v13 = vadd.f32 %v1032_v14, %v4930_v18 }
 0x13f   : > { %v1289_v11 = vadd.f32 %v1033_v4, %v4933_v36  ;;  %2816 = vst [vmem:[%s3942_s17 + $0x3a0] sm:$0xff] %v2560_v19  ;;  %v2306_v5 = vmul.f32 0.5, %v2050_v53  ;;  %v2052_v12 = vadd.f32 1.0, %v3357_v8  ;;  %3360 = vtanh.f32 %v1542_v15 }
 0x140   : > { %v1543_v62 = vmul.f32 0.7978846, %v1287_v50  ;;  %v2561_v57 = vmul.f32 %v2305_v7, %v4872_v25  ;;  %v2307_v21 = vmul.f32 0.5, %v2051_v20  ;;  %v1544_v22 = vmul.f32 0.7978846, %v1288_v13 }
 0x141   : > { %v1545_v17 = vmul.f32 0.7978846, %v1289_v11  ;;  %v3359_v26 = vpop.eup %3358  ;;  %v2562_v29 = vmul.f32 %v2306_v5, %v4876_v54  ;;  %v2308_v28 = vmul.f32 0.5, %v2052_v12  ;;  %v1034_v27 = vmul.f32 0.044715, %v778_v43  ;;  %v4986_v54 = vld [vmem:[%s3832_s24 + $0x420] sm:$0xff] }
 0x142   : > { %3362 = vtanh.f32 %v1543_v62  ;;  %2817 = vst [vmem:[%s3942_s17 + $0x3a8] sm:$0xff] %v2561_v57  ;;  %v2563_v25 = vmul.f32 %v2307_v21, %v4881_v37  ;;  %v2053_v23 = vadd.f32 1.0, %v3359_v26  ;;  %v523_v30 = vmul.f32 %v4965_v59, %v4965_v59  ;;  %v5022_v62 = vld [vmem:[%s3832_s24 + $0x430] sm:$0xff]  ;;  %v5025_v57 = vld [vmem:[%s3832_s24 + $0x438] sm:$0xff] }
 0x143   : > { %3364 = vtanh.f32 %v1544_v22  ;;  %2818 = vst [vmem:[%s3942_s17 + $0x3b0] sm:$0xff] %v2562_v29  ;;  %v2564_v38 = vmul.f32 %v2308_v28, %v4884_v39  ;;  %v1290_v48 = vadd.f32 %v1034_v27, %v4943_v60  ;;  %v524_v45 = vmul.f32 %v4969_v42, %v4969_v42 }
 0x144   : > { %3366 = vtanh.f32 %v1545_v17  ;;  %2819 = vst [vmem:[%s3942_s17 + $0x3b8] sm:$0xff] %v2563_v25  ;;  %v2309_v37 = vmul.f32 0.5, %v2053_v23  ;;  %v779_v46 = vmul.f32 %v523_v30, %v4965_v59  ;;  %v525_v35 = vmul.f32 %v4973_v33, %v4973_v33 }
 0x145   : > { %v526_v40 = vmul.f32 %v4976_v16, %v4976_v16  ;;  %v3361_v41 = vpop.eup %3360  ;;  %2820 = vst [vmem:[%s3942_s17 + $0x3c0] sm:$0xff] %v2564_v38  ;;  %v1546_v39 = vmul.f32 0.7978846, %v1290_v48  ;;  %v780_v49 = vmul.f32 %v524_v45, %v4969_v42  ;;  %v527_v31 = vmul.f32 %v4983_v47, %v4983_v47  ;;  %v5042_v38 = vld [vmem:[%s3832_s24 + $0x448] sm:$0xff] }
 0x146   : > { %v528_v0 = vmul.f32 %v4986_v54, %v4986_v54  ;;  %v2565_v56 = vmul.f32 %v2309_v37, %v4892_v52  ;;  %v2054_v55 = vadd.f32 1.0, %v3361_v41  ;;  %v1035_v51 = vmul.f32 0.044715, %v779_v46  ;;  %v5048_v37 = vld [vmem:[%s3832_s24 + $0x450] sm:$0xff] }
 0x147   : > { %v781_v2 = vmul.f32 %v525_v35, %v4973_v33  ;;  %3368 = vtanh.f32 %v1546_v39  ;;  %v1036_v63 = vmul.f32 0.044715, %v780_v49  ;;  %v782_v1 = vmul.f32 %v526_v40, %v4976_v16 }
 0x148   : > { %v3363_v44 = vpop.eup %3362  ;;  %v783_v61 = vmul.f32 %v527_v31, %v4983_v47  ;;  %2821 = vst [vmem:[%s3942_s17 + $0x3c8] sm:$0xff] %v2565_v56  ;;  %v2310_v3 = vmul.f32 0.5, %v2054_v55  ;;  %v1291_v10 = vadd.f32 %v1035_v51, %v4965_v59  ;;  %v784_v25 = vmul.f32 %v528_v0, %v4986_v54 }
 0x149   : > { %v3365_v34 = vpop.eup %3364  ;;  %v2055_v9 = vadd.f32 1.0, %v3363_v44  ;;  %v1037_v6 = vmul.f32 0.044715, %v781_v2  ;;  %v1292_v4 = vadd.f32 %v1036_v63, %v4969_v42  ;;  %v1038_v43 = vmul.f32 0.044715, %v782_v1 }
 0x14a   : > { %v3367_v52 = vpop.eup %3366  ;;  %v2056_v14 = vadd.f32 1.0, %v3365_v34  ;;  %v1039_v58 = vmul.f32 0.044715, %v783_v61  ;;  %v2566_v19 = vmul.f32 %v2310_v3, %v4917_v24  ;;  %v1547_v50 = vmul.f32 0.7978846, %v1291_v10  ;;  %v5019_v24 = vld [vmem:[%s3832_s24 + $0x428] sm:$0xff] }
 0x14b   : > { %v2311_v53 = vmul.f32 0.5, %v2055_v9  ;;  %v2057_v15 = vadd.f32 1.0, %v3367_v52  ;;  %v1548_v7 = vmul.f32 0.7978846, %v1292_v4  ;;  %v1293_v20 = vadd.f32 %v1037_v6, %v4973_v33 }
 0x14c   : > { %v2312_v8 = vmul.f32 0.5, %v2056_v14  ;;  %v1294_v13 = vadd.f32 %v1038_v43, %v4976_v16  ;;  %2822 = vst [vmem:[%s3942_s17 + $0x3d0] sm:$0xff] %v2566_v19  ;;  %3370 = vtanh.f32 %v1547_v50  ;;  %v1295_v12 = vadd.f32 %v1039_v58, %v4983_v47 }
 0x14d   : > { %v2567_v11 = vmul.f32 %v2311_v53, %v4924_v32  ;;  %v2313_v5 = vmul.f32 0.5, %v2057_v15  ;;  %v3369_v21 = vpop.eup %3368  ;;  %3372 = vtanh.f32 %v1548_v7  ;;  %v1549_v17 = vmul.f32 0.7978846, %v1293_v20  ;;  %v5029_v32 = vld [vmem:[%s3832_s24 + $0x440] sm:$0xff] }
 0x14e   : > { %v2568_v22 = vmul.f32 %v2312_v8, %v4930_v18  ;;  %v1550_v26 = vmul.f32 0.7978846, %v1294_v13  ;;  %v2058_v28 = vadd.f32 1.0, %v3369_v21  ;;  %v1551_v27 = vmul.f32 0.7978846, %v1295_v12  ;;  %v5070_v21 = vld [vmem:[%s3832_s24 + $0x458] sm:$0xff] }
 0x14f   : > { %2823 = vst [vmem:[%s3942_s17 + $0x3d8] sm:$0xff] %v2567_v11  ;;  %v2569_v29 = vmul.f32 %v2313_v5, %v4933_v36  ;;  %3374 = vtanh.f32 %v1549_v17  ;;  %v529_v23 = vmul.f32 %v5019_v24, %v5019_v24  ;;  %v530_v18 = vmul.f32 %v5022_v62, %v5022_v62 }
 0x150   : > { %2824 = vst [vmem:[%s3942_s17 + $0x3e0] sm:$0xff] %v2568_v22  ;;  %v531_v30 = vmul.f32 %v5025_v57, %v5025_v57  ;;  %v2314_v48 = vmul.f32 0.5, %v2058_v28  ;;  %3376 = vtanh.f32 %v1550_v26  ;;  %v1040_v36 = vmul.f32 0.044715, %v784_v25  ;;  %v5079_v26 = vld [vmem:[%s3832_s24 + $0x468] sm:$0xff]  ;;  %v5084_v25 = vld [vmem:[%s3832_s24 + $0x470] sm:$0xff] }
 0x151   : > { %2825 = vst [vmem:[%s3942_s17 + $0x3e8] sm:$0xff] %v2569_v29  ;;  %v532_v45 = vmul.f32 %v5029_v32, %v5029_v32  ;;  %3378 = vtanh.f32 %v1551_v27  ;;  %v785_v46 = vmul.f32 %v529_v23, %v5019_v24  ;;  %v786_v35 = vmul.f32 %v530_v18, %v5022_v62 }
 0x152   : > { %v787_v40 = vmul.f32 %v531_v30, %v5025_v57  ;;  %v3371_v41 = vpop.eup %3370  ;;  %v2570_v39 = vmul.f32 %v2314_v48, %v4943_v60  ;;  %v1296_v49 = vadd.f32 %v1040_v36, %v4986_v54  ;;  %v533_v0 = vmul.f32 %v5042_v38, %v5042_v38  ;;  %v5093_v36 = vld [vmem:[%s3832_s24 + $0x478] sm:$0xff] }
 0x153   : > { %v788_v31 = vmul.f32 %v532_v45, %v5029_v32  ;;  %v3373_v56 = vpop.eup %3372  ;;  %v2059_v55 = vadd.f32 1.0, %v3371_v41  ;;  %v1041_v51 = vmul.f32 0.044715, %v785_v46  ;;  %v1042_v2 = vmul.f32 0.044715, %v786_v35 }
 0x154   : > { %v534_v44 = vmul.f32 %v5048_v37, %v5048_v37  ;;  %2826 = vst [vmem:[%s3942_s17 + $0x3f0] sm:$0xff] %v2570_v39  ;;  %v2060_v63 = vadd.f32 1.0, %v3373_v56  ;;  %v1552_v1 = vmul.f32 0.7978846, %v1296_v49  ;;  %v1043_v61 = vmul.f32 0.044715, %v787_v40 }
 0x155   : > { %v789_v60 = vmul.f32 %v533_v0, %v5042_v38  ;;  %v3375_v34 = vpop.eup %3374  ;;  %v2315_v3 = vmul.f32 0.5, %v2059_v55  ;;  %v1297_v9 = vadd.f32 %v1041_v51, %v5019_v24  ;;  %v1298_v10 = vadd.f32 %v1042_v2, %v5022_v62 }
 0x156   : > { %v1044_v6 = vmul.f32 0.044715, %v788_v31  ;;  %v3377_v52 = vpop.eup %3376  ;;  %v2316_v14 = vmul.f32 0.5, %v2060_v63  ;;  %v2061_v4 = vadd.f32 1.0, %v3375_v34  ;;  %3380 = vtanh.f32 %v1552_v1 }
 0x157   : > { %v1299_v43 = vadd.f32 %v1043_v61, %v5025_v57  ;;  %v3379_v58 = vpop.eup %3378  ;;  %v2571_v19 = vmul.f32 %v2315_v3, %v4965_v59  ;;  %v2062_v53 = vadd.f32 1.0, %v3377_v52  ;;  %v1553_v15 = vmul.f32 0.7978846, %v1297_v9  ;;  %v5073_v59 = vld [vmem:[%s3832_s24 + $0x460] sm:$0xff] }
 0x158   : > { %v1554_v50 = vmul.f32 0.7978846, %v1298_v10  ;;  %v2572_v8 = vmul.f32 %v2316_v14, %v4969_v42  ;;  %v2317_v7 = vmul.f32 0.5, %v2061_v4  ;;  %v2063_v20 = vadd.f32 1.0, %v3379_v58 }
 0x159   : > { %v1555_v13 = vmul.f32 0.7978846, %v1299_v43  ;;  %2827 = vst [vmem:[%s3942_s17 + $0x3f8] sm:$0xff] %v2571_v19  ;;  %v2318_v11 = vmul.f32 0.5, %v2062_v53  ;;  %3382 = vtanh.f32 %v1553_v15  ;;  %v1300_v5 = vadd.f32 %v1044_v6, %v5029_v32  ;;  %v5115_v15 = vld [vmem:[%s3832_s24 + $0x480] sm:$0xff] }
 0x15a   : > { %v1045_v12 = vmul.f32 0.044715, %v789_v60  ;;  %2828 = vst [vmem:[%s3942_s17 + $0x400] sm:$0xff] %v2572_v8  ;;  %v2573_v22 = vmul.f32 %v2317_v7, %v4973_v33  ;;  %v2319_v42 = vmul.f32 0.5, %v2063_v20  ;;  %3384 = vtanh.f32 %v1554_v50 }
 0x15b   : > { %v790_v17 = vmul.f32 %v534_v44, %v5048_v37  ;;  %v2574_v29 = vmul.f32 %v2318_v11, %v4976_v16  ;;  %3386 = vtanh.f32 %v1555_v13  ;;  %v1556_v28 = vmul.f32 0.7978846, %v1300_v5  ;;  %v5120_v11 = vld [vmem:[%s3832_s24 + $0x488] sm:$0xff] }
 0x15c   : > { %v1301_v27 = vadd.f32 %v1045_v12, %v5042_v38  ;;  %v3381_v23 = vpop.eup %3380  ;;  %2829 = vst [vmem:[%s3942_s17 + $0x408] sm:$0xff] %v2573_v22  ;;  %v2575_v33 = vmul.f32 %v2319_v42, %v4983_v47  ;;  %v535_v30 = vmul.f32 %v5070_v21, %v5070_v21  ;;  %v536_v48 = vmul.f32 %v5073_v59, %v5073_v59 }
 0x15d   : > { %v1046_v18 = vmul.f32 0.044715, %v790_v17  ;;  %2830 = vst [vmem:[%s3942_s17 + $0x410] sm:$0xff] %v2574_v29  ;;  %v2064_v16 = vadd.f32 1.0, %v3381_v23  ;;  %3388 = vtanh.f32 %v1556_v28  ;;  %v537_v46 = vmul.f32 %v5079_v26, %v5079_v26  ;;  %v5129_v17 = vld [vmem:[%s3832_s24 + $0x490] sm:$0xff]  ;;  %v5132_v29 = vld [vmem:[%s3832_s24 + $0x498] sm:$0xff] }
 0x15e   : > { %v1557_v45 = vmul.f32 0.7978846, %v1301_v27  ;;  %2831 = vst [vmem:[%s3942_s17 + $0x418] sm:$0xff] %v2575_v33  ;;  %v791_v47 = vmul.f32 %v535_v30, %v5070_v21  ;;  %v792_v40 = vmul.f32 %v536_v48, %v5073_v59  ;;  %v538_v41 = vmul.f32 %v5084_v25, %v5084_v25  ;;  %v5139_v33 = vld [vmem:[%s3832_s24 + $0x4a0] sm:$0xff] }
 0x15f   : > { %v1302_v35 = vadd.f32 %v1046_v18, %v5048_v37  ;;  %v3383_v39 = vpop.eup %3382  ;;  %v2320_v49 = vmul.f32 0.5, %v2064_v16  ;;  %v793_v31 = vmul.f32 %v537_v46, %v5079_v26  ;;  %v539_v0 = vmul.f32 %v5093_v36, %v5093_v36  ;;  %v5143_v16 = vld [vmem:[%s3832_s24 + $0x4a8] sm:$0xff] }
 0x160   : > { %3390 = vtanh.f32 %v1557_v45  ;;  %v3385_v56 = vpop.eup %3384  ;;  %v2065_v55 = vadd.f32 1.0, %v3383_v39  ;;  %v1047_v2 = vmul.f32 0.044715, %v791_v47  ;;  %v794_v44 = vmul.f32 %v538_v41, %v5084_v25 }
 0x161   : > { %v1558_v51 = vmul.f32 0.7978846, %v1302_v35  ;;  %v3387_v63 = vpop.eup %3386  ;;  %v2576_v1 = vmul.f32 %v2320_v49, %v4986_v54  ;;  %v2066_v61 = vadd.f32 1.0, %v3385_v56  ;;  %v1048_v60 = vmul.f32 0.044715, %v792_v40 }
 0x162   : > { %v1049_v34 = vmul.f32 0.044715, %v793_v31  ;;  %v2321_v3 = vmul.f32 0.5, %v2065_v55  ;;  %v2067_v9 = vadd.f32 1.0, %v3387_v63  ;;  %v1303_v10 = vadd.f32 %v1047_v2, %v5070_v21 }
 0x163   : > { %3392 = vtanh.f32 %v1558_v51  ;;  %v3389_v6 = vpop.eup %3388  ;;  %2832 = vst [vmem:[%s3942_s17 + $0x420] sm:$0xff] %v2576_v1  ;;  %v2322_v52 = vmul.f32 0.5, %v2066_v61  ;;  %v1304_v14 = vadd.f32 %v1048_v60, %v5073_v59  ;;  %v1050_v43 = vmul.f32 0.044715, %v794_v44 }
 0x164   : > { %v1305_v4 = vadd.f32 %v1049_v34, %v5079_v26  ;;  %v2577_v54 = vmul.f32 %v2321_v3, %v5019_v24  ;;  %v2323_v58 = vmul.f32 0.5, %v2067_v9  ;;  %v2068_v19 = vadd.f32 1.0, %v3389_v6 }
 0x165   : > { %v1559_v53 = vmul.f32 0.7978846, %v1303_v10  ;;  %v2578_v8 = vmul.f32 %v2322_v52, %v5022_v62  ;;  %v1560_v7 = vmul.f32 0.7978846, %v1304_v14  ;;  %v1306_v13 = vadd.f32 %v1050_v43, %v5084_v25 }
 0x166   : > { %v3391_v50 = vpop.eup %3390  ;;  %v1561_v20 = vmul.f32 0.7978846, %v1305_v4  ;;  %2833 = vst [vmem:[%s3942_s17 + $0x428] sm:$0xff] %v2577_v54  ;;  %v2579_v24 = vmul.f32 %v2323_v58, %v5025_v57  ;;  %v2324_v5 = vmul.f32 0.5, %v2068_v19  ;;  %v795_v62 = vmul.f32 %v539_v0, %v5093_v36 }
 0x167   : > { %v2069_v12 = vadd.f32 1.0, %v3391_v50  ;;  %3394 = vtanh.f32 %v1559_v53  ;;  %2834 = vst [vmem:[%s3942_s17 + $0x430] sm:$0xff] %v2578_v8  ;;  %v1562_v22 = vmul.f32 0.7978846, %v1306_v13  ;;  %v540_v42 = vmul.f32 %v5115_v15, %v5115_v15  ;;  %v5168_v53 = vld [vmem:[%s3832_s24 + $0x4b0] sm:$0xff]  ;;  %v5171_v50 = vld [vmem:[%s3832_s24 + $0x4b8] sm:$0xff] }
 0x168   : > { %3396 = vtanh.f32 %v1560_v7  ;;  %2835 = vst [vmem:[%s3942_s17 + $0x438] sm:$0xff] %v2579_v24  ;;  %v2580_v57 = vmul.f32 %v2324_v5, %v5029_v32  ;;  %v541_v23 = vmul.f32 %v5120_v11, %v5120_v11  ;;  %v1051_v30 = vmul.f32 0.044715, %v795_v62  ;;  %v5175_v13 = vld [vmem:[%s3832_s24 + $0x4c0] sm:$0xff] }
 0x169   : > { %v3393_v28 = vpop.eup %3392  ;;  %v2325_v27 = vmul.f32 0.5, %v2069_v12  ;;  %3398 = vtanh.f32 %v1561_v20  ;;  %v796_v48 = vmul.f32 %v540_v42, %v5115_v15  ;;  %v542_v46 = vmul.f32 %v5129_v17, %v5129_v17 }
 0x16a   : > { %v2070_v18 = vadd.f32 1.0, %v3393_v28  ;;  %3400 = vtanh.f32 %v1562_v22  ;;  %2836 = vst [vmem:[%s3942_s17 + $0x440] sm:$0xff] %v2580_v57  ;;  %v797_v32 = vmul.f32 %v541_v23, %v5120_v11  ;;  %v543_v35 = vmul.f32 %v5132_v29, %v5132_v29  ;;  %v5182_v22 = vld [vmem:[%s3832_s24 + $0x4c8] sm:$0xff]  ;;  %v5191_v28 = vld [vmem:[%s3832_s24 + $0x4d0] sm:$0xff] }
 0x16b   : > { %v2581_v45 = vmul.f32 %v2325_v27, %v5042_v38  ;;  %v1307_v40 = vadd.f32 %v1051_v30, %v5093_v36  ;;  %v1052_v41 = vmul.f32 0.044715, %v796_v48  ;;  %v544_v39 = vmul.f32 %v5139_v33, %v5139_v33 }
 0x16c   : > { %v2326_v47 = vmul.f32 0.5, %v2070_v18  ;;  %v1053_v31 = vmul.f32 0.044715, %v797_v32  ;;  %v798_v38 = vmul.f32 %v542_v46, %v5129_v17  ;;  %v799_v0 = vmul.f32 %v543_v35, %v5132_v29 }
 0x16d   : > { %v3395_v49 = vpop.eup %3394  ;;  %2837 = vst [vmem:[%s3942_s17 + $0x448] sm:$0xff] %v2581_v45  ;;  %v545_v56 = vmul.f32 %v5143_v16, %v5143_v16  ;;  %v1563_v44 = vmul.f32 0.7978846, %v1307_v40  ;;  %v1308_v63 = vadd.f32 %v1052_v41, %v5115_v15  ;;  %v800_v5 = vmul.f32 %v544_v39, %v5139_v33 }
 0x16e   : > { %v3397_v55 = vpop.eup %3396  ;;  %v2582_v51 = vmul.f32 %v2326_v47, %v5048_v37  ;;  %v2071_v2 = vadd.f32 1.0, %v3395_v49  ;;  %v1309_v60 = vadd.f32 %v1053_v31, %v5120_v11  ;;  %v1054_v34 = vmul.f32 0.044715, %v798_v38 }
 0x16f   : > { %v3399_v1 = vpop.eup %3398  ;;  %v2072_v61 = vadd.f32 1.0, %v3397_v55  ;;  %v1055_v3 = vmul.f32 0.044715, %v799_v0  ;;  %3402 = vtanh.f32 %v1563_v44  ;;  %v1564_v52 = vmul.f32 0.7978846, %v1308_v63 }
 0x170   : > { %v3401_v9 = vpop.eup %3400  ;;  %2838 = vst [vmem:[%s3942_s17 + $0x450] sm:$0xff] %v2582_v51  ;;  %v2327_v10 = vmul.f32 0.5, %v2071_v2  ;;  %v2073_v6 = vadd.f32 1.0, %v3399_v1  ;;  %v1565_v4 = vmul.f32 0.7978846, %v1309_v60  ;;  %v1310_v43 = vadd.f32 %v1054_v34, %v5129_v17 }
 0x171   : > { %v2328_v37 = vmul.f32 0.5, %v2072_v61  ;;  %v2074_v14 = vadd.f32 1.0, %v3401_v9  ;;  %3404 = vtanh.f32 %v1564_v52  ;;  %v1311_v19 = vadd.f32 %v1055_v3, %v5132_v29 }
 0x172   : > { %v2583_v54 = vmul.f32 %v2327_v10, %v5070_v21  ;;  %v2329_v58 = vmul.f32 0.5, %v2073_v6  ;;  %3406 = vtanh.f32 %v1565_v4  ;;  %v1566_v20 = vmul.f32 0.7978846, %v1310_v43  ;;  %v5213_v6 = vld [vmem:[%s3832_s24 + $0x4d8] sm:$0xff]  ;;  %v5218_v43 = vld [vmem:[%s3832_s24 + $0x4e0] sm:$0xff] }
 0x173   : > { %v2584_v8 = vmul.f32 %v2328_v37, %v5073_v59  ;;  %v2330_v7 = vmul.f32 0.5, %v2074_v14  ;;  %v1567_v24 = vmul.f32 0.7978846, %v1311_v19  ;;  %v801_v12 = vmul.f32 %v545_v56, %v5143_v16  ;;  %v5223_v19 = vld [vmem:[%s3832_s24 + $0x4e8] sm:$0xff] }
 0x174   : > { %2839 = vst [vmem:[%s3942_s17 + $0x458] sm:$0xff] %v2583_v54  ;;  %v2585_v21 = vmul.f32 %v2329_v58, %v5079_v26  ;;  %3408 = vtanh.f32 %v1566_v20  ;;  %v546_v62 = vmul.f32 %v5168_v53, %v5168_v53  ;;  %v547_v42 = vmul.f32 %v5171_v50, %v5171_v50 }
 0x175   : > { %2840 = vst [vmem:[%s3942_s17 + $0x460] sm:$0xff] %v2584_v8  ;;  %v2586_v59 = vmul.f32 %v2330_v7, %v5084_v25  ;;  %v3403_v26 = vpop.eup %3402  ;;  %3410 = vtanh.f32 %v1567_v24  ;;  %v1056_v57 = vmul.f32 0.044715, %v800_v5  ;;  %v1057_v27 = vmul.f32 0.044715, %v801_v12  ;;  %v5226_v8 = vld [vmem:[%s3832_s24 + $0x4f0] sm:$0xff] }
 0x176   : > { %2841 = vst [vmem:[%s3942_s17 + $0x468] sm:$0xff] %v2585_v21  ;;  %v548_v23 = vmul.f32 %v5175_v13, %v5175_v13  ;;  %v2075_v18 = vadd.f32 1.0, %v3403_v26  ;;  %v802_v25 = vmul.f32 %v546_v62, %v5168_v53  ;;  %v803_v30 = vmul.f32 %v547_v42, %v5171_v50 }
 0x177   : > { %2842 = vst [vmem:[%s3942_s17 + $0x470] sm:$0xff] %v2586_v59  ;;  %v549_v48 = vmul.f32 %v5182_v22, %v5182_v22  ;;  %v3405_v45 = vpop.eup %3404  ;;  %v1312_v32 = vadd.f32 %v1056_v57, %v5139_v33  ;;  %v1313_v46 = vadd.f32 %v1057_v27, %v5143_v16  ;;  %v550_v47 = vmul.f32 %v5191_v28, %v5191_v28 }
 0x178   : > { %v804_v35 = vmul.f32 %v548_v23, %v5175_v13  ;;  %v3407_v40 = vpop.eup %3406  ;;  %v2331_v41 = vmul.f32 0.5, %v2075_v18  ;;  %v2076_v39 = vadd.f32 1.0, %v3405_v45  ;;  %v1058_v49 = vmul.f32 0.044715, %v802_v25 }
 0x179   : > { %v1059_v31 = vmul.f32 0.044715, %v803_v30  ;;  %v2077_v38 = vadd.f32 1.0, %v3407_v40  ;;  %v1568_v0 = vmul.f32 0.7978846, %v1312_v32  ;;  %v805_v55 = vmul.f32 %v549_v48, %v5182_v22 }
 0x17a   : > { %v1569_v56 = vmul.f32 0.7978846, %v1313_v46  ;;  %v3409_v51 = vpop.eup %3408  ;;  %v2587_v2 = vmul.f32 %v2331_v41, %v5093_v36  ;;  %v2332_v44 = vmul.f32 0.5, %v2076_v39  ;;  %v1314_v63 = vadd.f32 %v1058_v49, %v5168_v53 }
 0x17b   : > { %v1315_v1 = vadd.f32 %v1059_v31, %v5171_v50  ;;  %v3411_v61 = vpop.eup %3410  ;;  %v2333_v60 = vmul.f32 0.5, %v2077_v38  ;;  %v2078_v34 = vadd.f32 1.0, %v3409_v51  ;;  %3412 = vtanh.f32 %v1568_v0  ;;  %v5249_v31 = vld [vmem:[%s3832_s24 + $0x4f8] sm:$0xff] }
 0x17c   : > { %v1060_v3 = vmul.f32 0.044715, %v804_v35  ;;  %2843 = vst [vmem:[%s3942_s17 + $0x478] sm:$0xff] %v2587_v2  ;;  %v2588_v9 = vmul.f32 %v2332_v44, %v5115_v15  ;;  %v2079_v10 = vadd.f32 1.0, %v3411_v61  ;;  %3414 = vtanh.f32 %v1569_v56 }
 0x17d   : > { %v1570_v36 = vmul.f32 0.7978846, %v1314_v63  ;;  %v2589_v52 = vmul.f32 %v2333_v60, %v5120_v11  ;;  %v2334_v37 = vmul.f32 0.5, %v2078_v34  ;;  %v1571_v14 = vmul.f32 0.7978846, %v1315_v1  ;;  %v5256_v1 = vld [vmem:[%s3832_s24 + $0x500] sm:$0xff] }
 0x17e   : > { %v1316_v4 = vadd.f32 %v1060_v3, %v5175_v13  ;;  %2844 = vst [vmem:[%s3942_s17 + $0x480] sm:$0xff] %v2588_v9  ;;  %v2335_v54 = vmul.f32 0.5, %v2079_v10  ;;  %v1061_v15 = vmul.f32 0.044715, %v805_v55  ;;  %v806_v58 = vmul.f32 %v550_v47, %v5191_v28  ;;  %v5262_v3 = vld [vmem:[%s3832_s24 + $0x508] sm:$0xff] }
 0x17f   : > { %3416 = vtanh.f32 %v1570_v36  ;;  %2845 = vst [vmem:[%s3942_s17 + $0x488] sm:$0xff] %v2589_v52  ;;  %v2590_v11 = vmul.f32 %v2334_v37, %v5129_v17  ;;  %v551_v20 = vmul.f32 %v5213_v6, %v5213_v6  ;;  %v552_v12 = vmul.f32 %v5218_v43, %v5218_v43  ;;  %v5267_v36 = vld [vmem:[%s3832_s24 + $0x510] sm:$0xff] }
 0x180   : > { %3418 = vtanh.f32 %v1571_v14  ;;  %v1572_v7 = vmul.f32 0.7978846, %v1316_v4  ;;  %v2591_v21 = vmul.f32 %v2335_v54, %v5132_v29  ;;  %v1317_v24 = vadd.f32 %v1061_v15, %v5182_v22 }
 0x181   : > { %v1062_v5 = vmul.f32 0.044715, %v806_v58  ;;  %v3413_v59 = vpop.eup %3412  ;;  %2846 = vst [vmem:[%s3942_s17 + $0x490] sm:$0xff] %v2590_v11  ;;  %v807_v62 = vmul.f32 %v551_v20, %v5213_v6  ;;  %v553_v17 = vmul.f32 %v5223_v19, %v5223_v19  ;;  %v554_v42 = vmul.f32 %v5226_v8, %v5226_v8  ;;  %v5276_v58 = vld [vmem:[%s3832_s24 + $0x518] sm:$0xff] }
 0x182   : > { %3420 = vtanh.f32 %v1572_v7  ;;  %v3415_v26 = vpop.eup %3414  ;;  %2847 = vst [vmem:[%s3942_s17 + $0x498] sm:$0xff] %v2591_v21  ;;  %v2080_v29 = vadd.f32 1.0, %v3413_v59  ;;  %v1573_v57 = vmul.f32 0.7978846, %v1317_v24  ;;  %v808_v23 = vmul.f32 %v552_v12, %v5218_v43 }
 0x183   : > { %v1318_v27 = vadd.f32 %v1062_v5, %v5191_v28  ;;  %v2081_v18 = vadd.f32 1.0, %v3415_v26  ;;  %v1063_v25 = vmul.f32 0.044715, %v807_v62  ;;  %v809_v30 = vmul.f32 %v553_v17, %v5223_v19 }
 0x184   : > { %v810_v48 = vmul.f32 %v554_v42, %v5226_v8  ;;  %v2336_v32 = vmul.f32 0.5, %v2080_v29  ;;  %3422 = vtanh.f32 %v1573_v57  ;;  %v1064_v35 = vmul.f32 0.044715, %v808_v23 }
 0x185   : > { %v3417_v45 = vpop.eup %3416  ;;  %v1574_v46 = vmul.f32 0.7978846, %v1318_v27  ;;  %v2337_v40 = vmul.f32 0.5, %v2081_v18  ;;  %v1319_v39 = vadd.f32 %v1063_v25, %v5213_v6  ;;  %v1065_v49 = vmul.f32 0.044715, %v809_v30 }
 0x186   : > { %v3419_v47 = vpop.eup %3418  ;;  %v2082_v41 = vadd.f32 1.0, %v3417_v45  ;;  %v2592_v38 = vmul.f32 %v2336_v32, %v5139_v33  ;;  %v1320_v56 = vadd.f32 %v1064_v35, %v5218_v43  ;;  %v555_v34 = vmul.f32 %v5249_v31, %v5249_v31 }
 0x187   : > { %v2083_v0 = vadd.f32 1.0, %v3419_v47  ;;  %3424 = vtanh.f32 %v1574_v46  ;;  %v2593_v51 = vmul.f32 %v2337_v40, %v5143_v16  ;;  %v1575_v44 = vmul.f32 0.7978846, %v1319_v39 }
 0x188   : > { %v3421_v55 = vpop.eup %3420  ;;  %v2338_v2 = vmul.f32 0.5, %v2082_v41  ;;  %v1321_v63 = vadd.f32 %v1065_v49, %v5223_v19  ;;  %2848 = vst [vmem:[%s3942_s17 + $0x4a0] sm:$0xff] %v2592_v38  ;;  %v1576_v33 = vmul.f32 0.7978846, %v1320_v56  ;;  %v1066_v10 = vmul.f32 0.044715, %v810_v48 }
 0x189   : > { %v2339_v61 = vmul.f32 0.5, %v2083_v0  ;;  %v2084_v60 = vadd.f32 1.0, %v3421_v55  ;;  %2849 = vst [vmem:[%s3942_s17 + $0x4a8] sm:$0xff] %v2593_v51  ;;  %3426 = vtanh.f32 %v1575_v44  ;;  %v811_v4 = vmul.f32 %v555_v34, %v5249_v31  ;;  %v5306_v44 = vld [vmem:[%s3832_s24 + $0x528] sm:$0xff] }
 0x18a   : > { %v2594_v16 = vmul.f32 %v2338_v2, %v5168_v53  ;;  %v1577_v9 = vmul.f32 0.7978846, %v1321_v63  ;;  %v3423_v52 = vpop.eup %3422  ;;  %3428 = vtanh.f32 %v1576_v33  ;;  %v1322_v15 = vadd.f32 %v1066_v10, %v5226_v8  ;;  %v5309_v63 = vld [vmem:[%s3832_s24 + $0x530] sm:$0xff] }
 0x18b   : > { %v2595_v37 = vmul.f32 %v2339_v61, %v5171_v50  ;;  %v2340_v14 = vmul.f32 0.5, %v2084_v60  ;;  %v2085_v54 = vadd.f32 1.0, %v3423_v52  ;;  %v556_v53 = vmul.f32 %v5256_v1, %v5256_v1 }
 0x18c   : > { %2850 = vst [vmem:[%s3942_s17 + $0x4b0] sm:$0xff] %v2594_v16  ;;  %3430 = vtanh.f32 %v1577_v9  ;;  %v1067_v50 = vmul.f32 0.044715, %v811_v4  ;;  %v557_v20 = vmul.f32 %v5262_v3, %v5262_v3  ;;  %v558_v21 = vmul.f32 %v5267_v36, %v5267_v36  ;;  %v5314_v16 = vld [vmem:[%s3832_s24 + $0x538] sm:$0xff] }
 0x18d   : > { %v3425_v11 = vpop.eup %3424  ;;  %2851 = vst [vmem:[%s3942_s17 + $0x4b8] sm:$0xff] %v2595_v37  ;;  %v2596_v7 = vmul.f32 %v2340_v14, %v5175_v13  ;;  %v2341_v24 = vmul.f32 0.5, %v2085_v54  ;;  %v1578_v12 = vmul.f32 0.7978846, %v1322_v15  ;;  %v812_v59 = vmul.f32 %v556_v53, %v5256_v1 }
 0x18e   : > { %v2086_v5 = vadd.f32 1.0, %v3425_v11  ;;  %v1323_v62 = vadd.f32 %v1067_v50, %v5249_v31  ;;  %v813_v17 = vmul.f32 %v557_v20, %v5262_v3  ;;  %v814_v13 = vmul.f32 %v558_v21, %v5267_v36  ;;  %v5333_v11 = vld [vmem:[%s3832_s24 + $0x548] sm:$0xff]  ;;  %v5338_v21 = vld [vmem:[%s3832_s24 + $0x550] sm:$0xff] }
 0x18f   : > { %2852 = vst [vmem:[%s3942_s17 + $0x4c0] sm:$0xff] %v2596_v7  ;;  %v559_v42 = vmul.f32 %v5276_v58, %v5276_v58  ;;  %v3427_v26 = vpop.eup %3426  ;;  %v2597_v29 = vmul.f32 %v2341_v24, %v5182_v22  ;;  %3432 = vtanh.f32 %v1578_v12  ;;  %v1068_v27 = vmul.f32 0.044715, %v812_v59  ;;  %v5297_v22 = vld [vmem:[%s3832_s24 + $0x520] sm:$0xff] }
 0x190   : > { %v2342_v57 = vmul.f32 0.5, %v2086_v5  ;;  %v3429_v23 = vpop.eup %3428  ;;  %v2087_v18 = vadd.f32 1.0, %v3427_v26  ;;  %v1579_v25 = vmul.f32 0.7978846, %v1323_v62  ;;  %v1069_v30 = vmul.f32 0.044715, %v813_v17 }
 0x191   : > { %v815_v48 = vmul.f32 %v559_v42, %v5276_v58  ;;  %2853 = vst [vmem:[%s3942_s17 + $0x4c8] sm:$0xff] %v2597_v29  ;;  %v2088_v46 = vadd.f32 1.0, %v3429_v23  ;;  %v1324_v35 = vadd.f32 %v1068_v27, %v5256_v1  ;;  %v1070_v47 = vmul.f32 0.044715, %v814_v13 }
 0x192   : > { %v3431_v45 = vpop.eup %3430  ;;  %v2598_v32 = vmul.f32 %v2342_v57, %v5191_v28  ;;  %v2343_v40 = vmul.f32 0.5, %v2087_v18  ;;  %3434 = vtanh.f32 %v1579_v25  ;;  %v1325_v39 = vadd.f32 %v1069_v30, %v5262_v3 }
 0x193   : > { %v2089_v41 = vadd.f32 1.0, %v3431_v45  ;;  %v2344_v49 = vmul.f32 0.5, %v2088_v46  ;;  %v1580_v38 = vmul.f32 0.7978846, %v1324_v35  ;;  %v1326_v28 = vadd.f32 %v1070_v47, %v5267_v36 }
 0x194   : > { %2854 = vst [vmem:[%s3942_s17 + $0x4d0] sm:$0xff] %v2598_v32  ;;  %v1071_v0 = vmul.f32 0.044715, %v815_v48  ;;  %v2599_v56 = vmul.f32 %v2343_v40, %v5213_v6  ;;  %v1581_v51 = vmul.f32 0.7978846, %v1325_v39  ;;  %v560_v2 = vmul.f32 %v5297_v22, %v5297_v22  ;;  %v5317_v6 = vld [vmem:[%s3832_s24 + $0x540] sm:$0xff] }
 0x195   : > { %v2345_v55 = vmul.f32 0.5, %v2089_v41  ;;  %v3433_v61 = vpop.eup %3432  ;;  %v2600_v60 = vmul.f32 %v2344_v49, %v5218_v43  ;;  %3436 = vtanh.f32 %v1580_v38  ;;  %v1582_v33 = vmul.f32 0.7978846, %v1326_v28 }
 0x196   : > { %v1327_v34 = vadd.f32 %v1071_v0, %v5276_v58  ;;  %2855 = vst [vmem:[%s3942_s17 + $0x4d8] sm:$0xff] %v2599_v56  ;;  %v2090_v10 = vadd.f32 1.0, %v3433_v61  ;;  %3438 = vtanh.f32 %v1581_v51  ;;  %v816_v52 = vmul.f32 %v560_v2, %v5297_v22  ;;  %v5357_v56 = vld [vmem:[%s3832_s24 + $0x558] sm:$0xff]  ;;  %v5361_v61 = vld [vmem:[%s3832_s24 + $0x560] sm:$0xff] }
 0x197   : > { %v2601_v9 = vmul.f32 %v2345_v55, %v5223_v19  ;;  %2856 = vst [vmem:[%s3942_s17 + $0x4e0] sm:$0xff] %v2600_v60  ;;  %3440 = vtanh.f32 %v1582_v33  ;;  %v561_v37 = vmul.f32 %v5306_v44, %v5306_v44  ;;  %v562_v14 = vmul.f32 %v5309_v63, %v5309_v63  ;;  %v5364_v60 = vld [vmem:[%s3832_s24 + $0x568] sm:$0xff] }
 0x198   : > { %v1583_v43 = vmul.f32 0.7978846, %v1327_v34  ;;  %v3435_v4 = vpop.eup %3434  ;;  %v2346_v54 = vmul.f32 0.5, %v2090_v10  ;;  %v1072_v15 = vmul.f32 0.044715, %v816_v52  ;;  %v563_v19 = vmul.f32 %v5314_v16, %v5314_v16  ;;  %v5375_v52 = vld [vmem:[%s3832_s24 + $0x570] sm:$0xff] }
 0x199   : > { %2857 = vst [vmem:[%s3942_s17 + $0x4e8] sm:$0xff] %v2601_v9  ;;  %v564_v53 = vmul.f32 %v5317_v6, %v5317_v6  ;;  %v2091_v7 = vadd.f32 1.0, %v3435_v4  ;;  %v817_v50 = vmul.f32 %v561_v37, %v5306_v44  ;;  %v818_v20 = vmul.f32 %v562_v14, %v5309_v63 }
 0x19a   : > { %3442 = vtanh.f32 %v1583_v43  ;;  %v2602_v24 = vmul.f32 %v2346_v54, %v5226_v8  ;;  %v1328_v5 = vadd.f32 %v1072_v15, %v5297_v22  ;;  %v819_v12 = vmul.f32 %v563_v19, %v5314_v16  ;;  %v5384_v54 = vld [vmem:[%s3832_s24 + $0x578] sm:$0xff] }
 0x19b   : > { %v820_v59 = vmul.f32 %v564_v53, %v5317_v6  ;;  %v3437_v62 = vpop.eup %3436  ;;  %v2347_v17 = vmul.f32 0.5, %v2091_v7  ;;  %v1073_v13 = vmul.f32 0.044715, %v817_v50  ;;  %v1074_v42 = vmul.f32 0.044715, %v818_v20 }
 0x19c   : > { %v565_v26 = vmul.f32 %v5333_v11, %v5333_v11  ;;  %v3439_v29 = vpop.eup %3438  ;;  %2858 = vst [vmem:[%s3942_s17 + $0x4f0] sm:$0xff] %v2602_v24  ;;  %v2092_v57 = vadd.f32 1.0, %v3437_v62  ;;  %v1584_v27 = vmul.f32 0.7978846, %v1328_v5  ;;  %v1075_v23 = vmul.f32 0.044715, %v819_v12 }
 0x19d   : > { %v566_v8 = vmul.f32 %v5338_v21, %v5338_v21  ;;  %v3441_v18 = vpop.eup %3440  ;;  %v2603_v25 = vmul.f32 %v2347_v17, %v5249_v31  ;;  %v2093_v30 = vadd.f32 1.0, %v3439_v29  ;;  %v1329_v48 = vadd.f32 %v1073_v13, %v5306_v44 }
 0x19e   : > { %v1330_v45 = vadd.f32 %v1074_v42, %v5309_v63  ;;  %v2348_v32 = vmul.f32 0.5, %v2092_v57  ;;  %v2094_v46 = vadd.f32 1.0, %v3441_v18  ;;  %3444 = vtanh.f32 %v1584_v27 }
 0x19f   : > { %v1331_v35 = vadd.f32 %v1075_v23, %v5314_v16  ;;  %2859 = vst [vmem:[%s3942_s17 + $0x4f8] sm:$0xff] %v2603_v25  ;;  %v2349_v40 = vmul.f32 0.5, %v2093_v30  ;;  %v1585_v41 = vmul.f32 0.7978846, %v1329_v48  ;;  %v821_v31 = vmul.f32 %v565_v26, %v5333_v11 }
 0x1a0   : > { %v3443_v47 = vpop.eup %3442  ;;  %v1586_v39 = vmul.f32 0.7978846, %v1330_v45  ;;  %v2604_v49 = vmul.f32 %v2348_v32, %v5256_v1  ;;  %v2350_v38 = vmul.f32 0.5, %v2094_v46  ;;  %v1076_v51 = vmul.f32 0.044715, %v820_v59 }
 0x1a1   : > { %v2095_v28 = vadd.f32 1.0, %v3443_v47  ;;  %v1587_v0 = vmul.f32 0.7978846, %v1331_v35  ;;  %v2605_v55 = vmul.f32 %v2349_v40, %v5262_v3  ;;  %3446 = vtanh.f32 %v1585_v41  ;;  %v5404_v41 = vld [vmem:[%s3832_s24 + $0x580] sm:$0xff] }
 0x1a2   : > { %v1077_v2 = vmul.f32 0.044715, %v821_v31  ;;  %2860 = vst [vmem:[%s3942_s17 + $0x500] sm:$0xff] %v2604_v49  ;;  %v2606_v1 = vmul.f32 %v2350_v38, %v5267_v36  ;;  %3448 = vtanh.f32 %v1586_v39  ;;  %v822_v34 = vmul.f32 %v566_v8, %v5338_v21 }
 0x1a3   : > { %v2351_v33 = vmul.f32 0.5, %v2095_v28  ;;  %2861 = vst [vmem:[%s3942_s17 + $0x508] sm:$0xff] %v2605_v55  ;;  %3450 = vtanh.f32 %v1587_v0  ;;  %v1332_v3 = vadd.f32 %v1076_v51, %v5317_v6  ;;  %v567_v10 = vmul.f32 %v5357_v56, %v5357_v56  ;;  %v5408_v28 = vld [vmem:[%s3832_s24 + $0x588] sm:$0xff]  ;;  %v5411_v0 = vld [vmem:[%s3832_s24 + $0x590] sm:$0xff] }
 0x1a4   : > { %v1333_v9 = vadd.f32 %v1077_v2, %v5333_v11  ;;  %v3445_v43 = vpop.eup %3444  ;;  %2862 = vst [vmem:[%s3942_s17 + $0x510] sm:$0xff] %v2606_v1  ;;  %v1078_v37 = vmul.f32 0.044715, %v822_v34  ;;  %v568_v14 = vmul.f32 %v5361_v61, %v5361_v61  ;;  %v569_v4 = vmul.f32 %v5364_v60, %v5364_v60 }
 0x1a5   : > { %v2607_v36 = vmul.f32 %v2351_v33, %v5276_v58  ;;  %v2096_v15 = vadd.f32 1.0, %v3445_v43  ;;  %v1588_v19 = vmul.f32 0.7978846, %v1332_v3  ;;  %v823_v7 = vmul.f32 %v567_v10, %v5357_v56 }
 0x1a6   : > { %v1589_v53 = vmul.f32 0.7978846, %v1333_v9  ;;  %v1334_v50 = vadd.f32 %v1078_v37, %v5338_v21  ;;  %v824_v20 = vmul.f32 %v568_v14, %v5361_v61  ;;  %v825_v58 = vmul.f32 %v569_v4, %v5364_v60 }
 0x1a7   : > { %2863 = vst [vmem:[%s3942_s17 + $0x518] sm:$0xff] %v2607_v36  ;;  %v570_v24 = vmul.f32 %v5375_v52, %v5375_v52  ;;  %v3447_v5 = vpop.eup %3446  ;;  %v2352_v12 = vmul.f32 0.5, %v2096_v15  ;;  %3452 = vtanh.f32 %v1588_v19  ;;  %v1079_v59 = vmul.f32 0.044715, %v823_v7  ;;  %v5430_v7 = vld [vmem:[%s3832_s24 + $0x598] sm:$0xff] }
 0x1a8   : > { %v571_v62 = vmul.f32 %v5384_v54, %v5384_v54  ;;  %v3449_v17 = vpop.eup %3448  ;;  %v2097_v13 = vadd.f32 1.0, %v3447_v5  ;;  %3454 = vtanh.f32 %v1589_v53  ;;  %v1590_v42 = vmul.f32 0.7978846, %v1334_v50  ;;  %v5434_v5 = vld [vmem:[%s3832_s24 + $0x5a0] sm:$0xff] }
 0x1a9   : > { %v1080_v26 = vmul.f32 0.044715, %v824_v20  ;;  %v3451_v29 = vpop.eup %3450  ;;  %v2608_v57 = vmul.f32 %v2352_v12, %v5297_v22  ;;  %v2098_v27 = vadd.f32 1.0, %v3449_v17  ;;  %v1335_v23 = vadd.f32 %v1079_v59, %v5357_v56 }
 0x1aa   : > { %v1081_v8 = vmul.f32 0.044715, %v825_v58  ;;  %v2353_v18 = vmul.f32 0.5, %v2097_v13  ;;  %v2099_v25 = vadd.f32 1.0, %v3451_v29  ;;  %3456 = vtanh.f32 %v1590_v42 }
 0x1ab   : > { %v1336_v30 = vadd.f32 %v1080_v26, %v5361_v61  ;;  %2864 = vst [vmem:[%s3942_s17 + $0x520] sm:$0xff] %v2608_v57  ;;  %v2354_v48 = vmul.f32 0.5, %v2098_v27  ;;  %v1591_v45 = vmul.f32 0.7978846, %v1335_v23  ;;  %v826_v22 = vmul.f32 %v570_v24, %v5375_v52 }
 0x1ac   : > { %v1337_v32 = vadd.f32 %v1081_v8, %v5364_v60  ;;  %v2609_v46 = vmul.f32 %v2353_v18, %v5306_v44  ;;  %v2355_v35 = vmul.f32 0.5, %v2099_v25  ;;  %v827_v40 = vmul.f32 %v571_v62, %v5384_v54 }
 0x1ad   : > { %v1592_v47 = vmul.f32 0.7978846, %v1336_v30  ;;  %v3453_v39 = vpop.eup %3452  ;;  %v2610_v31 = vmul.f32 %v2354_v48, %v5309_v63  ;;  %3458 = vtanh.f32 %v1591_v45  ;;  %v1082_v38 = vmul.f32 0.044715, %v826_v22  ;;  %v5449_v30 = vld [vmem:[%s3832_s24 + $0x5a8] sm:$0xff] }
 0x1ae   : > { %v1593_v49 = vmul.f32 0.7978846, %v1337_v32  ;;  %v3455_v55 = vpop.eup %3454  ;;  %2865 = vst [vmem:[%s3942_s17 + $0x528] sm:$0xff] %v2609_v46  ;;  %v2611_v44 = vmul.f32 %v2355_v35, %v5314_v16  ;;  %v2100_v51 = vadd.f32 1.0, %v3453_v39  ;;  %v1083_v2 = vmul.f32 0.044715, %v827_v40 }
 0x1af   : > { %3460 = vtanh.f32 %v1592_v47  ;;  %2866 = vst [vmem:[%s3942_s17 + $0x530] sm:$0xff] %v2610_v31  ;;  %v2101_v1 = vadd.f32 1.0, %v3455_v55  ;;  %v1338_v63 = vadd.f32 %v1082_v38, %v5375_v52  ;;  %v572_v33 = vmul.f32 %v5404_v41, %v5404_v41  ;;  %v5455_v39 = vld [vmem:[%s3832_s24 + $0x5b0] sm:$0xff]  ;;  %v5458_v31 = vld [vmem:[%s3832_s24 + $0x5b8] sm:$0xff] }
 0x1b0   : > { %3462 = vtanh.f32 %v1593_v49  ;;  %v3457_v34 = vpop.eup %3456  ;;  %2867 = vst [vmem:[%s3942_s17 + $0x538] sm:$0xff] %v2611_v44  ;;  %v2356_v3 = vmul.f32 0.5, %v2100_v51  ;;  %v1339_v9 = vadd.f32 %v1083_v2, %v5384_v54  ;;  %v573_v16 = vmul.f32 %v5408_v28, %v5408_v28  ;;  %v5465_v44 = vld [vmem:[%s3832_s24 + $0x5c0] sm:$0xff] }
 0x1b1   : > { %v574_v10 = vmul.f32 %v5411_v0, %v5411_v0  ;;  %v2357_v43 = vmul.f32 0.5, %v2101_v1  ;;  %v2102_v36 = vadd.f32 1.0, %v3457_v34  ;;  %v1594_v37 = vmul.f32 0.7978846, %v1338_v63 }
 0x1b2   : > { %v828_v14 = vmul.f32 %v572_v33, %v5404_v41  ;;  %v2612_v4 = vmul.f32 %v2356_v3, %v5317_v6  ;;  %v1595_v15 = vmul.f32 0.7978846, %v1339_v9  ;;  %v829_v19 = vmul.f32 %v573_v16, %v5408_v28 }
 0x1b3   : > { %v830_v53 = vmul.f32 %v574_v10, %v5411_v0  ;;  %v3459_v50 = vpop.eup %3458  ;;  %v2613_v20 = vmul.f32 %v2357_v43, %v5333_v11  ;;  %v2358_v58 = vmul.f32 0.5, %v2102_v36  ;;  %3464 = vtanh.f32 %v1594_v37 }
 0x1b4   : > { %v1084_v24 = vmul.f32 0.044715, %v828_v14  ;;  %2868 = vst [vmem:[%s3942_s17 + $0x540] sm:$0xff] %v2612_v4  ;;  %v2103_v6 = vadd.f32 1.0, %v3459_v50  ;;  %3466 = vtanh.f32 %v1595_v15  ;;  %v1085_v59 = vmul.f32 0.044715, %v829_v19 }
 0x1b5   : > { %v3461_v12 = vpop.eup %3460  ;;  %v1086_v62 = vmul.f32 0.044715, %v830_v53  ;;  %2869 = vst [vmem:[%s3942_s17 + $0x548] sm:$0xff] %v2613_v20  ;;  %v2614_v13 = vmul.f32 %v2358_v58, %v5338_v21  ;;  %v575_v26 = vmul.f32 %v5430_v7, %v5430_v7  ;;  %v576_v25 = vmul.f32 %v5434_v5, %v5434_v5  ;;  %v5482_v14 = vld [vmem:[%s3832_s24 + $0x5c8] sm:$0xff] }
 0x1b6   : > { %v3463_v17 = vpop.eup %3462  ;;  %v2104_v42 = vadd.f32 1.0, %v3461_v12  ;;  %v1340_v11 = vadd.f32 %v1084_v24, %v5404_v41  ;;  %v2359_v29 = vmul.f32 0.5, %v2103_v6  ;;  %v1341_v27 = vadd.f32 %v1085_v59, %v5408_v28 }
 0x1b7   : > { %v2105_v57 = vadd.f32 1.0, %v3463_v17  ;;  %v1342_v23 = vadd.f32 %v1086_v62, %v5411_v0  ;;  %2870 = vst [vmem:[%s3942_s17 + $0x550] sm:$0xff] %v2614_v13  ;;  %v831_v21 = vmul.f32 %v575_v26, %v5430_v7  ;;  %v832_v40 = vmul.f32 %v576_v25, %v5434_v5  ;;  %v5503_v25 = vld [vmem:[%s3832_s24 + $0x5e0] sm:$0xff] }
 0x1b8   : > { %v2360_v8 = vmul.f32 0.5, %v2104_v42  ;;  %v1596_v18 = vmul.f32 0.7978846, %v1340_v11  ;;  %v2615_v48 = vmul.f32 %v2359_v29, %v5357_v56  ;;  %v1597_v32 = vmul.f32 0.7978846, %v1341_v27  ;;  %v5496_v27 = vld [vmem:[%s3832_s24 + $0x5d0] sm:$0xff] }
 0x1b9   : > { %v2361_v45 = vmul.f32 0.5, %v2105_v57  ;;  %v1598_v22 = vmul.f32 0.7978846, %v1342_v23  ;;  %v3465_v46 = vpop.eup %3464  ;;  %v1087_v47 = vmul.f32 0.044715, %v831_v21  ;;  %v577_v55 = vmul.f32 %v5449_v30, %v5449_v30  ;;  %v5500_v21 = vld [vmem:[%s3832_s24 + $0x5d8] sm:$0xff] }
 0x1ba   : > { %v2616_v35 = vmul.f32 %v2360_v8, %v5361_v61  ;;  %3468 = vtanh.f32 %v1596_v18  ;;  %v3467_v49 = vpop.eup %3466  ;;  %2871 = vst [vmem:[%s3942_s17 + $0x558] sm:$0xff] %v2615_v48  ;;  %v2106_v38 = vadd.f32 1.0, %v3465_v46  ;;  %v1088_v2 = vmul.f32 0.044715, %v832_v40  ;;  %v5511_v40 = vld [vmem:[%s3832_s24 + $0x5e8] sm:$0xff] }
 0x1bb   : > { %v2617_v56 = vmul.f32 %v2361_v45, %v5364_v60  ;;  %3470 = vtanh.f32 %v1597_v32  ;;  %v2107_v61 = vadd.f32 1.0, %v3467_v49  ;;  %v1343_v51 = vadd.f32 %v1087_v47, %v5430_v7 }
 0x1bc   : > { %2872 = vst [vmem:[%s3942_s17 + $0x560] sm:$0xff] %v2616_v35  ;;  %3472 = vtanh.f32 %v1598_v22  ;;  %v2362_v1 = vmul.f32 0.5, %v2106_v38  ;;  %v833_v63 = vmul.f32 %v577_v55, %v5449_v30  ;;  %v578_v60 = vmul.f32 %v5455_v39, %v5455_v39  ;;  %v5520_v55 = vld [vmem:[%s3832_s24 + $0x5f0] sm:$0xff] }
 0x1bd   : > { %2873 = vst [vmem:[%s3942_s17 + $0x568] sm:$0xff] %v2617_v56  ;;  %v579_v33 = vmul.f32 %v5458_v31, %v5458_v31  ;;  %v2363_v34 = vmul.f32 0.5, %v2107_v61  ;;  %v1599_v3 = vmul.f32 0.7978846, %v1343_v51  ;;  %v1344_v9 = vadd.f32 %v1088_v2, %v5434_v5 }
 0x1be   : > { %v580_v16 = vmul.f32 %v5465_v44, %v5465_v44  ;;  %v2618_v10 = vmul.f32 %v2362_v1, %v5375_v52  ;;  %v1089_v43 = vmul.f32 0.044715, %v833_v63  ;;  %v834_v36 = vmul.f32 %v578_v60, %v5455_v39 }
 0x1bf   : > { %v835_v37 = vmul.f32 %v579_v33, %v5458_v31  ;;  %v2619_v15 = vmul.f32 %v2363_v34, %v5384_v54  ;;  %3474 = vtanh.f32 %v1599_v3  ;;  %v1600_v19 = vmul.f32 0.7978846, %v1344_v9 }
 0x1c0   : > { %v3469_v4 = vpop.eup %3468  ;;  %v836_v53 = vmul.f32 %v580_v16, %v5465_v44  ;;  %2874 = vst [vmem:[%s3942_s17 + $0x570] sm:$0xff] %v2618_v10  ;;  %v1345_v52 = vadd.f32 %v1089_v43, %v5449_v30  ;;  %v1090_v58 = vmul.f32 0.044715, %v834_v36  ;;  %v581_v54 = vmul.f32 %v5482_v14, %v5482_v14 }
 0x1c1   : > { %v3471_v50 = vpop.eup %3470  ;;  %v2108_v20 = vadd.f32 1.0, %v3469_v4  ;;  %v1091_v24 = vmul.f32 0.044715, %v835_v37  ;;  %2875 = vst [vmem:[%s3942_s17 + $0x578] sm:$0xff] %v2619_v15  ;;  %3476 = vtanh.f32 %v1600_v19  ;;  %v582_v47 = vmul.f32 %v5496_v27, %v5496_v27  ;;  %v5532_v37 = vld [vmem:[%s3832_s24 + $0x5f8] sm:$0xff] }
 0x1c2   : > { %v3473_v12 = vpop.eup %3472  ;;  %v2109_v6 = vadd.f32 1.0, %v3471_v50  ;;  %v1092_v59 = vmul.f32 0.044715, %v836_v53  ;;  %v1601_v13 = vmul.f32 0.7978846, %v1345_v52  ;;  %v1346_v42 = vadd.f32 %v1090_v58, %v5455_v39 }
 0x1c3   : > { %v2364_v62 = vmul.f32 0.5, %v2108_v20  ;;  %v2110_v17 = vadd.f32 1.0, %v3473_v12  ;;  %v1347_v26 = vadd.f32 %v1091_v24, %v5458_v31  ;;  %v837_v57 = vmul.f32 %v581_v54, %v5482_v14 }
 0x1c4   : > { %v2365_v11 = vmul.f32 0.5, %v2109_v6  ;;  %v1348_v29 = vadd.f32 %v1092_v59, %v5465_v44  ;;  %3478 = vtanh.f32 %v1601_v13  ;;  %v1602_v18 = vmul.f32 0.7978846, %v1346_v42 }
 0x1c5   : > { %v2620_v23 = vmul.f32 %v2364_v62, %v5404_v41  ;;  %v2366_v8 = vmul.f32 0.5, %v2110_v17  ;;  %v3475_v48 = vpop.eup %3474  ;;  %v1603_v32 = vmul.f32 0.7978846, %v1347_v26  ;;  %v1093_v46 = vmul.f32 0.044715, %v837_v57  ;;  %v5547_v57 = vld [vmem:[%s3832_s24 + $0x600] sm:$0xff] }
 0x1c6   : > { %v2621_v45 = vmul.f32 %v2365_v11, %v5408_v28  ;;  %v1604_v22 = vmul.f32 0.7978846, %v1348_v29  ;;  %v2111_v35 = vadd.f32 1.0, %v3475_v48  ;;  %3480 = vtanh.f32 %v1602_v18  ;;  %v5552_v48 = vld [vmem:[%s3832_s24 + $0x608] sm:$0xff] }
 0x1c7   : > { %2876 = vst [vmem:[%s3942_s17 + $0x580] sm:$0xff] %v2620_v23  ;;  %v2622_v41 = vmul.f32 %v2366_v8, %v5411_v0  ;;  %v3477_v49 = vpop.eup %3476  ;;  %3482 = vtanh.f32 %v1603_v32  ;;  %v1349_v28 = vadd.f32 %v1093_v46, %v5482_v14  ;;  %v583_v56 = vmul.f32 %v5500_v21, %v5500_v21 }
 0x1c8   : > { %2877 = vst [vmem:[%s3942_s17 + $0x588] sm:$0xff] %v2621_v45  ;;  %v584_v38 = vmul.f32 %v5503_v25, %v5503_v25  ;;  %v2367_v0 = vmul.f32 0.5, %v2111_v35  ;;  %v2112_v61 = vadd.f32 1.0, %v3477_v49  ;;  %3484 = vtanh.f32 %v1604_v22  ;;  %v5555_v45 = vld [vmem:[%s3832_s24 + $0x610] sm:$0xff] }
 0x1c9   : > { %2878 = vst [vmem:[%s3942_s17 + $0x590] sm:$0xff] %v2622_v41  ;;  %v838_v51 = vmul.f32 %v582_v47, %v5496_v27  ;;  %v1605_v2 = vmul.f32 0.7978846, %v1349_v28  ;;  %v839_v1 = vmul.f32 %v583_v56, %v5500_v21  ;;  %v585_v60 = vmul.f32 %v5511_v40, %v5511_v40  ;;  %v5559_v41 = vld [vmem:[%s3832_s24 + $0x618] sm:$0xff]  ;;  %v5568_v28 = vld [vmem:[%s3832_s24 + $0x620] sm:$0xff] }
 0x1ca   : > { %v840_v63 = vmul.f32 %v584_v38, %v5503_v25  ;;  %v3479_v33 = vpop.eup %3478  ;;  %v2623_v34 = vmul.f32 %v2367_v0, %v5430_v7  ;;  %v2368_v3 = vmul.f32 0.5, %v2112_v61  ;;  %v586_v16 = vmul.f32 %v5520_v55, %v5520_v55 }
 0x1cb   : > { %v1094_v9 = vmul.f32 0.044715, %v838_v51  ;;  %v2113_v10 = vadd.f32 1.0, %v3479_v33  ;;  %3486 = vtanh.f32 %v1605_v2  ;;  %v1095_v43 = vmul.f32 0.044715, %v839_v1 }
 0x1cc   : > { %v1096_v36 = vmul.f32 0.044715, %v840_v63  ;;  %v3481_v4 = vpop.eup %3480  ;;  %2879 = vst [vmem:[%s3942_s17 + $0x598] sm:$0xff] %v2623_v34  ;;  %v2624_v15 = vmul.f32 %v2368_v3, %v5434_v5  ;;  %v841_v7 = vmul.f32 %v585_v60, %v5511_v40  ;;  %v842_v53 = vmul.f32 %v586_v16, %v5520_v55 }
 0x1cd   : > { %v1350_v19 = vadd.f32 %v1094_v9, %v5496_v27  ;;  %v3483_v50 = vpop.eup %3482  ;;  %v2369_v20 = vmul.f32 0.5, %v2113_v10  ;;  %v2114_v52 = vadd.f32 1.0, %v3481_v4  ;;  %v1351_v58 = vadd.f32 %v1095_v43, %v5500_v21 }
 0x1ce   : > { %v1352_v24 = vadd.f32 %v1096_v36, %v5503_v25  ;;  %v3485_v12 = vpop.eup %3484  ;;  %2880 = vst [vmem:[%s3942_s17 + $0x5a0] sm:$0xff] %v2624_v15  ;;  %v2115_v6 = vadd.f32 1.0, %v3483_v50  ;;  %v1097_v5 = vmul.f32 0.044715, %v841_v7  ;;  %v587_v54 = vmul.f32 %v5532_v37, %v5532_v37 }
 0x1cf   : > { %v1606_v59 = vmul.f32 0.7978846, %v1350_v19  ;;  %v2625_v62 = vmul.f32 %v2369_v20, %v5449_v30  ;;  %v2370_v17 = vmul.f32 0.5, %v2114_v52  ;;  %v2116_v13 = vadd.f32 1.0, %v3485_v12 }
 0x1d0   : > { %v1607_v42 = vmul.f32 0.7978846, %v1351_v58  ;;  %v2371_v11 = vmul.f32 0.5, %v2115_v6  ;;  %v1608_v26 = vmul.f32 0.7978846, %v1352_v24  ;;  %v1353_v29 = vadd.f32 %v1097_v5, %v5511_v40  ;;  %v5592_v5 = vld [vmem:[%s3832_s24 + $0x628] sm:$0xff] }
 0x1d1   : > { %3488 = vtanh.f32 %v1606_v59  ;;  %v3487_v23 = vpop.eup %3486  ;;  %2881 = vst [vmem:[%s3942_s17 + $0x5a8] sm:$0xff] %v2625_v62  ;;  %v2626_v8 = vmul.f32 %v2370_v17, %v5455_v39  ;;  %v2372_v18 = vmul.f32 0.5, %v2116_v13  ;;  %v1098_v30 = vmul.f32 0.044715, %v842_v53 }
 0x1d2   : > { %3490 = vtanh.f32 %v1607_v42  ;;  %v2627_v32 = vmul.f32 %v2371_v11, %v5458_v31  ;;  %v2117_v22 = vadd.f32 1.0, %v3487_v23  ;;  %v1609_v46 = vmul.f32 0.7978846, %v1353_v29 }
 0x1d3   : > { %3492 = vtanh.f32 %v1608_v26  ;;  %2882 = vst [vmem:[%s3942_s17 + $0x5b0] sm:$0xff] %v2626_v8  ;;  %v2628_v39 = vmul.f32 %v2372_v18, %v5465_v44  ;;  %v1354_v35 = vadd.f32 %v1098_v30, %v5520_v55  ;;  %v843_v47 = vmul.f32 %v587_v54, %v5532_v37  ;;  %v5595_v54 = vld [vmem:[%s3832_s24 + $0x630] sm:$0xff]  ;;  %v5608_v30 = vld [vmem:[%s3832_s24 + $0x638] sm:$0xff] }
 0x1d4   : > { %v588_v49 = vmul.f32 %v5547_v57, %v5547_v57  ;;  %2883 = vst [vmem:[%s3942_s17 + $0x5b8] sm:$0xff] %v2627_v32  ;;  %v2373_v31 = vmul.f32 0.5, %v2117_v22  ;;  %3494 = vtanh.f32 %v1609_v46  ;;  %v589_v56 = vmul.f32 %v5552_v48, %v5552_v48  ;;  %v5611_v32 = vld [vmem:[%s3832_s24 + $0x640] sm:$0xff] }
 0x1d5   : > { %v590_v38 = vmul.f32 %v5555_v45, %v5555_v45  ;;  %2884 = vst [vmem:[%s3942_s17 + $0x5c0] sm:$0xff] %v2628_v39  ;;  %v1610_v44 = vmul.f32 0.7978846, %v1354_v35  ;;  %v1099_v0 = vmul.f32 0.044715, %v843_v47  ;;  %v591_v51 = vmul.f32 %v5559_v41, %v5559_v41 }
 0x1d6   : > { %v844_v61 = vmul.f32 %v588_v49, %v5547_v57  ;;  %v2629_v1 = vmul.f32 %v2373_v31, %v5482_v14  ;;  %v845_v63 = vmul.f32 %v589_v56, %v5552_v48  ;;  %v592_v33 = vmul.f32 %v5568_v28, %v5568_v28  ;;  %v5618_v49 = vld [vmem:[%s3832_s24 + $0x648] sm:$0xff] }
 0x1d7   : > { %v3489_v2 = vpop.eup %3488  ;;  %v846_v60 = vmul.f32 %v590_v38, %v5555_v45  ;;  %3496 = vtanh.f32 %v1610_v44  ;;  %v1355_v9 = vadd.f32 %v1099_v0, %v5532_v37  ;;  %v847_v14 = vmul.f32 %v591_v51, %v5559_v41  ;;  %v5627_v44 = vld [vmem:[%s3832_s24 + $0x650] sm:$0xff] }
 0x1d8   : > { %v3491_v34 = vpop.eup %3490  ;;  %v2118_v3 = vadd.f32 1.0, %v3489_v2  ;;  %v1100_v16 = vmul.f32 0.044715, %v844_v61  ;;  %2885 = vst [vmem:[%s3942_s17 + $0x5c8] sm:$0xff] %v2629_v1  ;;  %v1101_v36 = vmul.f32 0.044715, %v845_v63  ;;  %v848_v23 = vmul.f32 %v592_v33, %v5568_v28 }
 0x1d9   : > { %v3493_v10 = vpop.eup %3492  ;;  %v2119_v43 = vadd.f32 1.0, %v3491_v34  ;;  %v1102_v4 = vmul.f32 0.044715, %v846_v60  ;;  %v1611_v7 = vmul.f32 0.7978846, %v1355_v9  ;;  %v594_v18 = vmul.f32 %v5595_v54, %v5595_v54 }
 0x1da   : > { %v2374_v15 = vmul.f32 0.5, %v2118_v3  ;;  %v2120_v19 = vadd.f32 1.0, %v3493_v10  ;;  %v1356_v53 = vadd.f32 %v1100_v16, %v5547_v57  ;;  %v3495_v50 = vpop.eup %3494  ;;  %v1357_v52 = vadd.f32 %v1101_v36, %v5552_v48 }
 0x1db   : > { %v2375_v20 = vmul.f32 0.5, %v2119_v43  ;;  %v1358_v58 = vadd.f32 %v1102_v4, %v5555_v45  ;;  %v1103_v24 = vmul.f32 0.044715, %v847_v14  ;;  %v2121_v59 = vadd.f32 1.0, %v3495_v50 }
 0x1dc   : > { %v2630_v12 = vmul.f32 %v2374_v15, %v5496_v27  ;;  %v2376_v6 = vmul.f32 0.5, %v2120_v19  ;;  %3498 = vtanh.f32 %v1611_v7  ;;  %v1612_v17 = vmul.f32 0.7978846, %v1356_v53 }
 0x1dd   : > { %v2631_v62 = vmul.f32 %v2375_v20, %v5500_v21  ;;  %v1613_v13 = vmul.f32 0.7978846, %v1357_v52  ;;  %v1614_v42 = vmul.f32 0.7978846, %v1358_v58  ;;  %v3497_v11 = vpop.eup %3496  ;;  %v2377_v26 = vmul.f32 0.5, %v2121_v59 }
 0x1de   : > { %2886 = vst [vmem:[%s3942_s17 + $0x5d0] sm:$0xff] %v2630_v12  ;;  %v2632_v27 = vmul.f32 %v2376_v6, %v5503_v25  ;;  %v1359_v29 = vadd.f32 %v1103_v24, %v5559_v41  ;;  %v2122_v8 = vadd.f32 1.0, %v3497_v11  ;;  %3500 = vtanh.f32 %v1612_v17 }
 0x1df   : > { %2887 = vst [vmem:[%s3942_s17 + $0x5d8] sm:$0xff] %v2631_v62  ;;  %v593_v21 = vmul.f32 %v5592_v5, %v5592_v5  ;;  %v2633_v25 = vmul.f32 %v2377_v26, %v5511_v40  ;;  %3502 = vtanh.f32 %v1613_v13  ;;  %v1104_v46 = vmul.f32 0.044715, %v848_v23  ;;  %v5653_v23 = vld [vmem:[%s3832_s24 + $0x668] sm:$0xff] }
 0x1e0   : > { %2888 = vst [vmem:[%s3942_s17 + $0x5e0] sm:$0xff] %v2632_v27  ;;  %v1615_v22 = vmul.f32 0.7978846, %v1359_v29  ;;  %v2378_v39 = vmul.f32 0.5, %v2122_v8  ;;  %3504 = vtanh.f32 %v1614_v42  ;;  %v850_v47 = vmul.f32 %v594_v18, %v5595_v54  ;;  %v5649_v42 = vld [vmem:[%s3832_s24 + $0x660] sm:$0xff] }
 0x1e1   : > { %v849_v35 = vmul.f32 %v593_v21, %v5592_v5  ;;  %2889 = vst [vmem:[%s3942_s17 + $0x5e8] sm:$0xff] %v2633_v25  ;;  %v1360_v56 = vadd.f32 %v1104_v46, %v5568_v28  ;;  %v595_v40 = vmul.f32 %v5608_v30, %v5608_v30  ;;  %v596_v38 = vmul.f32 %v5611_v32, %v5611_v32  ;;  %v5661_v25 = vld [vmem:[%s3832_s24 + $0x670] sm:$0xff] }
 0x1e2   : > { %v3499_v31 = vpop.eup %3498  ;;  %3506 = vtanh.f32 %v1615_v22  ;;  %v2634_v0 = vmul.f32 %v2378_v39, %v5520_v55  ;;  %v1106_v2 = vmul.f32 0.044715, %v850_v47  ;;  %v597_v33 = vmul.f32 %v5618_v49, %v5618_v49 }
 0x1e3   : > { %v2123_v61 = vadd.f32 1.0, %v3499_v31  ;;  %v1105_v51 = vmul.f32 0.044715, %v849_v35  ;;  %v1616_v1 = vmul.f32 0.7978846, %v1360_v56  ;;  %v851_v63 = vmul.f32 %v595_v40, %v5608_v30 }
 0x1e4   : > { %v852_v60 = vmul.f32 %v596_v38, %v5611_v32  ;;  %v3501_v34 = vpop.eup %3500  ;;  %2890 = vst [vmem:[%s3942_s17 + $0x5f0] sm:$0xff] %v2634_v0  ;;  %v1362_v16 = vadd.f32 %v1106_v2, %v5595_v54  ;;  %v598_v55 = vmul.f32 %v5627_v44, %v5627_v44  ;;  %v853_v59 = vmul.f32 %v597_v33, %v5618_v49 }
 0x1e5   : > { %v2379_v3 = vmul.f32 0.5, %v2123_v61  ;;  %v1361_v9 = vadd.f32 %v1105_v51, %v5592_v5  ;;  %v3503_v10 = vpop.eup %3502  ;;  %v2124_v43 = vadd.f32 1.0, %v3501_v34  ;;  %3508 = vtanh.f32 %v1616_v1 }
 0x1e6   : > { %v1107_v36 = vmul.f32 0.044715, %v851_v63  ;;  %v1108_v4 = vmul.f32 0.044715, %v852_v60  ;;  %v3505_v14 = vpop.eup %3504  ;;  %v2125_v19 = vadd.f32 1.0, %v3503_v10  ;;  %v854_v21 = vmul.f32 %v598_v55, %v5627_v44 }
 0x1e7   : > { %v2635_v15 = vmul.f32 %v2379_v3, %v5532_v37  ;;  %v1617_v7 = vmul.f32 0.7978846, %v1361_v9  ;;  %v1618_v53 = vmul.f32 0.7978846, %v1362_v16  ;;  %v2380_v20 = vmul.f32 0.5, %v2124_v43  ;;  %v5645_v37 = vld [vmem:[%s3832_s24 + $0x658] sm:$0xff] }
 0x1e8   : > { %v3507_v50 = vpop.eup %3506  ;;  %v2126_v52 = vadd.f32 1.0, %v3505_v14  ;;  %v1363_v58 = vadd.f32 %v1107_v36, %v5608_v30  ;;  %v1364_v24 = vadd.f32 %v1108_v4, %v5611_v32  ;;  %v2381_v12 = vmul.f32 0.5, %v2125_v19 }
 0x1e9   : > { %2891 = vst [vmem:[%s3942_s17 + $0x5f8] sm:$0xff] %v2635_v15  ;;  %v2127_v6 = vadd.f32 1.0, %v3507_v50  ;;  %3510 = vtanh.f32 %v1617_v7  ;;  %v2636_v62 = vmul.f32 %v2380_v20, %v5547_v57  ;;  %v1109_v29 = vmul.f32 0.044715, %v853_v59  ;;  %v5700_v59 = vld [vmem:[%s3832_s24 + $0x690] sm:$0xff] }
 0x1ea   : > { %v2382_v17 = vmul.f32 0.5, %v2126_v52  ;;  %3512 = vtanh.f32 %v1618_v53  ;;  %v1619_v13 = vmul.f32 0.7978846, %v1363_v58  ;;  %v2637_v11 = vmul.f32 %v2381_v12, %v5552_v48  ;;  %v5664_v48 = vld [vmem:[%s3832_s24 + $0x678] sm:$0xff]  ;;  %v5689_v53 = vld [vmem:[%s3832_s24 + $0x680] sm:$0xff] }
 0x1eb   : > { %v2383_v27 = vmul.f32 0.5, %v2127_v6  ;;  %v1620_v26 = vmul.f32 0.7978846, %v1364_v24  ;;  %v3509_v8 = vpop.eup %3508  ;;  %2892 = vst [vmem:[%s3942_s17 + $0x600] sm:$0xff] %v2636_v62  ;;  %v599_v18 = vmul.f32 %v5645_v37, %v5645_v37  ;;  %v1365_v39 = vadd.f32 %v1109_v29, %v5618_v49  ;;  %v5697_v6 = vld [vmem:[%s3832_s24 + $0x688] sm:$0xff] }
 0x1ec   : > { %v2638_v57 = vmul.f32 %v2382_v17, %v5555_v45  ;;  %3514 = vtanh.f32 %v1619_v13  ;;  %2893 = vst [vmem:[%s3942_s17 + $0x608] sm:$0xff] %v2637_v11  ;;  %v2128_v46 = vadd.f32 1.0, %v3509_v8  ;;  %v1110_v45 = vmul.f32 0.044715, %v854_v21 }
 0x1ed   : > { %v2639_v22 = vmul.f32 %v2383_v27, %v5559_v41  ;;  %3516 = vtanh.f32 %v1620_v26  ;;  %v855_v35 = vmul.f32 %v599_v18, %v5645_v37  ;;  %v600_v47 = vmul.f32 %v5649_v42, %v5649_v42  ;;  %v5715_v18 = vld [vmem:[%s3832_s24 + $0x698] sm:$0xff] }
 0x1ee   : > { %2894 = vst [vmem:[%s3942_s17 + $0x610] sm:$0xff] %v2638_v57  ;;  %v601_v31 = vmul.f32 %v5653_v23, %v5653_v23  ;;  %v2384_v40 = vmul.f32 0.5, %v2128_v46  ;;  %v1621_v38 = vmul.f32 0.7978846, %v1365_v39  ;;  %v602_v41 = vmul.f32 %v5661_v25, %v5661_v25 }
 0x1ef   : > { %v3511_v56 = vpop.eup %3510  ;;  %2895 = vst [vmem:[%s3942_s17 + $0x618] sm:$0xff] %v2639_v22  ;;  %v603_v0 = vmul.f32 %v5664_v48, %v5664_v48  ;;  %v1366_v2 = vadd.f32 %v1110_v45, %v5627_v44  ;;  %v1111_v1 = vmul.f32 0.044715, %v855_v35  ;;  %v856_v63 = vmul.f32 %v600_v47, %v5649_v42 }
 0x1f0   : > { %v3513_v61 = vpop.eup %3512  ;;  %v2129_v51 = vadd.f32 1.0, %v3511_v56  ;;  %v2640_v60 = vmul.f32 %v2384_v40, %v5568_v28  ;;  %3518 = vtanh.f32 %v1621_v38  ;;  %v857_v34 = vmul.f32 %v601_v31, %v5653_v23  ;;  %v5722_v56 = vld [vmem:[%s3832_s24 + $0x6a0] sm:$0xff] }
 0x1f1   : > { %v2130_v33 = vadd.f32 1.0, %v3513_v61  ;;  %v1622_v16 = vmul.f32 0.7978846, %v1366_v2  ;;  %v1367_v55 = vadd.f32 %v1111_v1, %v5645_v37  ;;  %v1112_v10 = vmul.f32 0.044715, %v856_v63 }
 0x1f2   : > { %v3515_v3 = vpop.eup %3514  ;;  %v2385_v9 = vmul.f32 0.5, %v2129_v51  ;;  %2896 = vst [vmem:[%s3942_s17 + $0x620] sm:$0xff] %v2640_v60  ;;  %v1113_v14 = vmul.f32 0.044715, %v857_v34  ;;  %v858_v28 = vmul.f32 %v602_v41, %v5661_v25  ;;  %v604_v11 = vmul.f32 %v5689_v53, %v5689_v53 }
 0x1f3   : > { %v3517_v43 = vpop.eup %3516  ;;  %v2386_v36 = vmul.f32 0.5, %v2130_v33  ;;  %v2131_v4 = vadd.f32 1.0, %v3515_v3  ;;  %3520 = vtanh.f32 %v1622_v16  ;;  %v1623_v7 = vmul.f32 0.7978846, %v1367_v55 }
 0x1f4   : > { %v2641_v15 = vmul.f32 %v2385_v9, %v5592_v5  ;;  %v2132_v19 = vadd.f32 1.0, %v3517_v43  ;;  %v1368_v52 = vadd.f32 %v1112_v10, %v5649_v42  ;;  %v1369_v58 = vadd.f32 %v1113_v14, %v5653_v23  ;;  %v5737_v14 = vld [vmem:[%s3832_s24 + $0x6a8] sm:$0xff] }
 0x1f5   : > { %v2642_v50 = vmul.f32 %v2386_v36, %v5595_v54  ;;  %v2387_v20 = vmul.f32 0.5, %v2131_v4  ;;  %3522 = vtanh.f32 %v1623_v7  ;;  %v1114_v12 = vmul.f32 0.044715, %v858_v28 }
 0x1f6   : > { %2897 = vst [vmem:[%s3942_s17 + $0x628] sm:$0xff] %v2641_v15  ;;  %v2388_v24 = vmul.f32 0.5, %v2132_v19  ;;  %v859_v5 = vmul.f32 %v603_v0, %v5664_v48  ;;  %v3519_v62 = vpop.eup %3518  ;;  %v1624_v17 = vmul.f32 0.7978846, %v1368_v52  ;;  %v1625_v13 = vmul.f32 0.7978846, %v1369_v58 }
 0x1f7   : > { %2898 = vst [vmem:[%s3942_s17 + $0x630] sm:$0xff] %v2642_v50  ;;  %v2643_v54 = vmul.f32 %v2387_v20, %v5608_v30  ;;  %v2133_v26 = vadd.f32 1.0, %v3519_v62  ;;  %v1370_v29 = vadd.f32 %v1114_v12, %v5661_v25  ;;  %v860_v57 = vmul.f32 %v604_v11, %v5689_v53  ;;  %v5754_v11 = vld [vmem:[%s3832_s24 + $0x6c0] sm:$0xff] }
 0x1f8   : > { %v2644_v27 = vmul.f32 %v2388_v24, %v5611_v32  ;;  %v1115_v8 = vmul.f32 0.044715, %v859_v5  ;;  %3524 = vtanh.f32 %v1624_v17  ;;  %v605_v21 = vmul.f32 %v5697_v6, %v5697_v6  ;;  %v5746_v5 = vld [vmem:[%s3832_s24 + $0x6b0] sm:$0xff] }
 0x1f9   : > { %2899 = vst [vmem:[%s3942_s17 + $0x638] sm:$0xff] %v2643_v54  ;;  %v606_v30 = vmul.f32 %v5700_v59, %v5700_v59  ;;  %v3521_v22 = vpop.eup %3520  ;;  %v2389_v32 = vmul.f32 0.5, %v2133_v26  ;;  %3526 = vtanh.f32 %v1625_v13  ;;  %v1626_v46 = vmul.f32 0.7978846, %v1370_v29 }
 0x1fa   : > { %2900 = vst [vmem:[%s3942_s17 + $0x640] sm:$0xff] %v2644_v27  ;;  %v1371_v39 = vadd.f32 %v1115_v8, %v5664_v48  ;;  %v2134_v45 = vadd.f32 1.0, %v3521_v22  ;;  %v1116_v35 = vmul.f32 0.044715, %v860_v57  ;;  %v861_v47 = vmul.f32 %v605_v21, %v5697_v6 }
 0x1fb   : > { %v862_v31 = vmul.f32 %v606_v30, %v5700_v59  ;;  %v3523_v40 = vpop.eup %3522  ;;  %v2645_v38 = vmul.f32 %v2389_v32, %v5618_v49  ;;  %3528 = vtanh.f32 %v1626_v46  ;;  %v607_v0 = vmul.f32 %v5715_v18, %v5715_v18  ;;  %v5764_v30 = vld [vmem:[%s3832_s24 + $0x6c8] sm:$0xff] }
 0x1fc   : > { %v1627_v41 = vmul.f32 0.7978846, %v1371_v39  ;;  %v2390_v61 = vmul.f32 0.5, %v2134_v45  ;;  %v2135_v51 = vadd.f32 1.0, %v3523_v40  ;;  %v1372_v2 = vadd.f32 %v1116_v35, %v5689_v53 }
 0x1fd   : > { %v1117_v1 = vmul.f32 0.044715, %v861_v47  ;;  %2901 = vst [vmem:[%s3942_s17 + $0x648] sm:$0xff] %v2645_v38  ;;  %v1118_v63 = vmul.f32 0.044715, %v862_v31  ;;  %v863_v60 = vmul.f32 %v607_v0, %v5715_v18  ;;  %v608_v49 = vmul.f32 %v5722_v56, %v5722_v56  ;;  %v5779_v0 = vld [vmem:[%s3832_s24 + $0x6d0] sm:$0xff] }
 0x1fe   : > { %3530 = vtanh.f32 %v1627_v41  ;;  %v3525_v33 = vpop.eup %3524  ;;  %v2646_v34 = vmul.f32 %v2390_v61, %v5627_v44  ;;  %v2391_v3 = vmul.f32 0.5, %v2135_v51  ;;  %v1628_v9 = vmul.f32 0.7978846, %v1372_v2 }
 0x1ff   : > { %v1373_v16 = vadd.f32 %v1117_v1, %v5697_v6  ;;  %v3527_v55 = vpop.eup %3526  ;;  %v2136_v10 = vadd.f32 1.0, %v3525_v33  ;;  %v1374_v43 = vadd.f32 %v1118_v63, %v5700_v59  ;;  %v1119_v36 = vmul.f32 0.044715, %v863_v60 }
 0x200   : > { %v864_v4 = vmul.f32 %v608_v49, %v5722_v56  ;;  %2902 = vst [vmem:[%s3942_s17 + $0x650] sm:$0xff] %v2646_v34  ;;  %v2647_v28 = vmul.f32 %v2391_v3, %v5645_v37  ;;  %v2137_v44 = vadd.f32 1.0, %v3527_v55  ;;  %3532 = vtanh.f32 %v1628_v9  ;;  %v5749_v37 = vld [vmem:[%s3832_s24 + $0x6b8] sm:$0xff] }
 0x201   : > { %v1629_v15 = vmul.f32 0.7978846, %v1373_v16  ;;  %v3529_v19 = vpop.eup %3528  ;;  %v2392_v7 = vmul.f32 0.5, %v2136_v10  ;;  %v1630_v50 = vmul.f32 0.7978846, %v1374_v43  ;;  %v1375_v20 = vadd.f32 %v1119_v36, %v5715_v18 }
 0x202   : > { %v1120_v52 = vmul.f32 0.044715, %v864_v4  ;;  %2903 = vst [vmem:[%s3942_s17 + $0x658] sm:$0xff] %v2647_v28  ;;  %v2393_v58 = vmul.f32 0.5, %v2137_v44  ;;  %v2138_v24 = vadd.f32 1.0, %v3529_v19  ;;  %v609_v12 = vmul.f32 %v5737_v14, %v5737_v14  ;;  %v5788_v4 = vld [vmem:[%s3832_s24 + $0x6d8] sm:$0xff] }
 0x203   : > { %3534 = vtanh.f32 %v1629_v15  ;;  %v2648_v54 = vmul.f32 %v2392_v7, %v5649_v42  ;;  %v1631_v17 = vmul.f32 0.7978846, %v1375_v20  ;;  %v610_v42 = vmul.f32 %v5746_v5, %v5746_v5  ;;  %v5795_v7 = vld [vmem:[%s3832_s24 + $0x6e0] sm:$0xff] }
 0x204   : > { %v3531_v62 = vpop.eup %3530  ;;  %3536 = vtanh.f32 %v1630_v50  ;;  %v1376_v13 = vadd.f32 %v1120_v52, %v5722_v56  ;;  %v2649_v27 = vmul.f32 %v2393_v58, %v5653_v23  ;;  %v2394_v26 = vmul.f32 0.5, %v2138_v24 }
 0x205   : > { %v2139_v29 = vadd.f32 1.0, %v3531_v62  ;;  %v865_v8 = vmul.f32 %v609_v12, %v5737_v14  ;;  %2904 = vst [vmem:[%s3942_s17 + $0x660] sm:$0xff] %v2648_v54  ;;  %3538 = vtanh.f32 %v1631_v17  ;;  %v611_v21 = vmul.f32 %v5749_v37, %v5749_v37  ;;  %v5803_v62 = vld [vmem:[%s3832_s24 + $0x6e8] sm:$0xff]  ;;  %v5806_v54 = vld [vmem:[%s3832_s24 + $0x6f0] sm:$0xff] }
 0x206   : > { %v1632_v57 = vmul.f32 0.7978846, %v1376_v13  ;;  %v3533_v22 = vpop.eup %3532  ;;  %2905 = vst [vmem:[%s3942_s17 + $0x668] sm:$0xff] %v2649_v27  ;;  %v2650_v23 = vmul.f32 %v2394_v26, %v5661_v25  ;;  %v612_v39 = vmul.f32 %v5754_v11, %v5754_v11  ;;  %v866_v35 = vmul.f32 %v610_v42, %v5746_v5 }
 0x207   : > { %v2395_v32 = vmul.f32 0.5, %v2139_v29  ;;  %v1121_v46 = vmul.f32 0.044715, %v865_v8  ;;  %v2140_v45 = vadd.f32 1.0, %v3533_v22  ;;  %v867_v47 = vmul.f32 %v611_v21, %v5749_v37  ;;  %v5815_v8 = vld [vmem:[%s3832_s24 + $0x6f8] sm:$0xff] }
 0x208   : > { %3540 = vtanh.f32 %v1632_v57  ;;  %2906 = vst [vmem:[%s3942_s17 + $0x670] sm:$0xff] %v2650_v23  ;;  %v868_v25 = vmul.f32 %v612_v39, %v5754_v11  ;;  %v613_v41 = vmul.f32 %v5764_v30, %v5764_v30  ;;  %v1122_v1 = vmul.f32 0.044715, %v866_v35 }
 0x209   : > { %v3535_v31 = vpop.eup %3534  ;;  %v2651_v40 = vmul.f32 %v2395_v32, %v5664_v48  ;;  %v1377_v38 = vadd.f32 %v1121_v46, %v5737_v14  ;;  %v2396_v51 = vmul.f32 0.5, %v2140_v45  ;;  %v1123_v63 = vmul.f32 0.044715, %v867_v47 }
 0x20a   : > { %v3537_v61 = vpop.eup %3536  ;;  %v2141_v2 = vadd.f32 1.0, %v3535_v31  ;;  %v1124_v48 = vmul.f32 0.044715, %v868_v25  ;;  %v869_v33 = vmul.f32 %v613_v41, %v5764_v30  ;;  %v1378_v16 = vadd.f32 %v1122_v1, %v5746_v5 }
 0x20b   : > { %2907 = vst [vmem:[%s3942_s17 + $0x678] sm:$0xff] %v2651_v40  ;;  %v2142_v60 = vadd.f32 1.0, %v3537_v61  ;;  %v1633_v49 = vmul.f32 0.7978846, %v1377_v38  ;;  %v3539_v34 = vpop.eup %3538  ;;  %v2652_v3 = vmul.f32 %v2396_v51, %v5689_v53  ;;  %v1379_v55 = vadd.f32 %v1123_v63, %v5749_v37 }
 0x20c   : > { %v2397_v9 = vmul.f32 0.5, %v2141_v2  ;;  %v2143_v43 = vadd.f32 1.0, %v3539_v34  ;;  %v1380_v36 = vadd.f32 %v1124_v48, %v5754_v11  ;;  %v1634_v53 = vmul.f32 0.7978846, %v1378_v16  ;;  %v5835_v16 = vld [vmem:[%s3832_s24 + $0x700] sm:$0xff] }
 0x20d   : > { %v2398_v10 = vmul.f32 0.5, %v2142_v60  ;;  %3542 = vtanh.f32 %v1633_v49  ;;  %2908 = vst [vmem:[%s3942_s17 + $0x680] sm:$0xff] %v2652_v3  ;;  %v1635_v15 = vmul.f32 0.7978846, %v1379_v55  ;;  %v614_v19 = vmul.f32 %v5779_v0, %v5779_v0 }
 0x20e   : > { %v3541_v28 = vpop.eup %3540  ;;  %v2653_v44 = vmul.f32 %v2397_v9, %v5697_v6  ;;  %v2399_v20 = vmul.f32 0.5, %v2143_v43  ;;  %v1636_v58 = vmul.f32 0.7978846, %v1380_v36  ;;  %3544 = vtanh.f32 %v1634_v53  ;;  %v5841_v43 = vld [vmem:[%s3832_s24 + $0x708] sm:$0xff]  ;;  %v5845_v53 = vld [vmem:[%s3832_s24 + $0x710] sm:$0xff] }
 0x20f   : > { %v2654_v50 = vmul.f32 %v2398_v10, %v5700_v59  ;;  %v2144_v52 = vadd.f32 1.0, %v3541_v28  ;;  %v1125_v24 = vmul.f32 0.044715, %v869_v33  ;;  %v870_v6 = vmul.f32 %v614_v19, %v5779_v0 }
 0x210   : > { %2909 = vst [vmem:[%s3942_s17 + $0x688] sm:$0xff] %v2653_v44  ;;  %v615_v12 = vmul.f32 %v5788_v4, %v5788_v4  ;;  %v2655_v59 = vmul.f32 %v2399_v20, %v5715_v18  ;;  %3546 = vtanh.f32 %v1635_v15  ;;  %v616_v13 = vmul.f32 %v5795_v7, %v5795_v7 }
 0x211   : > { %2910 = vst [vmem:[%s3942_s17 + $0x690] sm:$0xff] %v2654_v50  ;;  %v2400_v17 = vmul.f32 0.5, %v2144_v52  ;;  %3548 = vtanh.f32 %v1636_v58  ;;  %v1381_v27 = vadd.f32 %v1125_v24, %v5764_v30  ;;  %v1126_v26 = vmul.f32 0.044715, %v870_v6  ;;  %v5851_v58 = vld [vmem:[%s3832_s24 + $0x718] sm:$0xff] }
 0x212   : > { %v871_v29 = vmul.f32 %v615_v12, %v5788_v4  ;;  %2911 = vst [vmem:[%s3942_s17 + $0x698] sm:$0xff] %v2655_v59  ;;  %v872_v18 = vmul.f32 %v616_v13, %v5795_v7  ;;  %v617_v21 = vmul.f32 %v5803_v62, %v5803_v62  ;;  %v618_v22 = vmul.f32 %v5806_v54, %v5806_v54  ;;  %v5858_v12 = vld [vmem:[%s3832_s24 + $0x720] sm:$0xff] }
 0x213   : > { %v3543_v57 = vpop.eup %3542  ;;  %v2656_v42 = vmul.f32 %v2400_v17, %v5722_v56  ;;  %v1637_v32 = vmul.f32 0.7978846, %v1381_v27  ;;  %v1382_v46 = vadd.f32 %v1126_v26, %v5779_v0  ;;  %v619_v56 = vmul.f32 %v5815_v8, %v5815_v8 }
 0x214   : > { %v2145_v23 = vadd.f32 1.0, %v3543_v57  ;;  %v1127_v39 = vmul.f32 0.044715, %v871_v29  ;;  %v1128_v45 = vmul.f32 0.044715, %v872_v18  ;;  %v873_v35 = vmul.f32 %v617_v21, %v5803_v62  ;;  %v3545_v31 = vpop.eup %3544 }
 0x215   : > { %2912 = vst [vmem:[%s3942_s17 + $0x6a0] sm:$0xff] %v2656_v42  ;;  %v874_v47 = vmul.f32 %v618_v22, %v5806_v54  ;;  %3550 = vtanh.f32 %v1637_v32  ;;  %v1638_v38 = vmul.f32 0.7978846, %v1382_v46  ;;  %v2146_v61 = vadd.f32 1.0, %v3545_v31 }
 0x216   : > { %v2401_v40 = vmul.f32 0.5, %v2145_v23  ;;  %v1383_v25 = vadd.f32 %v1127_v39, %v5788_v4  ;;  %v3547_v41 = vpop.eup %3546  ;;  %v1384_v51 = vadd.f32 %v1128_v45, %v5795_v7  ;;  %v1129_v2 = vmul.f32 0.044715, %v873_v35 }
 0x217   : > { %v1130_v1 = vmul.f32 0.044715, %v874_v47  ;;  %v3549_v63 = vpop.eup %3548  ;;  %v2147_v49 = vadd.f32 1.0, %v3547_v41  ;;  %3552 = vtanh.f32 %v1638_v38  ;;  %v2402_v33 = vmul.f32 0.5, %v2146_v61 }
 0x218   : > { %v2657_v60 = vmul.f32 %v2401_v40, %v5737_v14  ;;  %v1639_v48 = vmul.f32 0.7978846, %v1383_v25  ;;  %v2148_v34 = vadd.f32 1.0, %v3549_v63  ;;  %v1640_v3 = vmul.f32 0.7978846, %v1384_v51  ;;  %v5880_v63 = vld [vmem:[%s3832_s24 + $0x728] sm:$0xff] }
 0x219   : > { %v1385_v9 = vadd.f32 %v1129_v2, %v5803_v62  ;;  %v2403_v55 = vmul.f32 0.5, %v2147_v49  ;;  %v1386_v10 = vadd.f32 %v1130_v1, %v5806_v54  ;;  %v875_v14 = vmul.f32 %v619_v56, %v5815_v8 }
 0x21a   : > { %2913 = vst [vmem:[%s3942_s17 + $0x6a8] sm:$0xff] %v2657_v60  ;;  %3554 = vtanh.f32 %v1639_v48  ;;  %v2658_v36 = vmul.f32 %v2402_v33, %v5746_v5  ;;  %v2404_v28 = vmul.f32 0.5, %v2148_v34  ;;  %v620_v52 = vmul.f32 %v5835_v16, %v5835_v16  ;;  %v5883_v60 = vld [vmem:[%s3832_s24 + $0x730] sm:$0xff] }
 0x21b   : > { %3556 = vtanh.f32 %v1640_v3  ;;  %v1641_v44 = vmul.f32 0.7978846, %v1385_v9  ;;  %v3551_v15 = vpop.eup %3550  ;;  %v2659_v19 = vmul.f32 %v2403_v55, %v5749_v37  ;;  %v1642_v50 = vmul.f32 0.7978846, %v1386_v10 }
 0x21c   : > { %v1131_v20 = vmul.f32 0.044715, %v875_v14  ;;  %2914 = vst [vmem:[%s3942_s17 + $0x6b0] sm:$0xff] %v2658_v36  ;;  %v2660_v5 = vmul.f32 %v2404_v28, %v5754_v11  ;;  %v2149_v24 = vadd.f32 1.0, %v3551_v15  ;;  %v621_v6 = vmul.f32 %v5841_v43, %v5841_v43  ;;  %v5892_v36 = vld [vmem:[%s3832_s24 + $0x738] sm:$0xff] }
 0x21d   : > { %3558 = vtanh.f32 %v1641_v44  ;;  %v3553_v59 = vpop.eup %3552  ;;  %2915 = vst [vmem:[%s3942_s17 + $0x6b8] sm:$0xff] %v2659_v19  ;;  %v876_v17 = vmul.f32 %v620_v52, %v5835_v16  ;;  %v622_v13 = vmul.f32 %v5845_v53, %v5845_v53  ;;  %v623_v29 = vmul.f32 %v5851_v58, %v5851_v58  ;;  %v5904_v19 = vld [vmem:[%s3832_s24 + $0x748] sm:$0xff] }
 0x21e   : > { %3560 = vtanh.f32 %v1642_v50  ;;  %v1387_v37 = vadd.f32 %v1131_v20, %v5815_v8  ;;  %2916 = vst [vmem:[%s3942_s17 + $0x6c0] sm:$0xff] %v2660_v5  ;;  %v2405_v27 = vmul.f32 0.5, %v2149_v24  ;;  %v2150_v11 = vadd.f32 1.0, %v3553_v59 }
 0x21f   : > { %v877_v26 = vmul.f32 %v621_v6, %v5841_v43  ;;  %v1132_v18 = vmul.f32 0.044715, %v876_v17  ;;  %v878_v21 = vmul.f32 %v622_v13, %v5845_v53  ;;  %v624_v22 = vmul.f32 %v5858_v12, %v5858_v12 }
 0x220   : > { %v3555_v57 = vpop.eup %3554  ;;  %v1643_v42 = vmul.f32 0.7978846, %v1387_v37  ;;  %v2661_v32 = vmul.f32 %v2405_v27, %v5764_v30  ;;  %v2406_v46 = vmul.f32 0.5, %v2150_v11  ;;  %v879_v30 = vmul.f32 %v623_v29, %v5851_v58 }
 0x221   : > { %v3557_v23 = vpop.eup %3556  ;;  %v2151_v39 = vadd.f32 1.0, %v3555_v57  ;;  %v1133_v45 = vmul.f32 0.044715, %v877_v26  ;;  %v1388_v47 = vadd.f32 %v1132_v18, %v5835_v16  ;;  %v1134_v56 = vmul.f32 0.044715, %v878_v21 }
 0x222   : > { %v2152_v35 = vadd.f32 1.0, %v3557_v23  ;;  %3562 = vtanh.f32 %v1643_v42  ;;  %2917 = vst [vmem:[%s3942_s17 + $0x6c8] sm:$0xff] %v2661_v32  ;;  %v2662_v40 = vmul.f32 %v2406_v46, %v5779_v0  ;;  %v1135_v33 = vmul.f32 0.044715, %v879_v30 }
 0x223   : > { %v3559_v31 = vpop.eup %3558  ;;  %v2407_v38 = vmul.f32 0.5, %v2151_v39  ;;  %v1389_v25 = vadd.f32 %v1133_v45, %v5841_v43  ;;  %v1644_v2 = vmul.f32 0.7978846, %v1388_v47  ;;  %v1390_v1 = vadd.f32 %v1134_v56, %v5845_v53 }
 0x224   : > { %v3561_v41 = vpop.eup %3560  ;;  %v2408_v61 = vmul.f32 0.5, %v2152_v35  ;;  %v2153_v51 = vadd.f32 1.0, %v3559_v31  ;;  %2918 = vst [vmem:[%s3942_s17 + $0x6d0] sm:$0xff] %v2662_v40  ;;  %v1391_v10 = vadd.f32 %v1135_v33, %v5851_v58  ;;  %v880_v14 = vmul.f32 %v624_v22, %v5858_v12  ;;  %v5936_v33 = vld [vmem:[%s3832_s24 + $0x760] sm:$0xff] }
 0x225   : > { %v2663_v0 = vmul.f32 %v2407_v38, %v5788_v4  ;;  %v2154_v49 = vadd.f32 1.0, %v3561_v41  ;;  %v1645_v48 = vmul.f32 0.7978846, %v1389_v25  ;;  %3564 = vtanh.f32 %v1644_v2  ;;  %v5895_v4 = vld [vmem:[%s3832_s24 + $0x740] sm:$0xff]  ;;  %v5929_v2 = vld [vmem:[%s3832_s24 + $0x750] sm:$0xff] }
 0x226   : > { %v2664_v34 = vmul.f32 %v2408_v61, %v5795_v7  ;;  %v2409_v3 = vmul.f32 0.5, %v2153_v51  ;;  %v1646_v9 = vmul.f32 0.7978846, %v1390_v1  ;;  %v625_v44 = vmul.f32 %v5880_v63, %v5880_v63  ;;  %v5932_v1 = vld [vmem:[%s3832_s24 + $0x758] sm:$0xff] }
 0x227   : > { %2919 = vst [vmem:[%s3942_s17 + $0x6d8] sm:$0xff] %v2663_v0  ;;  %v2410_v55 = vmul.f32 0.5, %v2154_v49  ;;  %3566 = vtanh.f32 %v1645_v48  ;;  %v626_v15 = vmul.f32 %v5883_v60, %v5883_v60  ;;  %v1647_v52 = vmul.f32 0.7978846, %v1391_v10 }
 0x228   : > { %v3563_v28 = vpop.eup %3562  ;;  %2920 = vst [vmem:[%s3942_s17 + $0x6e0] sm:$0xff] %v2664_v34  ;;  %v2665_v7 = vmul.f32 %v2409_v3, %v5803_v62  ;;  %3568 = vtanh.f32 %v1646_v9  ;;  %v1136_v5 = vmul.f32 0.044715, %v880_v14  ;;  %v881_v24 = vmul.f32 %v625_v44, %v5880_v63  ;;  %v5939_v34 = vld [vmem:[%s3832_s24 + $0x768] sm:$0xff]  ;;  %v5950_v14 = vld [vmem:[%s3832_s24 + $0x770] sm:$0xff] }
 0x229   : > { %v2666_v50 = vmul.f32 %v2410_v55, %v5806_v54  ;;  %v2155_v20 = vadd.f32 1.0, %v3563_v28  ;;  %v882_v6 = vmul.f32 %v626_v15, %v5883_v60  ;;  %v627_v62 = vmul.f32 %v5892_v36, %v5892_v36  ;;  %v5958_v15 = vld [vmem:[%s3832_s24 + $0x778] sm:$0xff] }
 0x22a   : > { %2921 = vst [vmem:[%s3942_s17 + $0x6e8] sm:$0xff] %v2665_v7  ;;  %v628_v59 = vmul.f32 %v5895_v4, %v5895_v4  ;;  %3570 = vtanh.f32 %v1647_v52  ;;  %v1392_v17 = vadd.f32 %v1136_v5, %v5858_v12  ;;  %v629_v54 = vmul.f32 %v5904_v19, %v5904_v19 }
 0x22b   : > { %2922 = vst [vmem:[%s3942_s17 + $0x6f0] sm:$0xff] %v2666_v50  ;;  %v2411_v37 = vmul.f32 0.5, %v2155_v20  ;;  %v3565_v13 = vpop.eup %3564  ;;  %v1137_v27 = vmul.f32 0.044715, %v881_v24  ;;  %v1138_v11 = vmul.f32 0.044715, %v882_v6  ;;  %v883_v26 = vmul.f32 %v627_v62, %v5892_v36 }
 0x22c   : > { %v884_v29 = vmul.f32 %v628_v59, %v5895_v4  ;;  %v2156_v18 = vadd.f32 1.0, %v3565_v13  ;;  %v1648_v21 = vmul.f32 0.7978846, %v1392_v17  ;;  %v885_v22 = vmul.f32 %v629_v54, %v5904_v19 }
 0x22d   : > { %v3567_v57 = vpop.eup %3566  ;;  %v2667_v42 = vmul.f32 %v2411_v37, %v5815_v8  ;;  %v1393_v46 = vadd.f32 %v1137_v27, %v5880_v63  ;;  %v1394_v39 = vadd.f32 %v1138_v11, %v5883_v60  ;;  %v1139_v45 = vmul.f32 0.044715, %v883_v26 }
 0x22e   : > { %v3569_v23 = vpop.eup %3568  ;;  %v2157_v32 = vadd.f32 1.0, %v3567_v57  ;;  %v2412_v35 = vmul.f32 0.5, %v2156_v18  ;;  %3572 = vtanh.f32 %v1648_v21  ;;  %v1140_v56 = vmul.f32 0.044715, %v884_v29 }
 0x22f   : > { %2923 = vst [vmem:[%s3942_s17 + $0x6f8] sm:$0xff] %v2667_v42  ;;  %v2158_v47 = vadd.f32 1.0, %v3569_v23  ;;  %v1649_v31 = vmul.f32 0.7978846, %v1393_v46  ;;  %v1650_v40 = vmul.f32 0.7978846, %v1394_v39  ;;  %v1395_v38 = vadd.f32 %v1139_v45, %v5892_v36 }
 0x230   : > { %v2413_v8 = vmul.f32 0.5, %v2157_v32  ;;  %v3571_v25 = vpop.eup %3570  ;;  %v2668_v30 = vmul.f32 %v2412_v35, %v5835_v16  ;;  %v1396_v61 = vadd.f32 %v1140_v56, %v5895_v4  ;;  %v1141_v51 = vmul.f32 0.044715, %v885_v22 }
 0x231   : > { %v2414_v41 = vmul.f32 0.5, %v2158_v47  ;;  %v2159_v49 = vadd.f32 1.0, %v3571_v25  ;;  %3574 = vtanh.f32 %v1649_v31  ;;  %v1651_v48 = vmul.f32 0.7978846, %v1395_v38 }
 0x232   : > { %v2669_v0 = vmul.f32 %v2413_v8, %v5841_v43  ;;  %2924 = vst [vmem:[%s3942_s17 + $0x700] sm:$0xff] %v2668_v30  ;;  %3576 = vtanh.f32 %v1650_v40  ;;  %v1652_v3 = vmul.f32 0.7978846, %v1396_v61  ;;  %v1397_v9 = vadd.f32 %v1141_v51, %v5904_v19  ;;  %v5981_v51 = vld [vmem:[%s3832_s24 + $0x780] sm:$0xff] }
 0x233   : > { %v2670_v16 = vmul.f32 %v2414_v41, %v5845_v53  ;;  %v2415_v55 = vmul.f32 0.5, %v2159_v49  ;;  %3578 = vtanh.f32 %v1651_v48  ;;  %v630_v43 = vmul.f32 %v5929_v2, %v5929_v2  ;;  %v5987_v49 = vld [vmem:[%s3832_s24 + $0x790] sm:$0xff] }
 0x234   : > { %2925 = vst [vmem:[%s3942_s17 + $0x708] sm:$0xff] %v2669_v0  ;;  %v631_v10 = vmul.f32 %v5932_v1, %v5932_v1  ;;  %v3573_v28 = vpop.eup %3572  ;;  %3580 = vtanh.f32 %v1652_v3  ;;  %v1653_v53 = vmul.f32 0.7978846, %v1397_v9  ;;  %v632_v7 = vmul.f32 %v5936_v33, %v5936_v33  ;;  %v5984_v0 = vld [vmem:[%s3832_s24 + $0x788] sm:$0xff] }
 0x235   : > { %2926 = vst [vmem:[%s3942_s17 + $0x710] sm:$0xff] %v2670_v16  ;;  %v633_v44 = vmul.f32 %v5939_v34, %v5939_v34  ;;  %v2671_v50 = vmul.f32 %v2415_v55, %v5851_v58  ;;  %v2160_v20 = vadd.f32 1.0, %v3573_v28  ;;  %v886_v52 = vmul.f32 %v630_v43, %v5929_v2  ;;  %v5997_v43 = vld [vmem:[%s3832_s24 + $0x7a0] sm:$0xff] }
 0x236   : > { %v887_v5 = vmul.f32 %v631_v10, %v5932_v1  ;;  %3582 = vtanh.f32 %v1653_v53  ;;  %v888_v24 = vmul.f32 %v632_v7, %v5936_v33  ;;  %v634_v62 = vmul.f32 %v5950_v14, %v5950_v14  ;;  %v6006_v53 = vld [vmem:[%s3832_s24 + $0x7a8] sm:$0xff] }
 0x237   : > { %v889_v6 = vmul.f32 %v633_v44, %v5939_v34  ;;  %v3575_v59 = vpop.eup %3574  ;;  %2927 = vst [vmem:[%s3942_s17 + $0x718] sm:$0xff] %v2671_v50  ;;  %v2416_v37 = vmul.f32 0.5, %v2160_v20  ;;  %v1142_v17 = vmul.f32 0.044715, %v886_v52  ;;  %v635_v58 = vmul.f32 %v5958_v15, %v5958_v15 }
 0x238   : > { %v1143_v54 = vmul.f32 0.044715, %v887_v5  ;;  %v3577_v13 = vpop.eup %3576  ;;  %v2161_v27 = vadd.f32 1.0, %v3575_v59  ;;  %v1144_v11 = vmul.f32 0.044715, %v888_v24  ;;  %v890_v29 = vmul.f32 %v634_v62, %v5950_v14 }
 0x239   : > { %v1145_v26 = vmul.f32 0.044715, %v889_v6  ;;  %v3579_v57 = vpop.eup %3578  ;;  %v2672_v42 = vmul.f32 %v2416_v37, %v5858_v12  ;;  %v2162_v18 = vadd.f32 1.0, %v3577_v13  ;;  %v1398_v21 = vadd.f32 %v1142_v17, %v5929_v2 }
 0x23a   : > { %v1399_v22 = vadd.f32 %v1143_v54, %v5932_v1  ;;  %v3581_v23 = vpop.eup %3580  ;;  %v2417_v32 = vmul.f32 0.5, %v2161_v27  ;;  %v2163_v46 = vadd.f32 1.0, %v3579_v57  ;;  %v1400_v39 = vadd.f32 %v1144_v11, %v5936_v33 }
 0x23b   : > { %v1401_v45 = vadd.f32 %v1145_v26, %v5939_v34  ;;  %2928 = vst [vmem:[%s3942_s17 + $0x720] sm:$0xff] %v2672_v42  ;;  %v2418_v35 = vmul.f32 0.5, %v2162_v18  ;;  %v2164_v47 = vadd.f32 1.0, %v3581_v23  ;;  %v1654_v12 = vmul.f32 0.7978846, %v1398_v21 }
 0x23c   : > { %v891_v56 = vmul.f32 %v635_v58, %v5958_v15  ;;  %v3583_v8 = vpop.eup %3582  ;;  %v2673_v31 = vmul.f32 %v2417_v32, %v5880_v63  ;;  %v2419_v40 = vmul.f32 0.5, %v2163_v46  ;;  %v1655_v38 = vmul.f32 0.7978846, %v1399_v22 }
 0x23d   : > { %v1656_v25 = vmul.f32 0.7978846, %v1400_v39  ;;  %v2674_v30 = vmul.f32 %v2418_v35, %v5883_v60  ;;  %v2420_v41 = vmul.f32 0.5, %v2164_v47  ;;  %v2165_v61 = vadd.f32 1.0, %v3583_v8  ;;  %v5992_v60 = vld [vmem:[%s3832_s24 + $0x798] sm:$0xff] }
 0x23e   : > { %3584 = vtanh.f32 %v1654_v12  ;;  %2929 = vst [vmem:[%s3942_s17 + $0x728] sm:$0xff] %v2673_v31  ;;  %v2675_v63 = vmul.f32 %v2419_v40, %v5892_v36  ;;  %v1657_v48 = vmul.f32 0.7978846, %v1401_v45  ;;  %v1146_v16 = vmul.f32 0.044715, %v890_v29 }
 0x23f   : > { %3586 = vtanh.f32 %v1655_v38  ;;  %2930 = vst [vmem:[%s3942_s17 + $0x730] sm:$0xff] %v2674_v30  ;;  %v2676_v3 = vmul.f32 %v2420_v41, %v5895_v4  ;;  %v2421_v9 = vmul.f32 0.5, %v2165_v61  ;;  %v1147_v55 = vmul.f32 0.044715, %v891_v56  ;;  %v6030_v56 = vld [vmem:[%s3832_s24 + $0x7b0] sm:$0xff]  ;;  %v6038_v61 = vld [vmem:[%s3832_s24 + $0x7b8] sm:$0xff] }
 0x240   : > { %3588 = vtanh.f32 %v1656_v25  ;;  %2931 = vst [vmem:[%s3942_s17 + $0x738] sm:$0xff] %v2675_v63  ;;  %v1402_v36 = vadd.f32 %v1146_v16, %v5950_v14  ;;  %v636_v10 = vmul.f32 %v5981_v51, %v5981_v51  ;;  %v637_v28 = vmul.f32 %v5984_v0, %v5984_v0 }
 0x241   : > { %3590 = vtanh.f32 %v1657_v48  ;;  %2932 = vst [vmem:[%s3942_s17 + $0x740] sm:$0xff] %v2676_v3  ;;  %v2677_v4 = vmul.f32 %v2421_v9, %v5904_v19  ;;  %v1403_v7 = vadd.f32 %v1147_v55, %v5958_v15  ;;  %v638_v44 = vmul.f32 %v5987_v49, %v5987_v49  ;;  %v6045_v3 = vld [vmem:[%s3832_s24 + $0x7c0] sm:$0xff] }
 0x242   : > { %v639_v50 = vmul.f32 %v5992_v60, %v5992_v60  ;;  %v1658_v20 = vmul.f32 0.7978846, %v1402_v36  ;;  %v892_v52 = vmul.f32 %v636_v10, %v5981_v51  ;;  %v893_v5 = vmul.f32 %v637_v28, %v5984_v0 }
 0x243   : > { %v640_v24 = vmul.f32 %v5997_v43, %v5997_v43  ;;  %2933 = vst [vmem:[%s3942_s17 + $0x748] sm:$0xff] %v2677_v4  ;;  %v1659_v62 = vmul.f32 0.7978846, %v1403_v7  ;;  %v894_v19 = vmul.f32 %v638_v44, %v5987_v49  ;;  %v641_v37 = vmul.f32 %v6006_v53, %v6006_v53 }
 0x244   : > { %v3585_v6 = vpop.eup %3584  ;;  %v895_v59 = vmul.f32 %v639_v50, %v5992_v60  ;;  %3592 = vtanh.f32 %v1658_v20  ;;  %v1148_v58 = vmul.f32 0.044715, %v892_v52  ;;  %v1149_v13 = vmul.f32 0.044715, %v893_v5 }
 0x245   : > { %v3587_v17 = vpop.eup %3586  ;;  %v2166_v54 = vadd.f32 1.0, %v3585_v6  ;;  %3594 = vtanh.f32 %v1659_v62  ;;  %v1150_v26 = vmul.f32 0.044715, %v894_v19  ;;  %v897_v41 = vmul.f32 %v641_v37, %v6006_v53  ;;  %v6064_v6 = vld [vmem:[%s3832_s24 + $0x7d0] sm:$0xff] }
 0x246   : > { %v3589_v27 = vpop.eup %3588  ;;  %v2167_v11 = vadd.f32 1.0, %v3587_v17  ;;  %v1151_v29 = vmul.f32 0.044715, %v895_v59  ;;  %v1404_v21 = vadd.f32 %v1148_v58, %v5981_v51  ;;  %v1405_v22 = vadd.f32 %v1149_v13, %v5984_v0 }
 0x247   : > { %v3591_v57 = vpop.eup %3590  ;;  %v2422_v42 = vmul.f32 0.5, %v2166_v54  ;;  %v2168_v18 = vadd.f32 1.0, %v3589_v27  ;;  %v1406_v46 = vadd.f32 %v1150_v26, %v5987_v49  ;;  %v642_v16 = vmul.f32 %v6030_v56, %v6030_v56 }
 0x248   : > { %v2423_v23 = vmul.f32 0.5, %v2167_v11  ;;  %v2169_v32 = vadd.f32 1.0, %v3591_v57  ;;  %v1407_v39 = vadd.f32 %v1151_v29, %v5992_v60  ;;  %v1660_v47 = vmul.f32 0.7978846, %v1404_v21 }
 0x249   : > { %v2678_v45 = vmul.f32 %v2422_v42, %v5929_v2  ;;  %v2424_v35 = vmul.f32 0.5, %v2168_v18  ;;  %v1661_v12 = vmul.f32 0.7978846, %v1405_v22  ;;  %v1662_v40 = vmul.f32 0.7978846, %v1406_v46 }
 0x24a   : > { %v2679_v8 = vmul.f32 %v2423_v23, %v5932_v1  ;;  %v2425_v31 = vmul.f32 0.5, %v2169_v32  ;;  %v1663_v38 = vmul.f32 0.7978846, %v1407_v39  ;;  %v3593_v25 = vpop.eup %3592  ;;  %3596 = vtanh.f32 %v1660_v47  ;;  %v6077_v39 = vld [vmem:[%s3832_s24 + $0x7d8] sm:$0xff] }
 0x24b   : > { %2934 = vst [vmem:[%s3942_s17 + $0x750] sm:$0xff] %v2678_v45  ;;  %v2680_v30 = vmul.f32 %v2424_v35, %v5936_v33  ;;  %v896_v2 = vmul.f32 %v640_v24, %v5997_v43  ;;  %v3595_v63 = vpop.eup %3594  ;;  %v2170_v48 = vadd.f32 1.0, %v3593_v25  ;;  %3598 = vtanh.f32 %v1661_v12  ;;  %v6048_v33 = vld [vmem:[%s3832_s24 + $0x7c8] sm:$0xff]  ;;  %v6081_v12 = vld [vmem:[%s3832_s24 + $0x7e0] sm:$0xff] }
 0x24c   : > { %2935 = vst [vmem:[%s3942_s17 + $0x758] sm:$0xff] %v2679_v8  ;;  %v2681_v1 = vmul.f32 %v2425_v31, %v5939_v34  ;;  %v2171_v9 = vadd.f32 1.0, %v3595_v63  ;;  %3600 = vtanh.f32 %v1662_v40  ;;  %v1153_v36 = vmul.f32 0.044715, %v897_v41  ;;  %v6084_v8 = vld [vmem:[%s3832_s24 + $0x7e8] sm:$0xff] }
 0x24d   : > { %2936 = vst [vmem:[%s3942_s17 + $0x760] sm:$0xff] %v2680_v30  ;;  %v1152_v55 = vmul.f32 0.044715, %v896_v2  ;;  %v2426_v10 = vmul.f32 0.5, %v2170_v48  ;;  %3602 = vtanh.f32 %v1663_v38  ;;  %v898_v34 = vmul.f32 %v642_v16, %v6030_v56 }
 0x24e   : > { %2937 = vst [vmem:[%s3942_s17 + $0x768] sm:$0xff] %v2681_v1  ;;  %v643_v28 = vmul.f32 %v6038_v61, %v6038_v61  ;;  %v2427_v4 = vmul.f32 0.5, %v2171_v9  ;;  %v1409_v44 = vadd.f32 %v1153_v36, %v6006_v53  ;;  %v644_v50 = vmul.f32 %v6045_v3, %v6045_v3 }
 0x24f   : > { %v1408_v7 = vadd.f32 %v1152_v55, %v5997_v43  ;;  %v2682_v20 = vmul.f32 %v2426_v10, %v5950_v14  ;;  %v1154_v52 = vmul.f32 0.044715, %v898_v34  ;;  %v645_v24 = vmul.f32 %v6048_v33, %v6048_v33 }
 0x250   : > { %v899_v5 = vmul.f32 %v643_v28, %v6038_v61  ;;  %v3597_v62 = vpop.eup %3596  ;;  %v2683_v19 = vmul.f32 %v2427_v4, %v5958_v15  ;;  %v1665_v37 = vmul.f32 0.7978846, %v1409_v44  ;;  %v900_v17 = vmul.f32 %v644_v50, %v6045_v3 }
 0x251   : > { %v1664_v59 = vmul.f32 0.7978846, %v1408_v7  ;;  %v3599_v54 = vpop.eup %3598  ;;  %2938 = vst [vmem:[%s3942_s17 + $0x770] sm:$0xff] %v2682_v20  ;;  %v2172_v58 = vadd.f32 1.0, %v3597_v62  ;;  %v1410_v14 = vadd.f32 %v1154_v52, %v6030_v56  ;;  %v901_v27 = vmul.f32 %v645_v24, %v6048_v33 }
 0x252   : > { %v1155_v13 = vmul.f32 0.044715, %v899_v5  ;;  %v3601_v11 = vpop.eup %3600  ;;  %2939 = vst [vmem:[%s3942_s17 + $0x778] sm:$0xff] %v2683_v19  ;;  %v2173_v26 = vadd.f32 1.0, %v3599_v54  ;;  %v1156_v29 = vmul.f32 0.044715, %v900_v17  ;;  %v646_v15 = vmul.f32 %v6064_v6, %v6064_v6 }
 0x253   : > { %3604 = vtanh.f32 %v1664_v59  ;;  %v3603_v57 = vpop.eup %3602  ;;  %v2428_v42 = vmul.f32 0.5, %v2172_v58  ;;  %v2174_v18 = vadd.f32 1.0, %v3601_v11  ;;  %v1666_v21 = vmul.f32 0.7978846, %v1410_v14 }
 0x254   : > { %3606 = vtanh.f32 %v1665_v37  ;;  %v2429_v22 = vmul.f32 0.5, %v2173_v26  ;;  %v2175_v23 = vadd.f32 1.0, %v3603_v57  ;;  %v1411_v32 = vadd.f32 %v1155_v13, %v6038_v61 }
 0x255   : > { %v1412_v46 = vadd.f32 %v1156_v29, %v6045_v3  ;;  %v2684_v45 = vmul.f32 %v2428_v42, %v5981_v51  ;;  %v2430_v35 = vmul.f32 0.5, %v2174_v18  ;;  %3608 = vtanh.f32 %v1666_v21 }
 0x256   : > { %v1157_v47 = vmul.f32 0.044715, %v901_v27  ;;  %v2685_v31 = vmul.f32 %v2429_v22, %v5984_v0  ;;  %v2431_v40 = vmul.f32 0.5, %v2175_v23  ;;  %v1667_v38 = vmul.f32 0.7978846, %v1411_v32  ;;  %v6116_v27 = vld [vmem:[%s3832_s24 + $0x7f8] sm:$0xff] }
 0x257   : > { %v1668_v25 = vmul.f32 0.7978846, %v1412_v46  ;;  %2940 = vst [vmem:[%s3942_s17 + $0x780] sm:$0xff] %v2684_v45  ;;  %v2686_v30 = vmul.f32 %v2430_v35, %v5987_v49  ;;  %v902_v2 = vmul.f32 %v646_v15, %v6064_v6  ;;  %v647_v41 = vmul.f32 %v6077_v39, %v6077_v39  ;;  %v6100_v49 = vld [vmem:[%s3832_s24 + $0x7f0] sm:$0xff] }
 0x258   : > { %v1413_v51 = vadd.f32 %v1157_v47, %v6048_v33  ;;  %2941 = vst [vmem:[%s3942_s17 + $0x788] sm:$0xff] %v2685_v31  ;;  %v2687_v1 = vmul.f32 %v2431_v40, %v5992_v60  ;;  %3610 = vtanh.f32 %v1667_v38  ;;  %v648_v0 = vmul.f32 %v6081_v12, %v6081_v12 }
 0x259   : > { %v3605_v63 = vpop.eup %3604  ;;  %v649_v48 = vmul.f32 %v6084_v8, %v6084_v8  ;;  %2942 = vst [vmem:[%s3942_s17 + $0x790] sm:$0xff] %v2686_v30  ;;  %3612 = vtanh.f32 %v1668_v25  ;;  %v1158_v36 = vmul.f32 0.044715, %v902_v2  ;;  %v903_v34 = vmul.f32 %v647_v41, %v6077_v39 }
 0x25a   : > { %v3607_v16 = vpop.eup %3606  ;;  %v2176_v9 = vadd.f32 1.0, %v3605_v63  ;;  %v1669_v55 = vmul.f32 0.7978846, %v1413_v51  ;;  %2943 = vst [vmem:[%s3942_s17 + $0x798] sm:$0xff] %v2687_v1  ;;  %v904_v60 = vmul.f32 %v648_v0, %v6081_v12  ;;  %v650_v50 = vmul.f32 %v6100_v49, %v6100_v49 }
 0x25b   : > { %v2177_v10 = vadd.f32 1.0, %v3607_v16  ;;  %v905_v28 = vmul.f32 %v649_v48, %v6084_v8  ;;  %v3609_v4 = vpop.eup %3608  ;;  %v1414_v44 = vadd.f32 %v1158_v36, %v6064_v6  ;;  %v1159_v5 = vmul.f32 0.044715, %v903_v34 }
 0x25c   : > { %v2432_v7 = vmul.f32 0.5, %v2176_v9  ;;  %3614 = vtanh.f32 %v1669_v55  ;;  %v2178_v52 = vadd.f32 1.0, %v3609_v4  ;;  %v1160_v24 = vmul.f32 0.044715, %v904_v60 }
 0x25d   : > { %v2433_v20 = vmul.f32 0.5, %v2177_v10  ;;  %v1670_v19 = vmul.f32 0.7978846, %v1414_v44  ;;  %v1161_v59 = vmul.f32 0.044715, %v905_v28  ;;  %v906_v37 = vmul.f32 %v650_v50, %v6100_v49 }
 0x25e   : > { %v2688_v62 = vmul.f32 %v2432_v7, %v5997_v43  ;;  %v3611_v17 = vpop.eup %3610  ;;  %v2434_v58 = vmul.f32 0.5, %v2178_v52  ;;  %v1415_v14 = vadd.f32 %v1159_v5, %v6077_v39  ;;  %v1416_v13 = vadd.f32 %v1160_v24, %v6081_v12 }
 0x25f   : > { %v2689_v54 = vmul.f32 %v2433_v20, %v6006_v53  ;;  %v3613_v11 = vpop.eup %3612  ;;  %v2179_v26 = vadd.f32 1.0, %v3611_v17  ;;  %3616 = vtanh.f32 %v1670_v19  ;;  %v1417_v43 = vadd.f32 %v1161_v59, %v6084_v8 }
 0x260   : > { %2944 = vst [vmem:[%s3942_s17 + $0x7a0] sm:$0xff] %v2688_v62  ;;  %v1162_v29 = vmul.f32 0.044715, %v906_v37  ;;  %v2690_v15 = vmul.f32 %v2434_v58, %v6030_v56  ;;  %v2180_v57 = vadd.f32 1.0, %v3613_v11  ;;  %v1671_v53 = vmul.f32 0.7978846, %v1415_v14 }
 0x261   : > { %2945 = vst [vmem:[%s3942_s17 + $0x7a8] sm:$0xff] %v2689_v54  ;;  %v1672_v42 = vmul.f32 0.7978846, %v1416_v13  ;;  %v2435_v21 = vmul.f32 0.5, %v2179_v26  ;;  %v1673_v22 = vmul.f32 0.7978846, %v1417_v43  ;;  %v651_v32 = vmul.f32 %v6116_v27, %v6116_v27 }
 0x262   : > { %v3615_v18 = vpop.eup %3614  ;;  %v1418_v23 = vadd.f32 %v1162_v29, %v6100_v49  ;;  %2946 = vst [vmem:[%s3942_s17 + $0x7b0] sm:$0xff] %v2690_v15  ;;  %v2436_v46 = vmul.f32 0.5, %v2180_v57  ;;  %3618 = vtanh.f32 %v1671_v53 }
 0x263   : > { %v2181_v45 = vadd.f32 1.0, %v3615_v18  ;;  %v2691_v35 = vmul.f32 %v2435_v21, %v6038_v61  ;;  %3620 = vtanh.f32 %v1672_v42  ;;  %v907_v47 = vmul.f32 %v651_v32, %v6116_v27 }
 0x264   : > { %v1674_v56 = vmul.f32 0.7978846, %v1418_v23  ;;  %v2692_v31 = vmul.f32 %v2436_v46, %v6045_v3  ;;  %3622 = vtanh.f32 %v1673_v22 }
 0x265   : > { %v2437_v40 = vmul.f32 0.5, %v2181_v45  ;;  %v3617_v38 = vpop.eup %3616  ;;  %2947 = vst [vmem:[%s3942_s17 + $0x7b8] sm:$0xff] %v2691_v35  ;;  %v1163_v25 = vmul.f32 0.044715, %v907_v47 }
 0x266   : > { %3624 = vtanh.f32 %v1674_v56  ;;  %2948 = vst [vmem:[%s3942_s17 + $0x7c0] sm:$0xff] %v2692_v31  ;;  %v2182_v51 = vadd.f32 1.0, %v3617_v38 }
 0x267   : > { %v2693_v30 = vmul.f32 %v2437_v40, %v6048_v33  ;;  %v1419_v61 = vadd.f32 %v1163_v25, %v6116_v27 }
 0x268   : > { %v3619_v2 = vpop.eup %3618  ;;  %v2438_v41 = vmul.f32 0.5, %v2182_v51 }
 0x269   : > { %2949 = vst [vmem:[%s3942_s17 + $0x7c8] sm:$0xff] %v2693_v30  ;;  %v3621_v63 = vpop.eup %3620  ;;  %v2183_v1 = vadd.f32 1.0, %v3619_v2  ;;  %v1675_v3 = vmul.f32 0.7978846, %v1419_v61 }
 0x26a   : > { %v3623_v0 = vpop.eup %3622  ;;  %v2694_v48 = vmul.f32 %v2438_v41, %v6064_v6  ;;  %v2184_v16 = vadd.f32 1.0, %v3621_v63 }
 0x26b   : > { %v2439_v55 = vmul.f32 0.5, %v2183_v1  ;;  %v2185_v33 = vadd.f32 1.0, %v3623_v0  ;;  %3626 = vtanh.f32 %v1675_v3 }
 0x26c   : > { %v3625_v9 = vpop.eup %3624  ;;  %2950 = vst [vmem:[%s3942_s17 + $0x7d0] sm:$0xff] %v2694_v48  ;;  %v2440_v36 = vmul.f32 0.5, %v2184_v16 }
 0x26d   : > { %v2186_v10 = vadd.f32 1.0, %v3625_v9  ;;  %v2695_v34 = vmul.f32 %v2439_v55, %v6077_v39  ;;  %v2441_v60 = vmul.f32 0.5, %v2185_v33 }
 0x26e   : > { %v2696_v28 = vmul.f32 %v2440_v36, %v6081_v12 }
 0x26f   : > { %v2442_v4 = vmul.f32 0.5, %v2186_v10  ;;  %2951 = vst [vmem:[%s3942_s17 + $0x7d8] sm:$0xff] %v2695_v34  ;;  %v2697_v6 = vmul.f32 %v2441_v60, %v6084_v8 }
 0x270   : > { %2952 = vst [vmem:[%s3942_s17 + $0x7e0] sm:$0xff] %v2696_v28 }
 0x271   : > { %v2698_v7 = vmul.f32 %v2442_v4, %v6100_v49  ;;  %v3627_v44 = vpop.eup %3626  ;;  %2953 = vst [vmem:[%s3942_s17 + $0x7e8] sm:$0xff] %v2697_v6 }
 0x272   : > { %v2187_v39 = vadd.f32 1.0, %v3627_v44 }
 0x273   : > { %2954 = vst [vmem:[%s3942_s17 + $0x7f0] sm:$0xff] %v2698_v7 }
 0x274   : > { %v2443_v12 = vmul.f32 0.5, %v2187_v39 }
 0x276   : > { %v2699_v50 = vmul.f32 %v2443_v12, %v6116_v27 }
 0x278   : > { %2955 = vst [vmem:[%s3942_s17 + $0x7f8] sm:$0xff] %v2699_v50 }
 0x279   : > { %3685 = shalt.err (!%p3682_p4)
}
 0x27a   : > { %s3728_s16 = smov 2048   ;;  %s3729_s20 = smov 128  }
 0x27b   : > { %3068 = dma.vmem_to_hbm [thread:$0]  (%p3790_p11), %s2971_s10, 32768, %s2973_s29, %s2957_s30, %s3728_s16, %s3728_s16, %s3729_s20  }
 0x27c PF: > { %s2987_s21 = sand.u32 1, %s3712_s6   ;;  %p6187_p7 = scmp.ge.s32.totalorder %s3724_s9, 2 }
 0x27d   : > { %s2988_s22 = scalar_lea.sflag [#allocation4], %s2987_s21 }
 0x27e   : > { %p3075_p5 = pnand %p6187_p7, %p3794_p12 }
 0x280   : > { %p3076_p8 = pneg %p3075_p5 }
 0x282   : > { %3707 = dma.done.wait (%p3076_p8), %s2988_s22, 32768  }
 0x283   : > { %3709 = vsyncadd (%p3076_p8), %s2988_s22, 4294934528  ;;  %p14_p10 = scmp.ge.s32.totalorder %s3765_s12, 4   ;;  %s6188_s6 = smov %s3716_s7 }
 0x284   : > { %s6189_s7 = smov %s3720_s8  ;;  %s6190_s8 = smov %s3777_s15 }
 0x285   : > { %s6191_s9 = smov %s3765_s12  ;;  %16 = sbr.rel (!%p14_p10) target bundleno = 5 (0x5), region = 69 }
 0x28a   :  { %2994 = vsyncpa [#allocation3], 1 }
 0x28b   :  { %2996 = vsyncpa [#allocation3 + $0x1], 1 }
 0x28c   :  { %2997 = vsyncpa [#allocation4], 1 }
 0x28d   :  { %2999 = vsyncpa [#allocation4 + $0x1], 1 }

</bundles_post_ra>
